<compile_context>
chip_gen: v7x
topology: tpu7x:2x2x1
jax: 0.10.0
libtpu: 0.0.40
codegen_flags: <defaults>
</compile_context>

<pallas_src>
import numpy as np
import jax
import jax.numpy as jnp
from jax.experimental import pallas as pl
from jax.experimental.pallas import tpu as pltpu

NUM_CLASSES = 7
HIDDEN = 128
CONV_OUT = 32
FC1_OUT = 64


# ----------------------------------------------------------------------------
# Fused kernel: conv (banded matmul) + ReLU + MaxPool + GRU + fc1/relu + fc2
# ----------------------------------------------------------------------------
def fused_kernel(lhs_ref, m_ref, bc_ref, grub_ref, gruw_hbm, head_hbm,
                 out_ref, gruw_buf, head_buf, sem):
    # Kick off the weight DMAs immediately; they overlap the conv phase.
    cp_w = pltpu.make_async_copy(gruw_hbm, gruw_buf, sem.at[0])
    cp_h = pltpu.make_async_copy(head_hbm, head_buf, sem.at[1])
    cp_w.start()
    cp_h.start()

    bp = out_ref.shape[0]                      # padded batch (multiple of 8)
    rows = lhs_ref.shape[0]                    # 2 * T * bp
    t_steps = rows // (2 * bp)                 # T = W // 2
    feat2 = m_ref.shape[1]                     # 2 * 640
    feat = feat2 // 2                          # 640 = 32 * Hp
    hd = grub_ref.shape[1] // 3                # 128

    # conv1 as one banded matmul; rows ordered (wi_parity, t, b),
    # lanes ordered (hi_parity, hp, channel).  bf16 operands, f32 accumulate.
    z = jnp.dot(lhs_ref[...], m_ref[...], preferred_element_type=jnp.float32)
    z = jnp.maximum(z + bc_ref[...], 0.0)                        # bias + ReLU
    # MaxPool(2x2): width parity = aligned row halves; height parity =
    # 128-aligned lane halves.  Result IS the time-major GRU input sequence.
    half = t_steps * bp
    zp = jnp.maximum(z[:half, :], z[half:, :])
    seq = jnp.maximum(zp[:, :feat], zp[:, feat:])                # (T*bp, 640)

    # GRU weights must be resident now.
    cp_w.wait()
    wih = gruw_buf[0:feat, :]                                    # (640, 384) bf16
    whh = gruw_buf[feat:feat + hd, :]                            # (128, 384) bf16
    bih = grub_ref[0:1, :]
    bhh = grub_ref[1:2, :]

    # Hoisted GRU input projection: one big matmul instead of T tiny ones.
    gi_all = jnp.dot(seq.astype(jnp.bfloat16), wih,
                     preferred_element_type=jnp.float32) + bih   # (T*bp, 384)

    def sigmoid(v):
        return 0.5 * jnp.tanh(0.5 * v) + 0.5                     # single EUP op

    h = jnp.zeros((bp, hd), dtype=jnp.float32)
    for t in range(t_steps):                                     # fully unrolled
        gi = gi_all[t * bp:(t + 1) * bp, :]                      # aligned (8, 384)
        gh = jnp.dot(h.astype(jnp.bfloat16), whh,
                     preferred_element_type=jnp.float32) + bhh
        ru = sigmoid(gi[:, 0:2 * hd] + gh[:, 0:2 * hd])          # fused r/u gates
        r = ru[:, 0:hd]
        u = ru[:, hd:2 * hd]
        n = jnp.tanh(gi[:, 2 * hd:] + r * gh[:, 2 * hd:])
        h = (1.0 - u) * n + u * h

    # Classifier head weights (small, f32); segments are 8-row aligned.
    cp_h.wait()
    f1d = head_buf.shape[1]                                      # 64
    wf1 = head_buf[0:hd, :]                                      # (128, 64)
    bf1 = head_buf[hd:hd + 1, :]                                 # (1, 64)
    wf2 = head_buf[hd + 8:hd + 8 + f1d, :]                       # (64, 64) (padded cols)
    bf2 = head_buf[hd + 8 + f1d:hd + 9 + f1d, :]                 # (1, 64)

    f1 = jnp.maximum(jnp.dot(h, wf1, preferred_element_type=jnp.float32) + bf1, 0.0)
    logits = jnp.dot(f1, wf2, preferred_element_type=jnp.float32) + bf2
    out_ref[...] = logits[:, :out_ref.shape[1]]


def fused_forward(lhs, m, bc, gru_b, gru_w, head, *, batch):
    vmem = pl.BlockSpec(memory_space=pltpu.MemorySpace.VMEM)
    anyspace = pl.BlockSpec(memory_space=pl.ANY)
    return pl.pallas_call(
        fused_kernel,
        out_shape=jax.ShapeDtypeStruct((batch, NUM_CLASSES), jnp.float32),
        in_specs=[vmem, vmem, vmem, vmem, anyspace, anyspace],
        out_specs=vmem,
        scratch_shapes=[
            pltpu.VMEM(gru_w.shape, jnp.bfloat16),
            pltpu.VMEM(head.shape, jnp.float32),
            pltpu.SemaphoreType.DMA((2,)),
        ],
        compiler_params=pltpu.CompilerParams(vmem_limit_bytes=16 * 1024 * 1024),
    )(lhs, m, bc, gru_b, gru_w, head)


# ----------------------------------------------------------------------------
# Glue: weight prep (banded conv matrix, permuted W_ih, packed head) and
# lane-dense LHS with padded batch / padded contraction dim.
# ----------------------------------------------------------------------------
def build_conv_matrix(conv_w, h):
    """M (3*(h+2), 2*(h//2)*32):  M[kw*(h+2) + i + kh, f(i,c)] = conv_w[c,0,kh,kw]
    with f(i,c) = (i%2)*(Hp*32) + (i//2)*32 + c."""
    hp = h // 2
    feat2 = 2 * hp * CONV_OUT
    i_idx = np.arange(h)
    c_idx = np.arange(CONV_OUT)
    fpos = ((i_idx[:, None] % 2) * (hp * CONV_OUT)
            + (i_idx[:, None] // 2) * CONV_OUT + c_idx[None, :])           # (h, 32)
    blocks = []
    for kw in range(3):
        mk = jnp.zeros((h + 2, feat2), jnp.float32)
        for kh in range(3):
            rows = np.broadcast_to((i_idx + kh)[:, None], (h, CONV_OUT))
            vals = jnp.broadcast_to(conv_w[:, 0, kh, kw][None, :], (h, CONV_OUT))
            mk = mk.at[rows, fpos].set(vals)                     # disjoint positions
        blocks.append(mk)
    return jnp.concatenate(blocks, axis=0)                       # (3*(h+2), feat2)


def cnn_gru_forward(x, params):
    (conv_w, conv_b, w_ih, w_hh, b_ih, b_hh,
     fc1_w, fc1_b, fc2_w, fc2_b) = params
    b, _, h, w = x.shape
    hp, wp = h // 2, w // 2                      # wp = T (sequence length)
    feat = CONV_OUT * hp                         # 640 = GRU input size
    assert 3 * HIDDEN == w_ih.shape[0] and feat == w_ih.shape[1]

    # Pad batch so every GRU timestep owns full aligned 8-row sublane tiles.
    bp = ((b + 7) // 8) * 8
    xp = jnp.pad(x, ((0, bp - b), (0, 0), (0, 0), (0, 0)))

    # Conv weights as a banded matmul matrix + lane-ordered bias.
    m = build_conv_matrix(conv_w, h)                             # (3*(h+2), 2*feat)
    k = m.shape[0]
    kpad = ((k + 127) // 128) * 128                              # 126 -> 128
    m = jnp.pad(m, ((0, kpad - k), (0, 0))).astype(jnp.bfloat16)
    bc = jnp.tile(conv_b, (2 * hp,)).reshape(1, 2 * feat)

    # LHS rows ordered (wi_parity, t, b); lanes = 3 concatenated (H+2)-windows
    # of the padded, spatially-transposed image (one window per kw tap).
    xpad = jnp.pad(xp[:, 0], ((0, 0), (1, 1), (1, 1)))           # (BP, H+2, W+2)
    pimg = jnp.transpose(xpad, (0, 2, 1))                        # (BP, W+2, H+2)
    r = np.arange(2 * wp * bp)
    p_idx = r // (wp * bp)
    rem = r % (wp * bp)
    t_idx = rem // bp
    b_idx = rem % bp
    j_idx = 2 * t_idx + p_idx
    lhs = jnp.concatenate([pimg[b_idx, j_idx + kw, :] for kw in range(3)],
                          axis=1)                                # (2*T*BP, 3*(H+2))
    lhs = jnp.pad(lhs, ((0, 0), (0, kpad - k))).astype(jnp.bfloat16)

    # GRU input weight, transposed and row-permuted from torch's (c*Hp + hp)
    # feature order to the kernel's (hp*32 + c) order (replaces permute/view),
    # packed with W_hh^T into one bf16 array (single overlapped DMA).
    wih_perm = jnp.transpose(w_ih.T.reshape(CONV_OUT, hp, 3 * HIDDEN),
                             (1, 0, 2)).reshape(feat, 3 * HIDDEN)
    gru_w = jnp.concatenate([wih_perm, w_hh.T], axis=0).astype(jnp.bfloat16)
    gru_b = jnp.stack([b_ih, b_hh], axis=0)                      # (2, 384)

    # Packed classifier head (all segments start at multiples of 8 rows):
    #   rows [0,128)   = fc1_w^T          (128, 64)
    #   rows [128,136) = fc1_b in row 128
    #   rows [136,200) = fc2_w^T padded to (64, 64)
    #   rows [200,208) = fc2_b (padded to 64 lanes) in row 200
    wf1 = fc1_w.T
    bf1 = jnp.zeros((8, FC1_OUT), jnp.float32).at[0].set(fc1_b)
    wf2 = jnp.zeros((FC1_OUT, FC1_OUT), jnp.float32).at[:, :NUM_CLASSES].set(fc2_w.T)
    bf2 = jnp.zeros((8, FC1_OUT), jnp.float32).at[0, :NUM_CLASSES].set(fc2_b)
    head = jnp.concatenate([wf1, bf1, wf2, bf2], axis=0)         # (208, 64)

    out = fused_forward(lhs, m, bc, gru_b, gru_w, head, batch=bp)
    return out[:b]


# ----------------------------------------------------------------------------
# Pure-JAX reference (for correctness check)
# ----------------------------------------------------------------------------
def forward_ref(x, params):
    (conv_w, conv_b, w_ih, w_hh, b_ih, b_hh,
     fc1_w, fc1_b, fc2_w, fc2_b) = params
    y = jax.lax.conv_general_dilated(x, conv_w, (1, 1), 'SAME',
                                     dimension_numbers=('NCHW', 'OIHW', 'NCHW'))
    y = jax.nn.relu(y + conv_b[None, :, None, None])
    b, c, h, w = y.shape
    y = y.reshape(b, c, h // 2, 2, w // 2, 2).max(axis=(3, 5))
    seq = jnp.transpose(y, (0, 3, 1, 2)).reshape(b, w // 2, c * (h // 2))
    hd = HIDDEN

    def step(hcur, x_t):
        gi = x_t @ w_ih.T + b_ih
        gh = hcur @ w_hh.T + b_hh
        r = jax.nn.sigmoid(gi[:, :hd] + gh[:, :hd])
        z = jax.nn.sigmoid(gi[:, hd:2 * hd] + gh[:, hd:2 * hd])
        n = jnp.tanh(gi[:, 2 * hd:] + r * gh[:, 2 * hd:])
        return (1.0 - z) * n + z * hcur, None

    h0 = jnp.zeros((b, hd), jnp.float32)
    hlast, _ = jax.lax.scan(step, h0, jnp.swapaxes(seq, 0, 1))
    f1 = jax.nn.relu(hlast @ fc1_w.T + fc1_b)
    return f1 @ fc2_w.T + fc2_b


# ----------------------------------------------------------------------------
# Deterministic synthetic parameters (same shapes as the torch module)
# ----------------------------------------------------------------------------
def init_params(key, input_size=CONV_OUT * 20):
    ks = jax.random.split(key, 10)

    def u(k, shape, fan_in):
        bound = 1.0 / float(np.sqrt(fan_in))
        return jax.random.uniform(k, shape, jnp.float32, -bound, bound)

    conv_w = u(ks[0], (CONV_OUT, 1, 3, 3), 9)
    conv_b = u(ks[1], (CONV_OUT,), 9)
    w_ih = u(ks[2], (3 * HIDDEN, input_size), HIDDEN)
    w_hh = u(ks[3], (3 * HIDDEN, HIDDEN), HIDDEN)
    b_ih = u(ks[4], (3 * HIDDEN,), HIDDEN)
    b_hh = u(ks[5], (3 * HIDDEN,), HIDDEN)
    fc1_w = u(ks[6], (FC1_OUT, HIDDEN), HIDDEN)
    fc1_b = u(ks[7], (FC1_OUT,), HIDDEN)
    fc2_w = u(ks[8], (NUM_CLASSES, FC1_OUT), FC1_OUT)
    fc2_b = u(ks[9], (NUM_CLASSES,), FC1_OUT)
    return (conv_w, conv_b, w_ih, w_hh, b_ih, b_hh, fc1_w, fc1_b, fc2_w, fc2_b)


if __name__ == "__main__":
    key = jax.random.PRNGKey(0)
    kx, kp = jax.random.split(key)

    # H = 40 is fixed by the module (GRU input_size = 32*20); keep W small.
    B, H, W = 2, 40, 16
    x = jax.random.normal(kx, (B, 1, H, W), jnp.float32)
    params = init_params(kp)

    logits = jax.jit(cnn_gru_forward)(x, params)
    logits = jax.block_until_ready(logits)

    ref = jax.block_until_ready(forward_ref(x, params))
    # Tolerance 1e-2 accounts for bf16 MXU operands (f32 accumulation) in the
    # conv / GRU matmuls vs. the f32 reference.
    np.testing.assert_allclose(np.asarray(logits), np.asarray(ref), rtol=1e-2, atol=1e-2)
    assert logits.shape == (B, NUM_CLASSES)

    print("KERNEL_OK")
</pallas_src>

<mosaic_0001>
module attributes {stable_mosaic.version = 11 : i64} {
  func.func @fused_kernel(%arg0: memref<128x128xbf16, #tpu.memory_space<vmem>>, %arg1: memref<128x1280xbf16, #tpu.memory_space<vmem>>, %arg2: memref<1x1280xf32, #tpu.memory_space<vmem>>, %arg3: memref<2x384xf32, #tpu.memory_space<vmem>>, %arg4: memref<768x384xbf16, #tpu.memory_space<any>>, %arg5: memref<208x64xf32, #tpu.memory_space<any>>, %arg6: memref<8x7xf32, #tpu.memory_space<vmem>>, %arg7: memref<768x384xbf16, #tpu.memory_space<vmem>>, %arg8: memref<208x64xf32, #tpu.memory_space<vmem>>, %arg9: memref<2x!tpu.dma_semaphore, #tpu.memory_space<semaphore_mem>>) attributes {dimension_semantics = [], scalar_prefetch = 0 : i64, scratch_operands = 3 : i64, tpu.core_type = #tpu.core_type<tc>} {
    %c0_i32 = arith.constant 0 : i32
    %0 = tpu.memref_slice %arg9[%c0_i32] : memref<2x!tpu.dma_semaphore, #tpu.memory_space<semaphore_mem>> -> memref<1x!tpu.dma_semaphore, #tpu.memory_space<semaphore_mem>>
    %1 = tpu.memref_squeeze %0 : memref<1x!tpu.dma_semaphore, #tpu.memory_space<semaphore_mem>> -> memref<!tpu.dma_semaphore, #tpu.memory_space<semaphore_mem>>
    tpu.enqueue_dma source(%arg4 : memref<768x384xbf16, #tpu.memory_space<any>>) target(%arg7 : memref<768x384xbf16, #tpu.memory_space<vmem>>) target_semaphore(%1 : memref<!tpu.dma_semaphore, #tpu.memory_space<semaphore_mem>>)
    %c1_i32 = arith.constant 1 : i32
    %2 = tpu.memref_slice %arg9[%c1_i32] : memref<2x!tpu.dma_semaphore, #tpu.memory_space<semaphore_mem>> -> memref<1x!tpu.dma_semaphore, #tpu.memory_space<semaphore_mem>>
    %3 = tpu.memref_squeeze %2 : memref<1x!tpu.dma_semaphore, #tpu.memory_space<semaphore_mem>> -> memref<!tpu.dma_semaphore, #tpu.memory_space<semaphore_mem>>
    tpu.enqueue_dma source(%arg5 : memref<208x64xf32, #tpu.memory_space<any>>) target(%arg8 : memref<208x64xf32, #tpu.memory_space<vmem>>) target_semaphore(%3 : memref<!tpu.dma_semaphore, #tpu.memory_space<semaphore_mem>>)
    %c0 = arith.constant 0 : index
    %c0_0 = arith.constant 0 : index
    %4 = vector.load %arg0[%c0, %c0_0] : memref<128x128xbf16, #tpu.memory_space<vmem>>, vector<128x128xbf16>
    %c0_1 = arith.constant 0 : index
    %c0_2 = arith.constant 0 : index
    %5 = vector.load %arg1[%c0_1, %c0_2] : memref<128x1280xbf16, #tpu.memory_space<vmem>>, vector<128x1280xbf16>
    %cst = arith.constant dense<0.000000e+00> : vector<128x1280xf32>
    %6 = tpu.matmul %4, %5, %cst {dimension_numbers = #tpu.dot_dimension_numbers<[1], [0], [0], [1], [0, 0, 1, 1], [], []>} : vector<128x128xbf16>, vector<128x1280xbf16>, vector<128x1280xf32> -> vector<128x1280xf32>
    %c0_3 = arith.constant 0 : index
    %c0_4 = arith.constant 0 : index
    %7 = vector.load %arg2[%c0_3, %c0_4] : memref<1x1280xf32, #tpu.memory_space<vmem>>, vector<1x1280xf32>
    %8 = vector.broadcast %7 : vector<1x1280xf32> to vector<128x1280xf32>
    %9 = arith.addf %6, %8 : vector<128x1280xf32>
    %cst_5 = arith.constant 0.000000e+00 : f32
    %10 = vector.broadcast %cst_5 : f32 to vector<128x1280xf32>
    %11 = arith.maximumf %9, %10 : vector<128x1280xf32>
    %12 = vector.extract_strided_slice %11 {offsets = [0, 0], sizes = [64, 1280], strides = [1, 1]} : vector<128x1280xf32> to vector<64x1280xf32>
    %13 = vector.extract_strided_slice %11 {offsets = [64, 0], sizes = [64, 1280], strides = [1, 1]} : vector<128x1280xf32> to vector<64x1280xf32>
    %14 = arith.maximumf %12, %13 : vector<64x1280xf32>
    %15 = vector.extract_strided_slice %14 {offsets = [0, 0], sizes = [64, 640], strides = [1, 1]} : vector<64x1280xf32> to vector<64x640xf32>
    %16 = vector.extract_strided_slice %14 {offsets = [0, 640], sizes = [64, 640], strides = [1, 1]} : vector<64x1280xf32> to vector<64x640xf32>
    %17 = arith.maximumf %15, %16 : vector<64x640xf32>
    %c0_i32_6 = arith.constant 0 : i32
    %18 = tpu.memref_slice %arg9[%c0_i32_6] : memref<2x!tpu.dma_semaphore, #tpu.memory_space<semaphore_mem>> -> memref<1x!tpu.dma_semaphore, #tpu.memory_space<semaphore_mem>>
    %19 = tpu.memref_squeeze %18 : memref<1x!tpu.dma_semaphore, #tpu.memory_space<semaphore_mem>> -> memref<!tpu.dma_semaphore, #tpu.memory_space<semaphore_mem>>
    tpu.wait_dma2 semaphore(%19 : memref<!tpu.dma_semaphore, #tpu.memory_space<semaphore_mem>>) src(%arg4 : memref<768x384xbf16, #tpu.memory_space<any>>) dst(%arg7 : memref<768x384xbf16, #tpu.memory_space<vmem>>)
    %c0_7 = arith.constant 0 : index
    %c0_8 = arith.constant 0 : index
    %20 = vector.load %arg7[%c0_7, %c0_8] : memref<768x384xbf16, #tpu.memory_space<vmem>>, vector<640x384xbf16>
    %c640 = arith.constant 640 : index
    %c0_9 = arith.constant 0 : index
    %21 = vector.load %arg7[%c640, %c0_9] : memref<768x384xbf16, #tpu.memory_space<vmem>>, vector<128x384xbf16>
    %c0_10 = arith.constant 0 : index
    %c0_11 = arith.constant 0 : index
    %22 = vector.load %arg3[%c0_10, %c0_11] : memref<2x384xf32, #tpu.memory_space<vmem>>, vector<1x384xf32>
    %c1 = arith.constant 1 : index
    %c0_12 = arith.constant 0 : index
    %23 = vector.load %arg3[%c1, %c0_12] : memref<2x384xf32, #tpu.memory_space<vmem>>, vector<1x384xf32>
    %24 = arith.truncf %17 : vector<64x640xf32> to vector<64x640xbf16>
    %cst_13 = arith.constant dense<0.000000e+00> : vector<64x384xf32>
    %25 = tpu.matmul %24, %20, %cst_13 {dimension_numbers = #tpu.dot_dimension_numbers<[1], [0], [0], [1], [0, 0, 1, 1], [], []>} : vector<64x640xbf16>, vector<640x384xbf16>, vector<64x384xf32> -> vector<64x384xf32>
    %26 = vector.broadcast %22 : vector<1x384xf32> to vector<64x384xf32>
    %27 = arith.addf %25, %26 : vector<64x384xf32>
    %cst_14 = arith.constant 0.000000e+00 : f32
    %28 = vector.broadcast %cst_14 : f32 to vector<8x128xf32>
    %29 = vector.extract_strided_slice %27 {offsets = [0, 0], sizes = [8, 384], strides = [1, 1]} : vector<64x384xf32> to vector<8x384xf32>
    %30 = arith.truncf %28 : vector<8x128xf32> to vector<8x128xbf16>
    %cst_15 = arith.constant dense<0.000000e+00> : vector<8x384xf32>
    %31 = tpu.matmul %30, %21, %cst_15 {dimension_numbers = #tpu.dot_dimension_numbers<[1], [0], [0], [1], [0, 0, 1, 1], [], []>} : vector<8x128xbf16>, vector<128x384xbf16>, vector<8x384xf32> -> vector<8x384xf32>
    %32 = vector.broadcast %23 : vector<1x384xf32> to vector<8x384xf32>
    %33 = arith.addf %31, %32 : vector<8x384xf32>
    %34 = vector.extract_strided_slice %29 {offsets = [0, 0], sizes = [8, 256], strides = [1, 1]} : vector<8x384xf32> to vector<8x256xf32>
    %35 = vector.extract_strided_slice %33 {offsets = [0, 0], sizes = [8, 256], strides = [1, 1]} : vector<8x384xf32> to vector<8x256xf32>
    %36 = arith.addf %34, %35 : vector<8x256xf32>
    %cst_16 = arith.constant 5.000000e-01 : f32
    %37 = vector.broadcast %cst_16 : f32 to vector<8x256xf32>
    %38 = arith.mulf %37, %36 : vector<8x256xf32>
    %39 = math.tanh %38 : vector<8x256xf32>
    %cst_17 = arith.constant 5.000000e-01 : f32
    %40 = vector.broadcast %cst_17 : f32 to vector<8x256xf32>
    %41 = arith.mulf %40, %39 : vector<8x256xf32>
    %cst_18 = arith.constant 5.000000e-01 : f32
    %42 = vector.broadcast %cst_18 : f32 to vector<8x256xf32>
    %43 = arith.addf %41, %42 : vector<8x256xf32>
    %44 = vector.extract_strided_slice %43 {offsets = [0, 0], sizes = [8, 128], strides = [1, 1]} : vector<8x256xf32> to vector<8x128xf32>
    %45 = vector.extract_strided_slice %43 {offsets = [0, 128], sizes = [8, 128], strides = [1, 1]} : vector<8x256xf32> to vector<8x128xf32>
    %46 = vector.extract_strided_slice %29 {offsets = [0, 256], sizes = [8, 128], strides = [1, 1]} : vector<8x384xf32> to vector<8x128xf32>
    %47 = vector.extract_strided_slice %33 {offsets = [0, 256], sizes = [8, 128], strides = [1, 1]} : vector<8x384xf32> to vector<8x128xf32>
    %48 = arith.mulf %44, %47 : vector<8x128xf32>
    %49 = arith.addf %46, %48 : vector<8x128xf32>
    %50 = math.tanh %49 : vector<8x128xf32>
    %cst_19 = arith.constant 1.000000e+00 : f32
    %51 = vector.broadcast %cst_19 : f32 to vector<8x128xf32>
    %52 = arith.subf %51, %45 : vector<8x128xf32>
    %53 = arith.mulf %52, %50 : vector<8x128xf32>
    %54 = arith.mulf %45, %28 : vector<8x128xf32>
    %55 = arith.addf %53, %54 : vector<8x128xf32>
    %56 = vector.extract_strided_slice %27 {offsets = [8, 0], sizes = [8, 384], strides = [1, 1]} : vector<64x384xf32> to vector<8x384xf32>
    %57 = arith.truncf %55 : vector<8x128xf32> to vector<8x128xbf16>
    %cst_20 = arith.constant dense<0.000000e+00> : vector<8x384xf32>
    %58 = tpu.matmul %57, %21, %cst_20 {dimension_numbers = #tpu.dot_dimension_numbers<[1], [0], [0], [1], [0, 0, 1, 1], [], []>} : vector<8x128xbf16>, vector<128x384xbf16>, vector<8x384xf32> -> vector<8x384xf32>
    %59 = vector.broadcast %23 : vector<1x384xf32> to vector<8x384xf32>
    %60 = arith.addf %58, %59 : vector<8x384xf32>
    %61 = vector.extract_strided_slice %56 {offsets = [0, 0], sizes = [8, 256], strides = [1, 1]} : vector<8x384xf32> to vector<8x256xf32>
    %62 = vector.extract_strided_slice %60 {offsets = [0, 0], sizes = [8, 256], strides = [1, 1]} : vector<8x384xf32> to vector<8x256xf32>
    %63 = arith.addf %61, %62 : vector<8x256xf32>
    %cst_21 = arith.constant 5.000000e-01 : f32
    %64 = vector.broadcast %cst_21 : f32 to vector<8x256xf32>
    %65 = arith.mulf %64, %63 : vector<8x256xf32>
    %66 = math.tanh %65 : vector<8x256xf32>
    %cst_22 = arith.constant 5.000000e-01 : f32
    %67 = vector.broadcast %cst_22 : f32 to vector<8x256xf32>
    %68 = arith.mulf %67, %66 : vector<8x256xf32>
    %cst_23 = arith.constant 5.000000e-01 : f32
    %69 = vector.broadcast %cst_23 : f32 to vector<8x256xf32>
    %70 = arith.addf %68, %69 : vector<8x256xf32>
    %71 = vector.extract_strided_slice %70 {offsets = [0, 0], sizes = [8, 128], strides = [1, 1]} : vector<8x256xf32> to vector<8x128xf32>
    %72 = vector.extract_strided_slice %70 {offsets = [0, 128], sizes = [8, 128], strides = [1, 1]} : vector<8x256xf32> to vector<8x128xf32>
    %73 = vector.extract_strided_slice %56 {offsets = [0, 256], sizes = [8, 128], strides = [1, 1]} : vector<8x384xf32> to vector<8x128xf32>
    %74 = vector.extract_strided_slice %60 {offsets = [0, 256], sizes = [8, 128], strides = [1, 1]} : vector<8x384xf32> to vector<8x128xf32>
    %75 = arith.mulf %71, %74 : vector<8x128xf32>
    %76 = arith.addf %73, %75 : vector<8x128xf32>
    %77 = math.tanh %76 : vector<8x128xf32>
    %cst_24 = arith.constant 1.000000e+00 : f32
    %78 = vector.broadcast %cst_24 : f32 to vector<8x128xf32>
    %79 = arith.subf %78, %72 : vector<8x128xf32>
    %80 = arith.mulf %79, %77 : vector<8x128xf32>
    %81 = arith.mulf %72, %55 : vector<8x128xf32>
    %82 = arith.addf %80, %81 : vector<8x128xf32>
    %83 = vector.extract_strided_slice %27 {offsets = [16, 0], sizes = [8, 384], strides = [1, 1]} : vector<64x384xf32> to vector<8x384xf32>
    %84 = arith.truncf %82 : vector<8x128xf32> to vector<8x128xbf16>
    %cst_25 = arith.constant dense<0.000000e+00> : vector<8x384xf32>
    %85 = tpu.matmul %84, %21, %cst_25 {dimension_numbers = #tpu.dot_dimension_numbers<[1], [0], [0], [1], [0, 0, 1, 1], [], []>} : vector<8x128xbf16>, vector<128x384xbf16>, vector<8x384xf32> -> vector<8x384xf32>
    %86 = vector.broadcast %23 : vector<1x384xf32> to vector<8x384xf32>
    %87 = arith.addf %85, %86 : vector<8x384xf32>
    %88 = vector.extract_strided_slice %83 {offsets = [0, 0], sizes = [8, 256], strides = [1, 1]} : vector<8x384xf32> to vector<8x256xf32>
    %89 = vector.extract_strided_slice %87 {offsets = [0, 0], sizes = [8, 256], strides = [1, 1]} : vector<8x384xf32> to vector<8x256xf32>
    %90 = arith.addf %88, %89 : vector<8x256xf32>
    %cst_26 = arith.constant 5.000000e-01 : f32
    %91 = vector.broadcast %cst_26 : f32 to vector<8x256xf32>
    %92 = arith.mulf %91, %90 : vector<8x256xf32>
    %93 = math.tanh %92 : vector<8x256xf32>
    %cst_27 = arith.constant 5.000000e-01 : f32
    %94 = vector.broadcast %cst_27 : f32 to vector<8x256xf32>
    %95 = arith.mulf %94, %93 : vector<8x256xf32>
    %cst_28 = arith.constant 5.000000e-01 : f32
    %96 = vector.broadcast %cst_28 : f32 to vector<8x256xf32>
    %97 = arith.addf %95, %96 : vector<8x256xf32>
    %98 = vector.extract_strided_slice %97 {offsets = [0, 0], sizes = [8, 128], strides = [1, 1]} : vector<8x256xf32> to vector<8x128xf32>
    %99 = vector.extract_strided_slice %97 {offsets = [0, 128], sizes = [8, 128], strides = [1, 1]} : vector<8x256xf32> to vector<8x128xf32>
    %100 = vector.extract_strided_slice %83 {offsets = [0, 256], sizes = [8, 128], strides = [1, 1]} : vector<8x384xf32> to vector<8x128xf32>
    %101 = vector.extract_strided_slice %87 {offsets = [0, 256], sizes = [8, 128], strides = [1, 1]} : vector<8x384xf32> to vector<8x128xf32>
    %102 = arith.mulf %98, %101 : vector<8x128xf32>
    %103 = arith.addf %100, %102 : vector<8x128xf32>
    %104 = math.tanh %103 : vector<8x128xf32>
    %cst_29 = arith.constant 1.000000e+00 : f32
    %105 = vector.broadcast %cst_29 : f32 to vector<8x128xf32>
    %106 = arith.subf %105, %99 : vector<8x128xf32>
    %107 = arith.mulf %106, %104 : vector<8x128xf32>
    %108 = arith.mulf %99, %82 : vector<8x128xf32>
    %109 = arith.addf %107, %108 : vector<8x128xf32>
    %110 = vector.extract_strided_slice %27 {offsets = [24, 0], sizes = [8, 384], strides = [1, 1]} : vector<64x384xf32> to vector<8x384xf32>
    %111 = arith.truncf %109 : vector<8x128xf32> to vector<8x128xbf16>
    %cst_30 = arith.constant dense<0.000000e+00> : vector<8x384xf32>
    %112 = tpu.matmul %111, %21, %cst_30 {dimension_numbers = #tpu.dot_dimension_numbers<[1], [0], [0], [1], [0, 0, 1, 1], [], []>} : vector<8x128xbf16>, vector<128x384xbf16>, vector<8x384xf32> -> vector<8x384xf32>
    %113 = vector.broadcast %23 : vector<1x384xf32> to vector<8x384xf32>
    %114 = arith.addf %112, %113 : vector<8x384xf32>
    %115 = vector.extract_strided_slice %110 {offsets = [0, 0], sizes = [8, 256], strides = [1, 1]} : vector<8x384xf32> to vector<8x256xf32>
    %116 = vector.extract_strided_slice %114 {offsets = [0, 0], sizes = [8, 256], strides = [1, 1]} : vector<8x384xf32> to vector<8x256xf32>
    %117 = arith.addf %115, %116 : vector<8x256xf32>
    %cst_31 = arith.constant 5.000000e-01 : f32
    %118 = vector.broadcast %cst_31 : f32 to vector<8x256xf32>
    %119 = arith.mulf %118, %117 : vector<8x256xf32>
    %120 = math.tanh %119 : vector<8x256xf32>
    %cst_32 = arith.constant 5.000000e-01 : f32
    %121 = vector.broadcast %cst_32 : f32 to vector<8x256xf32>
    %122 = arith.mulf %121, %120 : vector<8x256xf32>
    %cst_33 = arith.constant 5.000000e-01 : f32
    %123 = vector.broadcast %cst_33 : f32 to vector<8x256xf32>
    %124 = arith.addf %122, %123 : vector<8x256xf32>
    %125 = vector.extract_strided_slice %124 {offsets = [0, 0], sizes = [8, 128], strides = [1, 1]} : vector<8x256xf32> to vector<8x128xf32>
    %126 = vector.extract_strided_slice %124 {offsets = [0, 128], sizes = [8, 128], strides = [1, 1]} : vector<8x256xf32> to vector<8x128xf32>
    %127 = vector.extract_strided_slice %110 {offsets = [0, 256], sizes = [8, 128], strides = [1, 1]} : vector<8x384xf32> to vector<8x128xf32>
    %128 = vector.extract_strided_slice %114 {offsets = [0, 256], sizes = [8, 128], strides = [1, 1]} : vector<8x384xf32> to vector<8x128xf32>
    %129 = arith.mulf %125, %128 : vector<8x128xf32>
    %130 = arith.addf %127, %129 : vector<8x128xf32>
    %131 = math.tanh %130 : vector<8x128xf32>
    %cst_34 = arith.constant 1.000000e+00 : f32
    %132 = vector.broadcast %cst_34 : f32 to vector<8x128xf32>
    %133 = arith.subf %132, %126 : vector<8x128xf32>
    %134 = arith.mulf %133, %131 : vector<8x128xf32>
    %135 = arith.mulf %126, %109 : vector<8x128xf32>
    %136 = arith.addf %134, %135 : vector<8x128xf32>
    %137 = vector.extract_strided_slice %27 {offsets = [32, 0], sizes = [8, 384], strides = [1, 1]} : vector<64x384xf32> to vector<8x384xf32>
    %138 = arith.truncf %136 : vector<8x128xf32> to vector<8x128xbf16>
    %cst_35 = arith.constant dense<0.000000e+00> : vector<8x384xf32>
    %139 = tpu.matmul %138, %21, %cst_35 {dimension_numbers = #tpu.dot_dimension_numbers<[1], [0], [0], [1], [0, 0, 1, 1], [], []>} : vector<8x128xbf16>, vector<128x384xbf16>, vector<8x384xf32> -> vector<8x384xf32>
    %140 = vector.broadcast %23 : vector<1x384xf32> to vector<8x384xf32>
    %141 = arith.addf %139, %140 : vector<8x384xf32>
    %142 = vector.extract_strided_slice %137 {offsets = [0, 0], sizes = [8, 256], strides = [1, 1]} : vector<8x384xf32> to vector<8x256xf32>
    %143 = vector.extract_strided_slice %141 {offsets = [0, 0], sizes = [8, 256], strides = [1, 1]} : vector<8x384xf32> to vector<8x256xf32>
    %144 = arith.addf %142, %143 : vector<8x256xf32>
    %cst_36 = arith.constant 5.000000e-01 : f32
    %145 = vector.broadcast %cst_36 : f32 to vector<8x256xf32>
    %146 = arith.mulf %145, %144 : vector<8x256xf32>
    %147 = math.tanh %146 : vector<8x256xf32>
    %cst_37 = arith.constant 5.000000e-01 : f32
    %148 = vector.broadcast %cst_37 : f32 to vector<8x256xf32>
    %149 = arith.mulf %148, %147 : vector<8x256xf32>
    %cst_38 = arith.constant 5.000000e-01 : f32
    %150 = vector.broadcast %cst_38 : f32 to vector<8x256xf32>
    %151 = arith.addf %149, %150 : vector<8x256xf32>
    %152 = vector.extract_strided_slice %151 {offsets = [0, 0], sizes = [8, 128], strides = [1, 1]} : vector<8x256xf32> to vector<8x128xf32>
    %153 = vector.extract_strided_slice %151 {offsets = [0, 128], sizes = [8, 128], strides = [1, 1]} : vector<8x256xf32> to vector<8x128xf32>
    %154 = vector.extract_strided_slice %137 {offsets = [0, 256], sizes = [8, 128], strides = [1, 1]} : vector<8x384xf32> to vector<8x128xf32>
    %155 = vector.extract_strided_slice %141 {offsets = [0, 256], sizes = [8, 128], strides = [1, 1]} : vector<8x384xf32> to vector<8x128xf32>
    %156 = arith.mulf %152, %155 : vector<8x128xf32>
    %157 = arith.addf %154, %156 : vector<8x128xf32>
    %158 = math.tanh %157 : vector<8x128xf32>
    %cst_39 = arith.constant 1.000000e+00 : f32
    %159 = vector.broadcast %cst_39 : f32 to vector<8x128xf32>
    %160 = arith.subf %159, %153 : vector<8x128xf32>
    %161 = arith.mulf %160, %158 : vector<8x128xf32>
    %162 = arith.mulf %153, %136 : vector<8x128xf32>
    %163 = arith.addf %161, %162 : vector<8x128xf32>
    %164 = vector.extract_strided_slice %27 {offsets = [40, 0], sizes = [8, 384], strides = [1, 1]} : vector<64x384xf32> to vector<8x384xf32>
    %165 = arith.truncf %163 : vector<8x128xf32> to vector<8x128xbf16>
    %cst_40 = arith.constant dense<0.000000e+00> : vector<8x384xf32>
    %166 = tpu.matmul %165, %21, %cst_40 {dimension_numbers = #tpu.dot_dimension_numbers<[1], [0], [0], [1], [0, 0, 1, 1], [], []>} : vector<8x128xbf16>, vector<128x384xbf16>, vector<8x384xf32> -> vector<8x384xf32>
    %167 = vector.broadcast %23 : vector<1x384xf32> to vector<8x384xf32>
    %168 = arith.addf %166, %167 : vector<8x384xf32>
    %169 = vector.extract_strided_slice %164 {offsets = [0, 0], sizes = [8, 256], strides = [1, 1]} : vector<8x384xf32> to vector<8x256xf32>
    %170 = vector.extract_strided_slice %168 {offsets = [0, 0], sizes = [8, 256], strides = [1, 1]} : vector<8x384xf32> to vector<8x256xf32>
    %171 = arith.addf %169, %170 : vector<8x256xf32>
    %cst_41 = arith.constant 5.000000e-01 : f32
    %172 = vector.broadcast %cst_41 : f32 to vector<8x256xf32>
    %173 = arith.mulf %172, %171 : vector<8x256xf32>
    %174 = math.tanh %173 : vector<8x256xf32>
    %cst_42 = arith.constant 5.000000e-01 : f32
    %175 = vector.broadcast %cst_42 : f32 to vector<8x256xf32>
    %176 = arith.mulf %175, %174 : vector<8x256xf32>
    %cst_43 = arith.constant 5.000000e-01 : f32
    %177 = vector.broadcast %cst_43 : f32 to vector<8x256xf32>
    %178 = arith.addf %176, %177 : vector<8x256xf32>
    %179 = vector.extract_strided_slice %178 {offsets = [0, 0], sizes = [8, 128], strides = [1, 1]} : vector<8x256xf32> to vector<8x128xf32>
    %180 = vector.extract_strided_slice %178 {offsets = [0, 128], sizes = [8, 128], strides = [1, 1]} : vector<8x256xf32> to vector<8x128xf32>
    %181 = vector.extract_strided_slice %164 {offsets = [0, 256], sizes = [8, 128], strides = [1, 1]} : vector<8x384xf32> to vector<8x128xf32>
    %182 = vector.extract_strided_slice %168 {offsets = [0, 256], sizes = [8, 128], strides = [1, 1]} : vector<8x384xf32> to vector<8x128xf32>
    %183 = arith.mulf %179, %182 : vector<8x128xf32>
    %184 = arith.addf %181, %183 : vector<8x128xf32>
    %185 = math.tanh %184 : vector<8x128xf32>
    %cst_44 = arith.constant 1.000000e+00 : f32
    %186 = vector.broadcast %cst_44 : f32 to vector<8x128xf32>
    %187 = arith.subf %186, %180 : vector<8x128xf32>
    %188 = arith.mulf %187, %185 : vector<8x128xf32>
    %189 = arith.mulf %180, %163 : vector<8x128xf32>
    %190 = arith.addf %188, %189 : vector<8x128xf32>
    %191 = vector.extract_strided_slice %27 {offsets = [48, 0], sizes = [8, 384], strides = [1, 1]} : vector<64x384xf32> to vector<8x384xf32>
    %192 = arith.truncf %190 : vector<8x128xf32> to vector<8x128xbf16>
    %cst_45 = arith.constant dense<0.000000e+00> : vector<8x384xf32>
    %193 = tpu.matmul %192, %21, %cst_45 {dimension_numbers = #tpu.dot_dimension_numbers<[1], [0], [0], [1], [0, 0, 1, 1], [], []>} : vector<8x128xbf16>, vector<128x384xbf16>, vector<8x384xf32> -> vector<8x384xf32>
    %194 = vector.broadcast %23 : vector<1x384xf32> to vector<8x384xf32>
    %195 = arith.addf %193, %194 : vector<8x384xf32>
    %196 = vector.extract_strided_slice %191 {offsets = [0, 0], sizes = [8, 256], strides = [1, 1]} : vector<8x384xf32> to vector<8x256xf32>
    %197 = vector.extract_strided_slice %195 {offsets = [0, 0], sizes = [8, 256], strides = [1, 1]} : vector<8x384xf32> to vector<8x256xf32>
    %198 = arith.addf %196, %197 : vector<8x256xf32>
    %cst_46 = arith.constant 5.000000e-01 : f32
    %199 = vector.broadcast %cst_46 : f32 to vector<8x256xf32>
    %200 = arith.mulf %199, %198 : vector<8x256xf32>
    %201 = math.tanh %200 : vector<8x256xf32>
    %cst_47 = arith.constant 5.000000e-01 : f32
    %202 = vector.broadcast %cst_47 : f32 to vector<8x256xf32>
    %203 = arith.mulf %202, %201 : vector<8x256xf32>
    %cst_48 = arith.constant 5.000000e-01 : f32
    %204 = vector.broadcast %cst_48 : f32 to vector<8x256xf32>
    %205 = arith.addf %203, %204 : vector<8x256xf32>
    %206 = vector.extract_strided_slice %205 {offsets = [0, 0], sizes = [8, 128], strides = [1, 1]} : vector<8x256xf32> to vector<8x128xf32>
    %207 = vector.extract_strided_slice %205 {offsets = [0, 128], sizes = [8, 128], strides = [1, 1]} : vector<8x256xf32> to vector<8x128xf32>
    %208 = vector.extract_strided_slice %191 {offsets = [0, 256], sizes = [8, 128], strides = [1, 1]} : vector<8x384xf32> to vector<8x128xf32>
    %209 = vector.extract_strided_slice %195 {offsets = [0, 256], sizes = [8, 128], strides = [1, 1]} : vector<8x384xf32> to vector<8x128xf32>
    %210 = arith.mulf %206, %209 : vector<8x128xf32>
    %211 = arith.addf %208, %210 : vector<8x128xf32>
    %212 = math.tanh %211 : vector<8x128xf32>
    %cst_49 = arith.constant 1.000000e+00 : f32
    %213 = vector.broadcast %cst_49 : f32 to vector<8x128xf32>
    %214 = arith.subf %213, %207 : vector<8x128xf32>
    %215 = arith.mulf %214, %212 : vector<8x128xf32>
    %216 = arith.mulf %207, %190 : vector<8x128xf32>
    %217 = arith.addf %215, %216 : vector<8x128xf32>
    %218 = vector.extract_strided_slice %27 {offsets = [56, 0], sizes = [8, 384], strides = [1, 1]} : vector<64x384xf32> to vector<8x384xf32>
    %219 = arith.truncf %217 : vector<8x128xf32> to vector<8x128xbf16>
    %cst_50 = arith.constant dense<0.000000e+00> : vector<8x384xf32>
    %220 = tpu.matmul %219, %21, %cst_50 {dimension_numbers = #tpu.dot_dimension_numbers<[1], [0], [0], [1], [0, 0, 1, 1], [], []>} : vector<8x128xbf16>, vector<128x384xbf16>, vector<8x384xf32> -> vector<8x384xf32>
    %221 = vector.broadcast %23 : vector<1x384xf32> to vector<8x384xf32>
    %222 = arith.addf %220, %221 : vector<8x384xf32>
    %223 = vector.extract_strided_slice %218 {offsets = [0, 0], sizes = [8, 256], strides = [1, 1]} : vector<8x384xf32> to vector<8x256xf32>
    %224 = vector.extract_strided_slice %222 {offsets = [0, 0], sizes = [8, 256], strides = [1, 1]} : vector<8x384xf32> to vector<8x256xf32>
    %225 = arith.addf %223, %224 : vector<8x256xf32>
    %cst_51 = arith.constant 5.000000e-01 : f32
    %226 = vector.broadcast %cst_51 : f32 to vector<8x256xf32>
    %227 = arith.mulf %226, %225 : vector<8x256xf32>
    %228 = math.tanh %227 : vector<8x256xf32>
    %cst_52 = arith.constant 5.000000e-01 : f32
    %229 = vector.broadcast %cst_52 : f32 to vector<8x256xf32>
    %230 = arith.mulf %229, %228 : vector<8x256xf32>
    %cst_53 = arith.constant 5.000000e-01 : f32
    %231 = vector.broadcast %cst_53 : f32 to vector<8x256xf32>
    %232 = arith.addf %230, %231 : vector<8x256xf32>
    %233 = vector.extract_strided_slice %232 {offsets = [0, 0], sizes = [8, 128], strides = [1, 1]} : vector<8x256xf32> to vector<8x128xf32>
    %234 = vector.extract_strided_slice %232 {offsets = [0, 128], sizes = [8, 128], strides = [1, 1]} : vector<8x256xf32> to vector<8x128xf32>
    %235 = vector.extract_strided_slice %218 {offsets = [0, 256], sizes = [8, 128], strides = [1, 1]} : vector<8x384xf32> to vector<8x128xf32>
    %236 = vector.extract_strided_slice %222 {offsets = [0, 256], sizes = [8, 128], strides = [1, 1]} : vector<8x384xf32> to vector<8x128xf32>
    %237 = arith.mulf %233, %236 : vector<8x128xf32>
    %238 = arith.addf %235, %237 : vector<8x128xf32>
    %239 = math.tanh %238 : vector<8x128xf32>
    %cst_54 = arith.constant 1.000000e+00 : f32
    %240 = vector.broadcast %cst_54 : f32 to vector<8x128xf32>
    %241 = arith.subf %240, %234 : vector<8x128xf32>
    %242 = arith.mulf %241, %239 : vector<8x128xf32>
    %243 = arith.mulf %234, %217 : vector<8x128xf32>
    %244 = arith.addf %242, %243 : vector<8x128xf32>
    %c1_i32_55 = arith.constant 1 : i32
    %245 = tpu.memref_slice %arg9[%c1_i32_55] : memref<2x!tpu.dma_semaphore, #tpu.memory_space<semaphore_mem>> -> memref<1x!tpu.dma_semaphore, #tpu.memory_space<semaphore_mem>>
    %246 = tpu.memref_squeeze %245 : memref<1x!tpu.dma_semaphore, #tpu.memory_space<semaphore_mem>> -> memref<!tpu.dma_semaphore, #tpu.memory_space<semaphore_mem>>
    tpu.wait_dma2 semaphore(%246 : memref<!tpu.dma_semaphore, #tpu.memory_space<semaphore_mem>>) src(%arg5 : memref<208x64xf32, #tpu.memory_space<any>>) dst(%arg8 : memref<208x64xf32, #tpu.memory_space<vmem>>)
    %c0_56 = arith.constant 0 : index
    %c0_57 = arith.constant 0 : index
    %247 = vector.load %arg8[%c0_56, %c0_57] : memref<208x64xf32, #tpu.memory_space<vmem>>, vector<128x64xf32>
    %c128 = arith.constant 128 : index
    %c0_58 = arith.constant 0 : index
    %248 = vector.load %arg8[%c128, %c0_58] : memref<208x64xf32, #tpu.memory_space<vmem>>, vector<1x64xf32>
    %c136 = arith.constant 136 : index
    %c0_59 = arith.constant 0 : index
    %249 = vector.load %arg8[%c136, %c0_59] : memref<208x64xf32, #tpu.memory_space<vmem>>, vector<64x64xf32>
    %c200 = arith.constant 200 : index
    %c0_60 = arith.constant 0 : index
    %250 = vector.load %arg8[%c200, %c0_60] : memref<208x64xf32, #tpu.memory_space<vmem>>, vector<1x64xf32>
    %cst_61 = arith.constant dense<0.000000e+00> : vector<8x64xf32>
    %251 = tpu.matmul %244, %247, %cst_61 {dimension_numbers = #tpu.dot_dimension_numbers<[1], [0], [0], [1], [0, 0, 1, 1], [], []>} : vector<8x128xf32>, vector<128x64xf32>, vector<8x64xf32> -> vector<8x64xf32>
    %252 = vector.broadcast %248 : vector<1x64xf32> to vector<8x64xf32>
    %253 = arith.addf %251, %252 : vector<8x64xf32>
    %cst_62 = arith.constant 0.000000e+00 : f32
    %254 = vector.broadcast %cst_62 : f32 to vector<8x64xf32>
    %255 = arith.maximumf %253, %254 : vector<8x64xf32>
    %cst_63 = arith.constant dense<0.000000e+00> : vector<8x64xf32>
    %256 = tpu.matmul %255, %249, %cst_63 {dimension_numbers = #tpu.dot_dimension_numbers<[1], [0], [0], [1], [0, 0, 1, 1], [], []>} : vector<8x64xf32>, vector<64x64xf32>, vector<8x64xf32> -> vector<8x64xf32>
    %257 = vector.broadcast %250 : vector<1x64xf32> to vector<8x64xf32>
    %258 = arith.addf %256, %257 : vector<8x64xf32>
    %259 = vector.extract_strided_slice %258 {offsets = [0, 0], sizes = [8, 7], strides = [1, 1]} : vector<8x64xf32> to vector<8x7xf32>
    %c0_64 = arith.constant 0 : index
    %c0_65 = arith.constant 0 : index
    %260 = vector.load %arg6[%c0_64, %c0_65] : memref<8x7xf32, #tpu.memory_space<vmem>>, vector<8x7xf32>
    tpu.vector_store %arg6[%c0_64, %c0_65], %259 {strides = array<i32>} : memref<8x7xf32, #tpu.memory_space<vmem>>, vector<8x7xf32>,
    return
  }
}

</mosaic_0001>

<bundles_post_ra>
// kernel: tile.9
= control target key start
LH: loop header
LB: loop body
LE: loop exit
PB: predicated region body
PF: predicated region fallthrough
CT: control target
= control target key end

     0   :  { %s143_s10 = smov 64   ;;  %s144_s11 = smov 96   ;;  %vm3_vm0 = vcmask 261120   ;;  %vm16_vm1 = vcmask 1048320   ;;  %vm31_vm2 = vcmask 785920   ;;  %vm46_vm3 = vcmask 523520   ;;  %s210_s0 = inlined_call_operand.vmem [shape: f32[40,32], index: 0, kind: input, shape index: {}]   ;;  %s211_s1 = inlined_call_operand.vmem [shape: f32[1,1280], index: 1, kind: output, shape index: {}]  }
   0x1   :  { %v127_v0 = vld [vmem:[%s210_s0 + $0x2] ss:$4 sm:$0xff]   ;;  %v125_v1 = vld [vmem:[%s210_s0 + $0x3] ss:$4 sm:$0xff]   ;;  %s35_s12 = smov 3  ;;  %s20_s13 = smov 3 }
   0x2   :  { %29 = vrot.lane.b32.xlu1 %v127_v0, %s143_s10  ;;  %14 = vrot.lane.b32.xlu0 %v125_v1, %s144_s11  ;;  %v128_v2 = vld [vmem:[%s210_s0 + $0x22] ss:$4 sm:%s35_s12]   ;;  %s50_s18 = smov 3  ;;  %s7_s21 = smov 3 }
   0x3   :  { %v126_v3 = vld [vmem:[%s210_s0 + $0x23] ss:$4 sm:%s20_s13]   ;;  %v2_v4 = vld [vmem:[%s210_s0] ss:$4 sm:$0xff]   ;;  %v129_v7 = vld [vmem:[%s210_s0 + $0x1] ss:$4 sm:$0xff]  }
   0x4   :  { %4 = vst.msk [vmem:[#allocation0] ss:$8 sm:$0xf] %vm3_vm0, %v2_v4   ;;  %5 = vst.msk [vmem:[#allocation0] ss:$8 sm:$0xf0] %vm3_vm0, %v2_v4  }
   0x5   :  { %v124_v5 = vld [vmem:[%s210_s0 + $0x20] ss:$4 sm:%s7_s21]   ;;  %v130_v6 = vld [vmem:[%s210_s0 + $0x21] ss:$4 sm:%s50_s18]   ;;  %s145_s0 = smov 32  }
   0x6   :  { %37 = vrot.lane.b32.xlu1 %v128_v2, %s143_s10  ;;  %22 = vrot.lane.b32.xlu0 %v126_v3, %s144_s11  ;;  %11 = vst.msk [vmem:[#allocation0 + $0x40] ss:$8 sm:$0x3] %vm3_vm0, %v124_v5  }
   0xa   :  { %52 = vrot.lane.b32.xlu1 %v130_v6, %s145_s0  ;;  %44 = vrot.lane.b32.xlu0 %v129_v7, %s145_s0 }
  0x74   :  { %v30_v8 = vpop.permute.xlu1 %29   ;;  %v15_v9 = vpop.permute.xlu0 %14  }
  0x75   :  { %17 = vst.msk [vmem:[#allocation0] ss:$8 sm:$0xf] %vm16_vm1, %v15_v9   ;;  %18 = vst.msk [vmem:[#allocation0] ss:$8 sm:$0xf0] %vm16_vm1, %v15_v9  }
  0x76   :  { %32 = vst.msk [vmem:[#allocation0] ss:$8 sm:$0xf] %vm31_vm2, %v30_v8   ;;  %33 = vst.msk [vmem:[#allocation0] ss:$8 sm:$0xf0] %vm31_vm2, %v30_v8  }
  0x78   :  { %v38_v10 = vpop.permute.xlu1 %37   ;;  %v23_v11 = vpop.permute.xlu0 %22  }
  0x79   :  { %26 = vst.msk [vmem:[#allocation0 + $0x40] ss:$8 sm:$0x3] %vm16_vm1, %v23_v11  }
  0x7a   :  { %41 = vst.msk [vmem:[#allocation0 + $0x40] ss:$8 sm:$0x3] %vm31_vm2, %v38_v10  }
  0x7c   :  { %v53_v12 = vpop.permute.xlu1 %52   ;;  %v45_v13 = vpop.permute.xlu0 %44  }
  0x7d   :  { %56 = vst.msk [vmem:[#allocation0 + $0x40] ss:$8 sm:$0x3] %vm46_vm3, %v53_v12   ;;  %47 = vst.msk [vmem:[#allocation0] ss:$8 sm:$0xf] %vm46_vm3, %v45_v13  }
  0x7e   :  { %48 = vst.msk [vmem:[#allocation0] ss:$8 sm:$0xf0] %vm46_vm3, %v45_v13  }
  0x84   :  { %v105_v14 = vld [vmem:[#allocation0 + $0x40] sm:$0x1]  ;;  %v111_v15 = vld [vmem:[#allocation0 + $0x48] sm:$0x1]  ;;  %v69_v18 = vld [vmem:[#allocation0 + $0x10] sm:$0x1] }
  0x85   :  { %v60_v16 = vld [vmem:[#allocation0] sm:$0x1]  ;;  %138 = vst [vmem:[%s211_s1 + $0x8] sm:$0x1] %v105_v14  ;;  %139 = vst [vmem:[%s211_s1 + $0x9] sm:$0x1] %v111_v15 }
  0x86   :  { %62 = vst [vmem:[%s211_s1] sm:$0x1] %v60_v16  ;;  %v64_v17 = vld [vmem:[#allocation0 + $0x8] sm:$0x1]  ;;  %v75_v19 = vld [vmem:[#allocation0 + $0x18] sm:$0x1] }
  0x87   :  { %131 = vst [vmem:[%s211_s1 + $0x1] sm:$0x1] %v64_v17  ;;  %132 = vst [vmem:[%s211_s1 + $0x2] sm:$0x1] %v69_v18  ;;  %v81_v20 = vld [vmem:[#allocation0 + $0x20] sm:$0x1] }
  0x88   :  { %133 = vst [vmem:[%s211_s1 + $0x3] sm:$0x1] %v75_v19  ;;  %v87_v21 = vld [vmem:[#allocation0 + $0x28] sm:$0x1]  ;;  %v93_v22 = vld [vmem:[#allocation0 + $0x30] sm:$0x1] }
  0x89   :  { %134 = vst [vmem:[%s211_s1 + $0x4] sm:$0x1] %v81_v20  ;;  %135 = vst [vmem:[%s211_s1 + $0x5] sm:$0x1] %v87_v21  ;;  %v99_v23 = vld [vmem:[#allocation0 + $0x38] sm:$0x1] }
  0x8a   :  { %136 = vst [vmem:[%s211_s1 + $0x6] sm:$0x1] %v93_v22  ;;  %137 = vst [vmem:[%s211_s1 + $0x7] sm:$0x1] %v99_v23 }

// kernel: cnn_gru_forward.1
= control target key start
LH: loop header
LB: loop body
LE: loop exit
PB: predicated region body
PF: predicated region fallthrough
CT: control target
= control target key end

     0   :  { %s7872_s0 = inlined_call_operand.vmem [shape: bf16[128,128], index: 0, kind: input, shape index: {}]   ;;  %s7873_s1 = inlined_call_operand.vmem [shape: bf16[128,1280], index: 1, kind: input, shape index: {}]   ;;  %s7874_s2 = inlined_call_operand.vmem [shape: f32[1,1280], index: 2, kind: input, shape index: {}]   ;;  %s7875_s3 = inlined_call_operand.vmem [shape: f32[2,384], index: 3, kind: input, shape index: {}]   ;;  %s7876_s4 = inlined_call_operand.vmem [shape: bf16[768,384], index: 4, kind: input, shape index: {}]   ;;  %s7877_s5 = inlined_call_operand.vmem [shape: f32[208,64], index: 5, kind: input, shape index: {}]   ;;  %s7878_s6 = inlined_call_operand.vmem [shape: f32[8,7], index: 6, kind: output, shape index: {}]  }
   0x1   :  { %v37_v0 = vld [vmem:[%s7876_s4] sm:$0xf]  ;;  %v39_v1 = vld [vmem:[%s7876_s4 + $0xc] sm:$0xf]  ;;  %v41_v2 = vld [vmem:[%s7876_s4 + $0x4] sm:$0xf] }
   0x2   :  { %38 = vst [vmem:[#allocation2] sm:$0xf] %v37_v0  ;;  %40 = vst [vmem:[#allocation2 + $0x4] sm:$0xf] %v39_v1  ;;  %v43_v3 = vld [vmem:[%s7876_s4 + $0x10] sm:$0xf] }
   0x3   :  { %42 = vst [vmem:[#allocation2 + $0x8] sm:$0xf] %v41_v2  ;;  %v45_v4 = vld [vmem:[%s7876_s4 + $0x8] sm:$0xf]  ;;  %v47_v5 = vld [vmem:[%s7876_s4 + $0x14] sm:$0xff]   ;;  %v59_v10 = vld [vmem:[%s7876_s4 + $0x2c] sm:$0xff]  }
   0x4   :  { %44 = vst [vmem:[#allocation2 + $0xc] sm:$0xf] %v43_v3  ;;  %46 = vst [vmem:[#allocation2 + $0x10] sm:$0xf] %v45_v4  ;;  %v51_v6 = vld [vmem:[%s7876_s4 + $0x24] sm:$0xf] }
   0x5   :  { %48 = vst [vmem:[#allocation2 + $0x14] sm:$0xff] %v47_v5   ;;  %v53_v7 = vld [vmem:[%s7876_s4 + $0x1c] sm:$0xf]  ;;  %v55_v8 = vld [vmem:[%s7876_s4 + $0x28] sm:$0xf]  ;;  %60 = vst [vmem:[#allocation2 + $0x2c] sm:$0xff] %v59_v10  }
   0x6   :  { %52 = vst [vmem:[#allocation2 + $0x1c] sm:$0xf] %v51_v6  ;;  %54 = vst [vmem:[#allocation2 + $0x20] sm:$0xf] %v53_v7  ;;  %v57_v9 = vld [vmem:[%s7876_s4 + $0x20] sm:$0xf] }
   0x7   :  { %56 = vst [vmem:[#allocation2 + $0x24] sm:$0xf] %v55_v8  ;;  %v63_v11 = vld [vmem:[%s7876_s4 + $0x3c] sm:$0xf]  ;;  %58 = vst [vmem:[#allocation2 + $0x28] sm:$0xf] %v57_v9 }
   0x8   :  { %64 = vst [vmem:[#allocation2 + $0x34] sm:$0xf] %v63_v11  ;;  %v65_v12 = vld [vmem:[%s7876_s4 + $0x34] sm:$0xf]  ;;  %v67_v13 = vld [vmem:[%s7876_s4 + $0x40] sm:$0xf] }
   0x9   :  { %v69_v14 = vld [vmem:[%s7876_s4 + $0x38] sm:$0xf]  ;;  %66 = vst [vmem:[#allocation2 + $0x38] sm:$0xf] %v65_v12  ;;  %68 = vst [vmem:[#allocation2 + $0x3c] sm:$0xf] %v67_v13 }
   0xa   :  { %70 = vst [vmem:[#allocation2 + $0x40] sm:$0xf] %v69_v14  ;;  %v71_v15 = vld [vmem:[%s7876_s4 + $0x44] sm:$0xff]   ;;  %v75_v16 = vld [vmem:[%s7876_s4 + $0x54] sm:$0xf]  ;;  %v83_v20 = vld [vmem:[%s7876_s4 + $0x5c] sm:$0xff]  }
   0xb   :  { %v77_v17 = vld [vmem:[%s7876_s4 + $0x4c] sm:$0xf]  ;;  %72 = vst [vmem:[#allocation2 + $0x44] sm:$0xff] %v71_v15   ;;  %76 = vst [vmem:[#allocation2 + $0x4c] sm:$0xf] %v75_v16  ;;  %v95_v25 = vld [vmem:[%s7876_s4 + $0x74] sm:$0xff]  }
   0xc   :  { %78 = vst [vmem:[#allocation2 + $0x50] sm:$0xf] %v77_v17  ;;  %v79_v18 = vld [vmem:[%s7876_s4 + $0x58] sm:$0xf]  ;;  %v81_v19 = vld [vmem:[%s7876_s4 + $0x50] sm:$0xf] }
   0xd   :  { %80 = vst [vmem:[#allocation2 + $0x54] sm:$0xf] %v79_v18  ;;  %82 = vst [vmem:[#allocation2 + $0x58] sm:$0xf] %v81_v19  ;;  %v87_v21 = vld [vmem:[%s7876_s4 + $0x6c] sm:$0xf] }
   0xe   :  { %84 = vst [vmem:[#allocation2 + $0x5c] sm:$0xff] %v83_v20   ;;  %v89_v22 = vld [vmem:[%s7876_s4 + $0x64] sm:$0xf]  ;;  %v91_v23 = vld [vmem:[%s7876_s4 + $0x70] sm:$0xf]  ;;  %96 = vst [vmem:[#allocation2 + $0x74] sm:$0xff] %v95_v25  }
   0xf   :  { %88 = vst [vmem:[#allocation2 + $0x64] sm:$0xf] %v87_v21  ;;  %90 = vst [vmem:[#allocation2 + $0x68] sm:$0xf] %v89_v22  ;;  %v93_v24 = vld [vmem:[%s7876_s4 + $0x68] sm:$0xf] }
  0x10   :  { %92 = vst [vmem:[#allocation2 + $0x6c] sm:$0xf] %v91_v23  ;;  %v99_v26 = vld [vmem:[%s7876_s4 + $0x84] sm:$0xf]  ;;  %94 = vst [vmem:[#allocation2 + $0x70] sm:$0xf] %v93_v24 }
  0x11   :  { %100 = vst [vmem:[#allocation2 + $0x7c] sm:$0xf] %v99_v26  ;;  %v101_v27 = vld [vmem:[%s7876_s4 + $0x7c] sm:$0xf]  ;;  %v103_v28 = vld [vmem:[%s7876_s4 + $0x88] sm:$0xf] }
  0x12   :  { %v105_v29 = vld [vmem:[%s7876_s4 + $0x80] sm:$0xf]  ;;  %102 = vst [vmem:[#allocation2 + $0x80] sm:$0xf] %v101_v27  ;;  %104 = vst [vmem:[#allocation2 + $0x84] sm:$0xf] %v103_v28 }
  0x13   :  { %106 = vst [vmem:[#allocation2 + $0x88] sm:$0xf] %v105_v29  ;;  %v107_v30 = vld [vmem:[%s7876_s4 + $0x8c] sm:$0xff]   ;;  %v111_v31 = vld [vmem:[%s7876_s4 + $0x9c] sm:$0xf]  ;;  %v119_v35 = vld [vmem:[%s7876_s4 + $0xa4] sm:$0xff]  }
  0x14   :  { %v113_v32 = vld [vmem:[%s7876_s4 + $0x94] sm:$0xf]  ;;  %108 = vst [vmem:[#allocation2 + $0x8c] sm:$0xff] %v107_v30   ;;  %112 = vst [vmem:[#allocation2 + $0x94] sm:$0xf] %v111_v31  ;;  %v131_v40 = vld [vmem:[%s7876_s4 + $0xbc] sm:$0xff]  }
  0x15   :  { %114 = vst [vmem:[#allocation2 + $0x98] sm:$0xf] %v113_v32  ;;  %v115_v33 = vld [vmem:[%s7876_s4 + $0xa0] sm:$0xf]  ;;  %v117_v34 = vld [vmem:[%s7876_s4 + $0x98] sm:$0xf] }
  0x16   :  { %116 = vst [vmem:[#allocation2 + $0x9c] sm:$0xf] %v115_v33  ;;  %118 = vst [vmem:[#allocation2 + $0xa0] sm:$0xf] %v117_v34  ;;  %v123_v36 = vld [vmem:[%s7876_s4 + $0xb4] sm:$0xf] }
  0x17   :  { %120 = vst [vmem:[#allocation2 + $0xa4] sm:$0xff] %v119_v35   ;;  %v125_v37 = vld [vmem:[%s7876_s4 + $0xac] sm:$0xf]  ;;  %v127_v38 = vld [vmem:[%s7876_s4 + $0xb8] sm:$0xf]  ;;  %132 = vst [vmem:[#allocation2 + $0xbc] sm:$0xff] %v131_v40  }
  0x18   :  { %124 = vst [vmem:[#allocation2 + $0xac] sm:$0xf] %v123_v36  ;;  %126 = vst [vmem:[#allocation2 + $0xb0] sm:$0xf] %v125_v37  ;;  %v129_v39 = vld [vmem:[%s7876_s4 + $0xb0] sm:$0xf] }
  0x19   :  { %128 = vst [vmem:[#allocation2 + $0xb4] sm:$0xf] %v127_v38  ;;  %v135_v41 = vld [vmem:[%s7876_s4 + $0xcc] sm:$0xf]  ;;  %130 = vst [vmem:[#allocation2 + $0xb8] sm:$0xf] %v129_v39 }
  0x1a   :  { %136 = vst [vmem:[#allocation2 + $0xc4] sm:$0xf] %v135_v41  ;;  %v137_v42 = vld [vmem:[%s7876_s4 + $0xc4] sm:$0xf]  ;;  %v139_v43 = vld [vmem:[%s7876_s4 + $0xd0] sm:$0xf] }
  0x1b   :  { %v141_v44 = vld [vmem:[%s7876_s4 + $0xc8] sm:$0xf]  ;;  %138 = vst [vmem:[#allocation2 + $0xc8] sm:$0xf] %v137_v42  ;;  %140 = vst [vmem:[#allocation2 + $0xcc] sm:$0xf] %v139_v43 }
  0x1c   :  { %142 = vst [vmem:[#allocation2 + $0xd0] sm:$0xf] %v141_v44  ;;  %v143_v45 = vld [vmem:[%s7876_s4 + $0xd4] sm:$0xff]   ;;  %v147_v46 = vld [vmem:[%s7876_s4 + $0xe4] sm:$0xf]  ;;  %v155_v50 = vld [vmem:[%s7876_s4 + $0xec] sm:$0xff]  }
  0x1d   :  { %v149_v47 = vld [vmem:[%s7876_s4 + $0xdc] sm:$0xf]  ;;  %144 = vst [vmem:[#allocation2 + $0xd4] sm:$0xff] %v143_v45   ;;  %148 = vst [vmem:[#allocation2 + $0xdc] sm:$0xf] %v147_v46  ;;  %v167_v55 = vld [vmem:[%s7876_s4 + $0x104] sm:$0xff]  }
  0x1e   :  { %150 = vst [vmem:[#allocation2 + $0xe0] sm:$0xf] %v149_v47  ;;  %v151_v48 = vld [vmem:[%s7876_s4 + $0xe8] sm:$0xf]  ;;  %v153_v49 = vld [vmem:[%s7876_s4 + $0xe0] sm:$0xf] }
  0x1f   :  { %152 = vst [vmem:[#allocation2 + $0xe4] sm:$0xf] %v151_v48  ;;  %154 = vst [vmem:[#allocation2 + $0xe8] sm:$0xf] %v153_v49  ;;  %v159_v51 = vld [vmem:[%s7876_s4 + $0xfc] sm:$0xf] }
  0x20   :  { %156 = vst [vmem:[#allocation2 + $0xec] sm:$0xff] %v155_v50   ;;  %v161_v52 = vld [vmem:[%s7876_s4 + $0xf4] sm:$0xf]  ;;  %v163_v53 = vld [vmem:[%s7876_s4 + $0x100] sm:$0xf]  ;;  %168 = vst [vmem:[#allocation2 + $0x104] sm:$0xff] %v167_v55  }
  0x21   :  { %160 = vst [vmem:[#allocation2 + $0xf4] sm:$0xf] %v159_v51  ;;  %162 = vst [vmem:[#allocation2 + $0xf8] sm:$0xf] %v161_v52  ;;  %v165_v54 = vld [vmem:[%s7876_s4 + $0xf8] sm:$0xf] }
  0x22   :  { %164 = vst [vmem:[#allocation2 + $0xfc] sm:$0xf] %v163_v53  ;;  %v171_v56 = vld [vmem:[%s7876_s4 + $0x114] sm:$0xf]  ;;  %166 = vst [vmem:[#allocation2 + $0x100] sm:$0xf] %v165_v54 }
  0x23   :  { %172 = vst [vmem:[#allocation2 + $0x10c] sm:$0xf] %v171_v56  ;;  %v173_v57 = vld [vmem:[%s7876_s4 + $0x10c] sm:$0xf]  ;;  %v175_v58 = vld [vmem:[%s7876_s4 + $0x118] sm:$0xf] }
  0x24   :  { %v177_v59 = vld [vmem:[%s7876_s4 + $0x110] sm:$0xf]  ;;  %174 = vst [vmem:[#allocation2 + $0x110] sm:$0xf] %v173_v57  ;;  %176 = vst [vmem:[#allocation2 + $0x114] sm:$0xf] %v175_v58 }
  0x25   :  { %178 = vst [vmem:[#allocation2 + $0x118] sm:$0xf] %v177_v59  ;;  %v179_v60 = vld [vmem:[%s7876_s4 + $0x11c] sm:$0xff]   ;;  %v183_v61 = vld [vmem:[%s7876_s4 + $0x12c] sm:$0xf]  ;;  %v191_v1 = vld [vmem:[%s7876_s4 + $0x134] sm:$0xff]  }
  0x26   :  { %v185_v62 = vld [vmem:[%s7876_s4 + $0x124] sm:$0xf]  ;;  %180 = vst [vmem:[#allocation2 + $0x11c] sm:$0xff] %v179_v60   ;;  %184 = vst [vmem:[#allocation2 + $0x124] sm:$0xf] %v183_v61  ;;  %v203_v6 = vld [vmem:[%s7876_s4 + $0x14c] sm:$0xff]  }
  0x27   :  { %186 = vst [vmem:[#allocation2 + $0x128] sm:$0xf] %v185_v62  ;;  %v187_v63 = vld [vmem:[%s7876_s4 + $0x130] sm:$0xf]  ;;  %v189_v0 = vld [vmem:[%s7876_s4 + $0x128] sm:$0xf] }
  0x28   :  { %188 = vst [vmem:[#allocation2 + $0x12c] sm:$0xf] %v187_v63  ;;  %190 = vst [vmem:[#allocation2 + $0x130] sm:$0xf] %v189_v0  ;;  %v195_v2 = vld [vmem:[%s7876_s4 + $0x144] sm:$0xf] }
  0x29   :  { %192 = vst [vmem:[#allocation2 + $0x134] sm:$0xff] %v191_v1   ;;  %v197_v3 = vld [vmem:[%s7876_s4 + $0x13c] sm:$0xf]  ;;  %v199_v4 = vld [vmem:[%s7876_s4 + $0x148] sm:$0xf]  ;;  %204 = vst [vmem:[#allocation2 + $0x14c] sm:$0xff] %v203_v6  }
  0x2a   :  { %196 = vst [vmem:[#allocation2 + $0x13c] sm:$0xf] %v195_v2  ;;  %198 = vst [vmem:[#allocation2 + $0x140] sm:$0xf] %v197_v3  ;;  %v201_v5 = vld [vmem:[%s7876_s4 + $0x140] sm:$0xf] }
  0x2b   :  { %200 = vst [vmem:[#allocation2 + $0x144] sm:$0xf] %v199_v4  ;;  %v207_v7 = vld [vmem:[%s7876_s4 + $0x15c] sm:$0xf]  ;;  %202 = vst [vmem:[#allocation2 + $0x148] sm:$0xf] %v201_v5 }
  0x2c   :  { %208 = vst [vmem:[#allocation2 + $0x154] sm:$0xf] %v207_v7  ;;  %v209_v8 = vld [vmem:[%s7876_s4 + $0x154] sm:$0xf]  ;;  %v211_v9 = vld [vmem:[%s7876_s4 + $0x160] sm:$0xf] }
  0x2d   :  { %v213_v10 = vld [vmem:[%s7876_s4 + $0x158] sm:$0xf]  ;;  %210 = vst [vmem:[#allocation2 + $0x158] sm:$0xf] %v209_v8  ;;  %212 = vst [vmem:[#allocation2 + $0x15c] sm:$0xf] %v211_v9 }
  0x2e   :  { %214 = vst [vmem:[#allocation2 + $0x160] sm:$0xf] %v213_v10  ;;  %v215_v11 = vld [vmem:[%s7876_s4 + $0x164] sm:$0xff]   ;;  %v219_v12 = vld [vmem:[%s7876_s4 + $0x174] sm:$0xf]  ;;  %v227_v16 = vld [vmem:[%s7876_s4 + $0x17c] sm:$0xff]  }
  0x2f   :  { %v221_v13 = vld [vmem:[%s7876_s4 + $0x16c] sm:$0xf]  ;;  %216 = vst [vmem:[#allocation2 + $0x164] sm:$0xff] %v215_v11   ;;  %220 = vst [vmem:[#allocation2 + $0x16c] sm:$0xf] %v219_v12  ;;  %v239_v21 = vld [vmem:[%s7876_s4 + $0x194] sm:$0xff]  }
  0x30   :  { %222 = vst [vmem:[#allocation2 + $0x170] sm:$0xf] %v221_v13  ;;  %v223_v14 = vld [vmem:[%s7876_s4 + $0x178] sm:$0xf]  ;;  %v225_v15 = vld [vmem:[%s7876_s4 + $0x170] sm:$0xf] }
  0x31   :  { %224 = vst [vmem:[#allocation2 + $0x174] sm:$0xf] %v223_v14  ;;  %226 = vst [vmem:[#allocation2 + $0x178] sm:$0xf] %v225_v15  ;;  %v231_v17 = vld [vmem:[%s7876_s4 + $0x18c] sm:$0xf] }
  0x32   :  { %228 = vst [vmem:[#allocation2 + $0x17c] sm:$0xff] %v227_v16   ;;  %v233_v18 = vld [vmem:[%s7876_s4 + $0x184] sm:$0xf]  ;;  %v235_v19 = vld [vmem:[%s7876_s4 + $0x190] sm:$0xf]  ;;  %240 = vst [vmem:[#allocation2 + $0x194] sm:$0xff] %v239_v21  }
  0x33   :  { %232 = vst [vmem:[#allocation2 + $0x184] sm:$0xf] %v231_v17  ;;  %234 = vst [vmem:[#allocation2 + $0x188] sm:$0xf] %v233_v18  ;;  %v237_v20 = vld [vmem:[%s7876_s4 + $0x188] sm:$0xf] }
  0x34   :  { %236 = vst [vmem:[#allocation2 + $0x18c] sm:$0xf] %v235_v19  ;;  %v243_v22 = vld [vmem:[%s7876_s4 + $0x1a4] sm:$0xf]  ;;  %238 = vst [vmem:[#allocation2 + $0x190] sm:$0xf] %v237_v20 }
  0x35   :  { %244 = vst [vmem:[#allocation2 + $0x19c] sm:$0xf] %v243_v22  ;;  %v245_v23 = vld [vmem:[%s7876_s4 + $0x19c] sm:$0xf]  ;;  %v247_v24 = vld [vmem:[%s7876_s4 + $0x1a8] sm:$0xf] }
  0x36   :  { %v249_v25 = vld [vmem:[%s7876_s4 + $0x1a0] sm:$0xf]  ;;  %246 = vst [vmem:[#allocation2 + $0x1a0] sm:$0xf] %v245_v23  ;;  %248 = vst [vmem:[#allocation2 + $0x1a4] sm:$0xf] %v247_v24 }
  0x37   :  { %250 = vst [vmem:[#allocation2 + $0x1a8] sm:$0xf] %v249_v25  ;;  %v251_v26 = vld [vmem:[%s7876_s4 + $0x1ac] sm:$0xff]   ;;  %v255_v27 = vld [vmem:[%s7876_s4 + $0x1bc] sm:$0xf]  ;;  %v263_v31 = vld [vmem:[%s7876_s4 + $0x1c4] sm:$0xff]  }
  0x38   :  { %v257_v28 = vld [vmem:[%s7876_s4 + $0x1b4] sm:$0xf]  ;;  %252 = vst [vmem:[#allocation2 + $0x1ac] sm:$0xff] %v251_v26   ;;  %256 = vst [vmem:[#allocation2 + $0x1b4] sm:$0xf] %v255_v27  ;;  %v275_v36 = vld [vmem:[%s7876_s4 + $0x1dc] sm:$0xff]  }
  0x39   :  { %258 = vst [vmem:[#allocation2 + $0x1b8] sm:$0xf] %v257_v28  ;;  %v259_v29 = vld [vmem:[%s7876_s4 + $0x1c0] sm:$0xf]  ;;  %v261_v30 = vld [vmem:[%s7876_s4 + $0x1b8] sm:$0xf] }
  0x3a   :  { %260 = vst [vmem:[#allocation2 + $0x1bc] sm:$0xf] %v259_v29  ;;  %262 = vst [vmem:[#allocation2 + $0x1c0] sm:$0xf] %v261_v30  ;;  %v267_v32 = vld [vmem:[%s7876_s4 + $0x1d4] sm:$0xf] }
  0x3b   :  { %264 = vst [vmem:[#allocation2 + $0x1c4] sm:$0xff] %v263_v31   ;;  %v269_v33 = vld [vmem:[%s7876_s4 + $0x1cc] sm:$0xf]  ;;  %v271_v34 = vld [vmem:[%s7876_s4 + $0x1d8] sm:$0xf]  ;;  %276 = vst [vmem:[#allocation2 + $0x1dc] sm:$0xff] %v275_v36  }
  0x3c   :  { %268 = vst [vmem:[#allocation2 + $0x1cc] sm:$0xf] %v267_v32  ;;  %270 = vst [vmem:[#allocation2 + $0x1d0] sm:$0xf] %v269_v33  ;;  %v273_v35 = vld [vmem:[%s7876_s4 + $0x1d0] sm:$0xf] }
  0x3d   :  { %272 = vst [vmem:[#allocation2 + $0x1d4] sm:$0xf] %v271_v34  ;;  %v279_v37 = vld [vmem:[%s7876_s4 + $0x1ec] sm:$0xf]  ;;  %274 = vst [vmem:[#allocation2 + $0x1d8] sm:$0xf] %v273_v35 }
  0x3e   :  { %280 = vst [vmem:[#allocation2 + $0x1e4] sm:$0xf] %v279_v37  ;;  %v281_v38 = vld [vmem:[%s7876_s4 + $0x1e4] sm:$0xf]  ;;  %v283_v39 = vld [vmem:[%s7876_s4 + $0x1f0] sm:$0xf] }
  0x3f   :  { %v285_v40 = vld [vmem:[%s7876_s4 + $0x1e8] sm:$0xf]  ;;  %282 = vst [vmem:[#allocation2 + $0x1e8] sm:$0xf] %v281_v38  ;;  %284 = vst [vmem:[#allocation2 + $0x1ec] sm:$0xf] %v283_v39 }
  0x40   :  { %286 = vst [vmem:[#allocation2 + $0x1f0] sm:$0xf] %v285_v40  ;;  %v287_v41 = vld [vmem:[%s7876_s4 + $0x1f4] sm:$0xff]   ;;  %v291_v42 = vld [vmem:[%s7876_s4 + $0x204] sm:$0xf]  ;;  %v299_v46 = vld [vmem:[%s7876_s4 + $0x20c] sm:$0xff]  }
  0x41   :  { %v293_v43 = vld [vmem:[%s7876_s4 + $0x1fc] sm:$0xf]  ;;  %288 = vst [vmem:[#allocation2 + $0x1f4] sm:$0xff] %v287_v41   ;;  %292 = vst [vmem:[#allocation2 + $0x1fc] sm:$0xf] %v291_v42  ;;  %v311_v51 = vld [vmem:[%s7876_s4 + $0x224] sm:$0xff]  }
  0x42   :  { %294 = vst [vmem:[#allocation2 + $0x200] sm:$0xf] %v293_v43  ;;  %v295_v44 = vld [vmem:[%s7876_s4 + $0x208] sm:$0xf]  ;;  %v297_v45 = vld [vmem:[%s7876_s4 + $0x200] sm:$0xf] }
  0x43   :  { %296 = vst [vmem:[#allocation2 + $0x204] sm:$0xf] %v295_v44  ;;  %298 = vst [vmem:[#allocation2 + $0x208] sm:$0xf] %v297_v45  ;;  %v303_v47 = vld [vmem:[%s7876_s4 + $0x21c] sm:$0xf] }
  0x44   :  { %300 = vst [vmem:[#allocation2 + $0x20c] sm:$0xff] %v299_v46   ;;  %v305_v48 = vld [vmem:[%s7876_s4 + $0x214] sm:$0xf]  ;;  %v307_v49 = vld [vmem:[%s7876_s4 + $0x220] sm:$0xf]  ;;  %312 = vst [vmem:[#allocation2 + $0x224] sm:$0xff] %v311_v51  }
  0x45   :  { %304 = vst [vmem:[#allocation2 + $0x214] sm:$0xf] %v303_v47  ;;  %306 = vst [vmem:[#allocation2 + $0x218] sm:$0xf] %v305_v48  ;;  %v309_v50 = vld [vmem:[%s7876_s4 + $0x218] sm:$0xf] }
  0x46   :  { %308 = vst [vmem:[#allocation2 + $0x21c] sm:$0xf] %v307_v49  ;;  %v315_v52 = vld [vmem:[%s7876_s4 + $0x234] sm:$0xf]  ;;  %310 = vst [vmem:[#allocation2 + $0x220] sm:$0xf] %v309_v50 }
  0x47   :  { %316 = vst [vmem:[#allocation2 + $0x22c] sm:$0xf] %v315_v52  ;;  %v317_v53 = vld [vmem:[%s7876_s4 + $0x22c] sm:$0xf]  ;;  %v319_v54 = vld [vmem:[%s7876_s4 + $0x238] sm:$0xf] }
  0x48   :  { %v321_v55 = vld [vmem:[%s7876_s4 + $0x230] sm:$0xf]  ;;  %318 = vst [vmem:[#allocation2 + $0x230] sm:$0xf] %v317_v53  ;;  %320 = vst [vmem:[#allocation2 + $0x234] sm:$0xf] %v319_v54 }
  0x49   :  { %322 = vst [vmem:[#allocation2 + $0x238] sm:$0xf] %v321_v55  ;;  %v323_v56 = vld [vmem:[%s7876_s4 + $0x23c] sm:$0xff]   ;;  %v327_v57 = vld [vmem:[%s7876_s4 + $0x24c] sm:$0xf]  ;;  %v335_v61 = vld [vmem:[%s7876_s4 + $0x254] sm:$0xff]  }
  0x4a   :  { %v329_v58 = vld [vmem:[%s7876_s4 + $0x244] sm:$0xf]  ;;  %324 = vst [vmem:[#allocation2 + $0x23c] sm:$0xff] %v323_v56   ;;  %328 = vst [vmem:[#allocation2 + $0x244] sm:$0xf] %v327_v57  ;;  %v347_v2 = vld [vmem:[%s7876_s4 + $0x26c] sm:$0xff]  }
  0x4b   :  { %330 = vst [vmem:[#allocation2 + $0x248] sm:$0xf] %v329_v58  ;;  %v331_v59 = vld [vmem:[%s7876_s4 + $0x250] sm:$0xf]  ;;  %v333_v60 = vld [vmem:[%s7876_s4 + $0x248] sm:$0xf] }
  0x4c   :  { %332 = vst [vmem:[#allocation2 + $0x24c] sm:$0xf] %v331_v59  ;;  %334 = vst [vmem:[#allocation2 + $0x250] sm:$0xf] %v333_v60  ;;  %v339_v62 = vld [vmem:[%s7876_s4 + $0x264] sm:$0xf] }
  0x4d   :  { %336 = vst [vmem:[#allocation2 + $0x254] sm:$0xff] %v335_v61   ;;  %v341_v63 = vld [vmem:[%s7876_s4 + $0x25c] sm:$0xf]  ;;  %v343_v0 = vld [vmem:[%s7876_s4 + $0x268] sm:$0xf]  ;;  %348 = vst [vmem:[#allocation2 + $0x26c] sm:$0xff] %v347_v2  }
  0x4e   :  { %340 = vst [vmem:[#allocation2 + $0x25c] sm:$0xf] %v339_v62  ;;  %342 = vst [vmem:[#allocation2 + $0x260] sm:$0xf] %v341_v63  ;;  %v345_v1 = vld [vmem:[%s7876_s4 + $0x260] sm:$0xf] }
  0x4f   :  { %344 = vst [vmem:[#allocation2 + $0x264] sm:$0xf] %v343_v0  ;;  %v351_v3 = vld [vmem:[%s7876_s4 + $0x27c] sm:$0xf]  ;;  %346 = vst [vmem:[#allocation2 + $0x268] sm:$0xf] %v345_v1 }
  0x50   :  { %352 = vst [vmem:[#allocation2 + $0x274] sm:$0xf] %v351_v3  ;;  %v353_v4 = vld [vmem:[%s7876_s4 + $0x274] sm:$0xf]  ;;  %v355_v5 = vld [vmem:[%s7876_s4 + $0x280] sm:$0xf] }
  0x51   :  { %v357_v6 = vld [vmem:[%s7876_s4 + $0x278] sm:$0xf]  ;;  %354 = vst [vmem:[#allocation2 + $0x278] sm:$0xf] %v353_v4  ;;  %356 = vst [vmem:[#allocation2 + $0x27c] sm:$0xf] %v355_v5 }
  0x52   :  { %358 = vst [vmem:[#allocation2 + $0x280] sm:$0xf] %v357_v6  ;;  %v359_v7 = vld [vmem:[%s7876_s4 + $0x284] sm:$0xff]   ;;  %v363_v8 = vld [vmem:[%s7876_s4 + $0x294] sm:$0xf]  ;;  %v371_v12 = vld [vmem:[%s7876_s4 + $0x29c] sm:$0xff]  }
  0x53   :  { %v365_v9 = vld [vmem:[%s7876_s4 + $0x28c] sm:$0xf]  ;;  %360 = vst [vmem:[#allocation2 + $0x284] sm:$0xff] %v359_v7   ;;  %364 = vst [vmem:[#allocation2 + $0x28c] sm:$0xf] %v363_v8  ;;  %v383_v17 = vld [vmem:[%s7876_s4 + $0x2b4] sm:$0xff]  }
  0x54   :  { %366 = vst [vmem:[#allocation2 + $0x290] sm:$0xf] %v365_v9  ;;  %v367_v10 = vld [vmem:[%s7876_s4 + $0x298] sm:$0xf]  ;;  %v369_v11 = vld [vmem:[%s7876_s4 + $0x290] sm:$0xf] }
  0x55   :  { %368 = vst [vmem:[#allocation2 + $0x294] sm:$0xf] %v367_v10  ;;  %370 = vst [vmem:[#allocation2 + $0x298] sm:$0xf] %v369_v11  ;;  %v375_v13 = vld [vmem:[%s7876_s4 + $0x2ac] sm:$0xf] }
  0x56   :  { %372 = vst [vmem:[#allocation2 + $0x29c] sm:$0xff] %v371_v12   ;;  %v377_v14 = vld [vmem:[%s7876_s4 + $0x2a4] sm:$0xf]  ;;  %v379_v15 = vld [vmem:[%s7876_s4 + $0x2b0] sm:$0xf]  ;;  %384 = vst [vmem:[#allocation2 + $0x2b4] sm:$0xff] %v383_v17  }
  0x57   :  { %376 = vst [vmem:[#allocation2 + $0x2a4] sm:$0xf] %v375_v13  ;;  %378 = vst [vmem:[#allocation2 + $0x2a8] sm:$0xf] %v377_v14  ;;  %v381_v16 = vld [vmem:[%s7876_s4 + $0x2a8] sm:$0xf] }
  0x58   :  { %380 = vst [vmem:[#allocation2 + $0x2ac] sm:$0xf] %v379_v15  ;;  %v387_v18 = vld [vmem:[%s7876_s4 + $0x2c4] sm:$0xf]  ;;  %382 = vst [vmem:[#allocation2 + $0x2b0] sm:$0xf] %v381_v16 }
  0x59   :  { %388 = vst [vmem:[#allocation2 + $0x2bc] sm:$0xf] %v387_v18  ;;  %v389_v19 = vld [vmem:[%s7876_s4 + $0x2bc] sm:$0xf]  ;;  %v391_v20 = vld [vmem:[%s7876_s4 + $0x2c8] sm:$0xf] }
  0x5a   :  { %v393_v21 = vld [vmem:[%s7876_s4 + $0x2c0] sm:$0xf]  ;;  %390 = vst [vmem:[#allocation2 + $0x2c0] sm:$0xf] %v389_v19  ;;  %392 = vst [vmem:[#allocation2 + $0x2c4] sm:$0xf] %v391_v20 }
  0x5b   :  { %394 = vst [vmem:[#allocation2 + $0x2c8] sm:$0xf] %v393_v21  ;;  %v395_v22 = vld [vmem:[%s7876_s4 + $0x2cc] sm:$0xff]   ;;  %v399_v23 = vld [vmem:[%s7876_s4 + $0x2dc] sm:$0xf]  ;;  %v407_v27 = vld [vmem:[%s7876_s4 + $0x2e4] sm:$0xff]  }
  0x5c   :  { %v401_v24 = vld [vmem:[%s7876_s4 + $0x2d4] sm:$0xf]  ;;  %396 = vst [vmem:[#allocation2 + $0x2cc] sm:$0xff] %v395_v22   ;;  %400 = vst [vmem:[#allocation2 + $0x2d4] sm:$0xf] %v399_v23  ;;  %v419_v32 = vld [vmem:[%s7876_s4 + $0x2fc] sm:$0xff]  }
  0x5d   :  { %402 = vst [vmem:[#allocation2 + $0x2d8] sm:$0xf] %v401_v24  ;;  %v403_v25 = vld [vmem:[%s7876_s4 + $0x2e0] sm:$0xf]  ;;  %v405_v26 = vld [vmem:[%s7876_s4 + $0x2d8] sm:$0xf] }
  0x5e   :  { %404 = vst [vmem:[#allocation2 + $0x2dc] sm:$0xf] %v403_v25  ;;  %406 = vst [vmem:[#allocation2 + $0x2e0] sm:$0xf] %v405_v26  ;;  %v411_v28 = vld [vmem:[%s7876_s4 + $0x2f4] sm:$0xf] }
  0x5f   :  { %408 = vst [vmem:[#allocation2 + $0x2e4] sm:$0xff] %v407_v27   ;;  %v413_v29 = vld [vmem:[%s7876_s4 + $0x2ec] sm:$0xf]  ;;  %v415_v30 = vld [vmem:[%s7876_s4 + $0x2f8] sm:$0xf]  ;;  %420 = vst [vmem:[#allocation2 + $0x2fc] sm:$0xff] %v419_v32  }
  0x60   :  { %412 = vst [vmem:[#allocation2 + $0x2ec] sm:$0xf] %v411_v28  ;;  %414 = vst [vmem:[#allocation2 + $0x2f0] sm:$0xf] %v413_v29  ;;  %v417_v31 = vld [vmem:[%s7876_s4 + $0x2f0] sm:$0xf] }
  0x61   :  { %416 = vst [vmem:[#allocation2 + $0x2f4] sm:$0xf] %v415_v30  ;;  %v423_v33 = vld [vmem:[%s7876_s4 + $0x30c] sm:$0xf]  ;;  %418 = vst [vmem:[#allocation2 + $0x2f8] sm:$0xf] %v417_v31 }
  0x62   :  { %424 = vst [vmem:[#allocation2 + $0x304] sm:$0xf] %v423_v33  ;;  %v425_v34 = vld [vmem:[%s7876_s4 + $0x304] sm:$0xf]  ;;  %v427_v35 = vld [vmem:[%s7876_s4 + $0x310] sm:$0xf] }
  0x63   :  { %v429_v36 = vld [vmem:[%s7876_s4 + $0x308] sm:$0xf]  ;;  %426 = vst [vmem:[#allocation2 + $0x308] sm:$0xf] %v425_v34  ;;  %428 = vst [vmem:[#allocation2 + $0x30c] sm:$0xf] %v427_v35 }
  0x64   :  { %430 = vst [vmem:[#allocation2 + $0x310] sm:$0xf] %v429_v36  ;;  %v431_v37 = vld [vmem:[%s7876_s4 + $0x314] sm:$0xff]   ;;  %v435_v38 = vld [vmem:[%s7876_s4 + $0x324] sm:$0xf]  ;;  %v443_v42 = vld [vmem:[%s7876_s4 + $0x32c] sm:$0xff]  }
  0x65   :  { %v437_v39 = vld [vmem:[%s7876_s4 + $0x31c] sm:$0xf]  ;;  %432 = vst [vmem:[#allocation2 + $0x314] sm:$0xff] %v431_v37   ;;  %436 = vst [vmem:[#allocation2 + $0x31c] sm:$0xf] %v435_v38  ;;  %v455_v47 = vld [vmem:[%s7876_s4 + $0x344] sm:$0xff]  }
  0x66   :  { %438 = vst [vmem:[#allocation2 + $0x320] sm:$0xf] %v437_v39  ;;  %v439_v40 = vld [vmem:[%s7876_s4 + $0x328] sm:$0xf]  ;;  %v441_v41 = vld [vmem:[%s7876_s4 + $0x320] sm:$0xf] }
  0x67   :  { %440 = vst [vmem:[#allocation2 + $0x324] sm:$0xf] %v439_v40  ;;  %442 = vst [vmem:[#allocation2 + $0x328] sm:$0xf] %v441_v41  ;;  %v447_v43 = vld [vmem:[%s7876_s4 + $0x33c] sm:$0xf] }
  0x68   :  { %444 = vst [vmem:[#allocation2 + $0x32c] sm:$0xff] %v443_v42   ;;  %v449_v44 = vld [vmem:[%s7876_s4 + $0x334] sm:$0xf]  ;;  %v451_v45 = vld [vmem:[%s7876_s4 + $0x340] sm:$0xf]  ;;  %456 = vst [vmem:[#allocation2 + $0x344] sm:$0xff] %v455_v47  }
  0x69   :  { %448 = vst [vmem:[#allocation2 + $0x334] sm:$0xf] %v447_v43  ;;  %450 = vst [vmem:[#allocation2 + $0x338] sm:$0xf] %v449_v44  ;;  %v453_v46 = vld [vmem:[%s7876_s4 + $0x338] sm:$0xf] }
  0x6a   :  { %452 = vst [vmem:[#allocation2 + $0x33c] sm:$0xf] %v451_v45  ;;  %v459_v48 = vld [vmem:[%s7876_s4 + $0x354] sm:$0xf]  ;;  %454 = vst [vmem:[#allocation2 + $0x340] sm:$0xf] %v453_v46 }
  0x6b   :  { %460 = vst [vmem:[#allocation2 + $0x34c] sm:$0xf] %v459_v48  ;;  %v461_v49 = vld [vmem:[%s7876_s4 + $0x34c] sm:$0xf]  ;;  %v463_v50 = vld [vmem:[%s7876_s4 + $0x358] sm:$0xf] }
  0x6c   :  { %v465_v51 = vld [vmem:[%s7876_s4 + $0x350] sm:$0xf]  ;;  %462 = vst [vmem:[#allocation2 + $0x350] sm:$0xf] %v461_v49  ;;  %464 = vst [vmem:[#allocation2 + $0x354] sm:$0xf] %v463_v50 }
  0x6d   :  { %466 = vst [vmem:[#allocation2 + $0x358] sm:$0xf] %v465_v51  ;;  %v467_v52 = vld [vmem:[%s7876_s4 + $0x35c] sm:$0xff]   ;;  %v471_v53 = vld [vmem:[%s7876_s4 + $0x36c] sm:$0xf]  ;;  %v479_v57 = vld [vmem:[%s7876_s4 + $0x374] sm:$0xff]  }
  0x6e   :  { %v473_v54 = vld [vmem:[%s7876_s4 + $0x364] sm:$0xf]  ;;  %468 = vst [vmem:[#allocation2 + $0x35c] sm:$0xff] %v467_v52   ;;  %472 = vst [vmem:[#allocation2 + $0x364] sm:$0xf] %v471_v53  ;;  %v491_v62 = vld [vmem:[%s7876_s4 + $0x38c] sm:$0xff]  }
  0x6f   :  { %474 = vst [vmem:[#allocation2 + $0x368] sm:$0xf] %v473_v54  ;;  %v475_v55 = vld [vmem:[%s7876_s4 + $0x370] sm:$0xf]  ;;  %v477_v56 = vld [vmem:[%s7876_s4 + $0x368] sm:$0xf] }
  0x70   :  { %476 = vst [vmem:[#allocation2 + $0x36c] sm:$0xf] %v475_v55  ;;  %478 = vst [vmem:[#allocation2 + $0x370] sm:$0xf] %v477_v56  ;;  %v483_v58 = vld [vmem:[%s7876_s4 + $0x384] sm:$0xf] }
  0x71   :  { %480 = vst [vmem:[#allocation2 + $0x374] sm:$0xff] %v479_v57   ;;  %v485_v59 = vld [vmem:[%s7876_s4 + $0x37c] sm:$0xf]  ;;  %v487_v60 = vld [vmem:[%s7876_s4 + $0x388] sm:$0xf]  ;;  %492 = vst [vmem:[#allocation2 + $0x38c] sm:$0xff] %v491_v62  }
  0x72   :  { %484 = vst [vmem:[#allocation2 + $0x37c] sm:$0xf] %v483_v58  ;;  %486 = vst [vmem:[#allocation2 + $0x380] sm:$0xf] %v485_v59  ;;  %v489_v61 = vld [vmem:[%s7876_s4 + $0x380] sm:$0xf] }
  0x73   :  { %488 = vst [vmem:[#allocation2 + $0x384] sm:$0xf] %v487_v60  ;;  %v495_v63 = vld [vmem:[%s7876_s4 + $0x39c] sm:$0xf]  ;;  %490 = vst [vmem:[#allocation2 + $0x388] sm:$0xf] %v489_v61 }
  0x74   :  { %496 = vst [vmem:[#allocation2 + $0x394] sm:$0xf] %v495_v63  ;;  %v497_v0 = vld [vmem:[%s7876_s4 + $0x394] sm:$0xf]  ;;  %v499_v1 = vld [vmem:[%s7876_s4 + $0x3a0] sm:$0xf] }
  0x75   :  { %v501_v2 = vld [vmem:[%s7876_s4 + $0x398] sm:$0xf]  ;;  %498 = vst [vmem:[#allocation2 + $0x398] sm:$0xf] %v497_v0  ;;  %500 = vst [vmem:[#allocation2 + $0x39c] sm:$0xf] %v499_v1 }
  0x76   :  { %502 = vst [vmem:[#allocation2 + $0x3a0] sm:$0xf] %v501_v2  ;;  %v503_v3 = vld [vmem:[%s7876_s4 + $0x3a4] sm:$0xff]   ;;  %v507_v4 = vld [vmem:[%s7876_s4 + $0x3b4] sm:$0xf]  ;;  %v515_v8 = vld [vmem:[%s7876_s4 + $0x3bc] sm:$0xff]  }
  0x77   :  { %v509_v5 = vld [vmem:[%s7876_s4 + $0x3ac] sm:$0xf]  ;;  %504 = vst [vmem:[#allocation2 + $0x3a4] sm:$0xff] %v503_v3   ;;  %508 = vst [vmem:[#allocation2 + $0x3ac] sm:$0xf] %v507_v4  ;;  %v527_v13 = vld [vmem:[%s7876_s4 + $0x3d4] sm:$0xff]  }
  0x78   :  { %510 = vst [vmem:[#allocation2 + $0x3b0] sm:$0xf] %v509_v5  ;;  %v511_v6 = vld [vmem:[%s7876_s4 + $0x3b8] sm:$0xf]  ;;  %v513_v7 = vld [vmem:[%s7876_s4 + $0x3b0] sm:$0xf] }
  0x79   :  { %512 = vst [vmem:[#allocation2 + $0x3b4] sm:$0xf] %v511_v6  ;;  %514 = vst [vmem:[#allocation2 + $0x3b8] sm:$0xf] %v513_v7  ;;  %v519_v9 = vld [vmem:[%s7876_s4 + $0x3cc] sm:$0xf] }
  0x7a   :  { %516 = vst [vmem:[#allocation2 + $0x3bc] sm:$0xff] %v515_v8   ;;  %v521_v10 = vld [vmem:[%s7876_s4 + $0x3c4] sm:$0xf]  ;;  %v523_v11 = vld [vmem:[%s7876_s4 + $0x3d0] sm:$0xf]  ;;  %528 = vst [vmem:[#allocation2 + $0x3d4] sm:$0xff] %v527_v13  }
  0x7b   :  { %520 = vst [vmem:[#allocation2 + $0x3c4] sm:$0xf] %v519_v9  ;;  %522 = vst [vmem:[#allocation2 + $0x3c8] sm:$0xf] %v521_v10  ;;  %v525_v12 = vld [vmem:[%s7876_s4 + $0x3c8] sm:$0xf] }
  0x7c   :  { %524 = vst [vmem:[#allocation2 + $0x3cc] sm:$0xf] %v523_v11  ;;  %v531_v14 = vld [vmem:[%s7876_s4 + $0x3e4] sm:$0xf]  ;;  %526 = vst [vmem:[#allocation2 + $0x3d0] sm:$0xf] %v525_v12 }
  0x7d   :  { %532 = vst [vmem:[#allocation2 + $0x3dc] sm:$0xf] %v531_v14  ;;  %v533_v15 = vld [vmem:[%s7876_s4 + $0x3dc] sm:$0xf]  ;;  %v535_v16 = vld [vmem:[%s7876_s4 + $0x3e8] sm:$0xf] }
  0x7e   :  { %v537_v17 = vld [vmem:[%s7876_s4 + $0x3e0] sm:$0xf]  ;;  %534 = vst [vmem:[#allocation2 + $0x3e0] sm:$0xf] %v533_v15  ;;  %536 = vst [vmem:[#allocation2 + $0x3e4] sm:$0xf] %v535_v16 }
  0x7f   :  { %538 = vst [vmem:[#allocation2 + $0x3e8] sm:$0xf] %v537_v17  ;;  %v539_v18 = vld [vmem:[%s7876_s4 + $0x3ec] sm:$0xff]   ;;  %v543_v19 = vld [vmem:[%s7876_s4 + $0x3fc] sm:$0xf]  ;;  %v551_v23 = vld [vmem:[%s7876_s4 + $0x404] sm:$0xff]  }
  0x80   :  { %v545_v20 = vld [vmem:[%s7876_s4 + $0x3f4] sm:$0xf]  ;;  %540 = vst [vmem:[#allocation2 + $0x3ec] sm:$0xff] %v539_v18   ;;  %544 = vst [vmem:[#allocation2 + $0x3f4] sm:$0xf] %v543_v19  ;;  %v563_v28 = vld [vmem:[%s7876_s4 + $0x41c] sm:$0xff]  }
  0x81   :  { %546 = vst [vmem:[#allocation2 + $0x3f8] sm:$0xf] %v545_v20  ;;  %v547_v21 = vld [vmem:[%s7876_s4 + $0x400] sm:$0xf]  ;;  %v549_v22 = vld [vmem:[%s7876_s4 + $0x3f8] sm:$0xf] }
  0x82   :  { %548 = vst [vmem:[#allocation2 + $0x3fc] sm:$0xf] %v547_v21  ;;  %550 = vst [vmem:[#allocation2 + $0x400] sm:$0xf] %v549_v22  ;;  %v555_v24 = vld [vmem:[%s7876_s4 + $0x414] sm:$0xf] }
  0x83   :  { %552 = vst [vmem:[#allocation2 + $0x404] sm:$0xff] %v551_v23   ;;  %v557_v25 = vld [vmem:[%s7876_s4 + $0x40c] sm:$0xf]  ;;  %v559_v26 = vld [vmem:[%s7876_s4 + $0x418] sm:$0xf]  ;;  %564 = vst [vmem:[#allocation2 + $0x41c] sm:$0xff] %v563_v28  }
  0x84   :  { %556 = vst [vmem:[#allocation2 + $0x40c] sm:$0xf] %v555_v24  ;;  %558 = vst [vmem:[#allocation2 + $0x410] sm:$0xf] %v557_v25  ;;  %v561_v27 = vld [vmem:[%s7876_s4 + $0x410] sm:$0xf] }
  0x85   :  { %560 = vst [vmem:[#allocation2 + $0x414] sm:$0xf] %v559_v26  ;;  %v567_v29 = vld [vmem:[%s7876_s4 + $0x42c] sm:$0xf]  ;;  %562 = vst [vmem:[#allocation2 + $0x418] sm:$0xf] %v561_v27 }
  0x86   :  { %568 = vst [vmem:[#allocation2 + $0x424] sm:$0xf] %v567_v29  ;;  %v569_v30 = vld [vmem:[%s7876_s4 + $0x424] sm:$0xf]  ;;  %v571_v31 = vld [vmem:[%s7876_s4 + $0x430] sm:$0xf] }
  0x87   :  { %v573_v32 = vld [vmem:[%s7876_s4 + $0x428] sm:$0xf]  ;;  %570 = vst [vmem:[#allocation2 + $0x428] sm:$0xf] %v569_v30  ;;  %572 = vst [vmem:[#allocation2 + $0x42c] sm:$0xf] %v571_v31 }
  0x88   :  { %574 = vst [vmem:[#allocation2 + $0x430] sm:$0xf] %v573_v32  ;;  %v575_v33 = vld [vmem:[%s7876_s4 + $0x434] sm:$0xff]   ;;  %v579_v34 = vld [vmem:[%s7876_s4 + $0x444] sm:$0xf]  ;;  %v587_v38 = vld [vmem:[%s7876_s4 + $0x44c] sm:$0xff]  }
  0x89   :  { %v581_v35 = vld [vmem:[%s7876_s4 + $0x43c] sm:$0xf]  ;;  %576 = vst [vmem:[#allocation2 + $0x434] sm:$0xff] %v575_v33   ;;  %580 = vst [vmem:[#allocation2 + $0x43c] sm:$0xf] %v579_v34  ;;  %v599_v43 = vld [vmem:[%s7876_s4 + $0x464] sm:$0xff]  }
  0x8a   :  { %582 = vst [vmem:[#allocation2 + $0x440] sm:$0xf] %v581_v35  ;;  %v583_v36 = vld [vmem:[%s7876_s4 + $0x448] sm:$0xf]  ;;  %v585_v37 = vld [vmem:[%s7876_s4 + $0x440] sm:$0xf] }
  0x8b   :  { %584 = vst [vmem:[#allocation2 + $0x444] sm:$0xf] %v583_v36  ;;  %586 = vst [vmem:[#allocation2 + $0x448] sm:$0xf] %v585_v37  ;;  %v591_v39 = vld [vmem:[%s7876_s4 + $0x45c] sm:$0xf] }
  0x8c   :  { %588 = vst [vmem:[#allocation2 + $0x44c] sm:$0xff] %v587_v38   ;;  %v593_v40 = vld [vmem:[%s7876_s4 + $0x454] sm:$0xf]  ;;  %v595_v41 = vld [vmem:[%s7876_s4 + $0x460] sm:$0xf]  ;;  %600 = vst [vmem:[#allocation2 + $0x464] sm:$0xff] %v599_v43  }
  0x8d   :  { %592 = vst [vmem:[#allocation2 + $0x454] sm:$0xf] %v591_v39  ;;  %594 = vst [vmem:[#allocation2 + $0x458] sm:$0xf] %v593_v40  ;;  %v597_v42 = vld [vmem:[%s7876_s4 + $0x458] sm:$0xf] }
  0x8e   :  { %596 = vst [vmem:[#allocation2 + $0x45c] sm:$0xf] %v595_v41  ;;  %v603_v44 = vld [vmem:[%s7876_s4 + $0x474] sm:$0xf]  ;;  %598 = vst [vmem:[#allocation2 + $0x460] sm:$0xf] %v597_v42 }
  0x8f   :  { %604 = vst [vmem:[#allocation2 + $0x46c] sm:$0xf] %v603_v44  ;;  %v605_v45 = vld [vmem:[%s7876_s4 + $0x46c] sm:$0xf]  ;;  %v607_v46 = vld [vmem:[%s7876_s4 + $0x478] sm:$0xf] }
  0x90   :  { %v609_v47 = vld [vmem:[%s7876_s4 + $0x470] sm:$0xf]  ;;  %606 = vst [vmem:[#allocation2 + $0x470] sm:$0xf] %v605_v45  ;;  %608 = vst [vmem:[#allocation2 + $0x474] sm:$0xf] %v607_v46 }
  0x91   :  { %610 = vst [vmem:[#allocation2 + $0x478] sm:$0xf] %v609_v47  ;;  %v611_v48 = vld [vmem:[%s7876_s4 + $0x47c] sm:$0xf] }
  0x92   :  { %612 = vst [vmem:[#allocation2 + $0x47c] sm:$0xf] %v611_v48 }
  0x93   :  { %1219 = vsyncadd [#allocation4], 18432  ;;  %v1253_v49 = vld [vmem:[%s7877_s5] sm:$0xff]  ;;  %v1255_v50 = vld [vmem:[%s7877_s5 + $0x8] sm:$0xff] }
  0x94   :  { %1254 = vst [vmem:[#allocation3] sm:$0xff] %v1253_v49  ;;  %1256 = vst [vmem:[#allocation3 + $0x8] sm:$0xff] %v1255_v50  ;;  %v1257_v51 = vld [vmem:[%s7877_s5 + $0x10] sm:$0xff]  ;;  %v1259_v52 = vld [vmem:[%s7877_s5 + $0x18] sm:$0xff] }
  0x95   :  { %v1261_v53 = vld [vmem:[%s7877_s5 + $0x20] sm:$0xff]  ;;  %1258 = vst [vmem:[#allocation3 + $0x10] sm:$0xff] %v1257_v51  ;;  %1260 = vst [vmem:[#allocation3 + $0x18] sm:$0xff] %v1259_v52  ;;  %v1263_v54 = vld [vmem:[%s7877_s5 + $0x28] sm:$0xff] }
  0x96   :  { %1262 = vst [vmem:[#allocation3 + $0x20] sm:$0xff] %v1261_v53  ;;  %v1265_v55 = vld [vmem:[%s7877_s5 + $0x30] sm:$0xff]  ;;  %v1267_v56 = vld [vmem:[%s7877_s5 + $0x38] sm:$0xff]  ;;  %1264 = vst [vmem:[#allocation3 + $0x28] sm:$0xff] %v1263_v54 }
  0x97   :  { %1266 = vst [vmem:[#allocation3 + $0x30] sm:$0xff] %v1265_v55  ;;  %1268 = vst [vmem:[#allocation3 + $0x38] sm:$0xff] %v1267_v56  ;;  %v1269_v57 = vld [vmem:[%s7877_s5 + $0x40] sm:$0xff]  ;;  %v1271_v58 = vld [vmem:[%s7877_s5 + $0x48] sm:$0xff] }
  0x98   :  { %v1273_v59 = vld [vmem:[%s7877_s5 + $0x50] sm:$0xff]  ;;  %1270 = vst [vmem:[#allocation3 + $0x40] sm:$0xff] %v1269_v57  ;;  %1272 = vst [vmem:[#allocation3 + $0x48] sm:$0xff] %v1271_v58  ;;  %v1275_v60 = vld [vmem:[%s7877_s5 + $0x58] sm:$0xff] }
  0x99   :  { %1274 = vst [vmem:[#allocation3 + $0x50] sm:$0xff] %v1273_v59  ;;  %v1277_v61 = vld [vmem:[%s7877_s5 + $0x60] sm:$0xff]  ;;  %v1279_v62 = vld [vmem:[%s7877_s5 + $0x68] sm:$0xff]  ;;  %1276 = vst [vmem:[#allocation3 + $0x58] sm:$0xff] %v1275_v60 }
  0x9a   :  { %1278 = vst [vmem:[#allocation3 + $0x60] sm:$0xff] %v1277_v61  ;;  %1280 = vst [vmem:[#allocation3 + $0x68] sm:$0xff] %v1279_v62  ;;  %v1281_v63 = vld [vmem:[%s7877_s5 + $0x70] sm:$0xff]  ;;  %v1283_v0 = vld [vmem:[%s7877_s5 + $0x78] sm:$0xff] }
  0x9b   :  { %v1285_v1 = vld [vmem:[%s7877_s5 + $0x80] sm:$0xff]  ;;  %1282 = vst [vmem:[#allocation3 + $0x70] sm:$0xff] %v1281_v63  ;;  %1284 = vst [vmem:[#allocation3 + $0x78] sm:$0xff] %v1283_v0  ;;  %v1287_v2 = vld [vmem:[%s7877_s5 + $0x88] sm:$0xff] }
  0x9c   :  { %1286 = vst [vmem:[#allocation3 + $0x80] sm:$0xff] %v1285_v1  ;;  %v1289_v3 = vld [vmem:[%s7877_s5 + $0x90] sm:$0xff]  ;;  %v1291_v4 = vld [vmem:[%s7877_s5 + $0x98] sm:$0xff]  ;;  %1288 = vst [vmem:[#allocation3 + $0x88] sm:$0xff] %v1287_v2 }
  0x9d   :  { %1290 = vst [vmem:[#allocation3 + $0x90] sm:$0xff] %v1289_v3  ;;  %1292 = vst [vmem:[#allocation3 + $0x98] sm:$0xff] %v1291_v4  ;;  %v1293_v5 = vld [vmem:[%s7877_s5 + $0xa0] sm:$0xff]  ;;  %v1295_v6 = vld [vmem:[%s7877_s5 + $0xa8] sm:$0xff] }
  0x9e   :  { %v1297_v7 = vld [vmem:[%s7877_s5 + $0xb0] sm:$0xff]  ;;  %1294 = vst [vmem:[#allocation3 + $0xa0] sm:$0xff] %v1293_v5  ;;  %1296 = vst [vmem:[#allocation3 + $0xa8] sm:$0xff] %v1295_v6  ;;  %v1299_v8 = vld [vmem:[%s7877_s5 + $0xb8] sm:$0xff] }
  0x9f   :  { %1298 = vst [vmem:[#allocation3 + $0xb0] sm:$0xff] %v1297_v7  ;;  %v1301_v9 = vld [vmem:[%s7877_s5 + $0xc0] sm:$0xff]  ;;  %v1303_v10 = vld [vmem:[%s7877_s5 + $0xc8] sm:$0xff]  ;;  %1300 = vst [vmem:[#allocation3 + $0xb8] sm:$0xff] %v1299_v8 }
  0xa0   :  { %1302 = vst [vmem:[#allocation3 + $0xc0] sm:$0xff] %v1301_v9  ;;  %1304 = vst [vmem:[#allocation3 + $0xc8] sm:$0xff] %v1303_v10 }
  0xa1   :  { %1312 = vsyncadd [#allocation4 + $0x1], 3328  ;;  %v4997_v11 = vld [vmem:[%s7873_s1 + $0x4] ss:$40 sps:$4 sm:$0xff]   ;;  %v7879_v12 = vmov 0   ;;  %v6202_v60 = vld [vmem:[%s7872_s0 + $0x10] sm:$0xff]  }
  0xa2   :  { %1943 = vmatprep.mubr.bf16.mxu0 %v7879_v12  ;;  %2056 = vmatprep.mubr.bf16.mxu1 %v7879_v12  ;;  %v4999_v13 = vld [vmem:[%s7873_s1 + $0xc] ss:$40 sps:$4 sm:$0xff]   ;;  %v5001_v14 = vld [vmem:[%s7873_s1] ss:$40 sps:$4 sm:$0xff]   ;;  %v5005_v17 = vld [vmem:[%s7873_s1 + $0x5c] ss:$40 sps:$4 sm:$0xff]  }
  0xa3   :  { %v5002_v15 = vld [vmem:[%s7873_s1 + $0x8] ss:$40 sps:$4 sm:$0xff]   ;;  %1911 = vmatprep.subr.bf16.mxu0 %v4997_v11  ;;  %v5003_v16 = vld [vmem:[%s7873_s1 + $0x54] ss:$40 sps:$4 sm:$0xff]   ;;  %2024 = vmatprep.subr.bf16.mxu1 %v4999_v13  ;;  %v5008_v19 = vld [vmem:[%s7873_s1 + $0x58] ss:$40 sps:$4 sm:$0xff]  }
  0xa4   :  { %1912 = vmatpush1.bf16.msra.mxu0 %v5001_v14  ;;  %2025 = vmatpush1.bf16.msra.mxu1 %v5002_v15  ;;  %v5007_v18 = vld [vmem:[%s7873_s1 + $0x50] ss:$40 sps:$4 sm:$0xff]   ;;  %v5009_v20 = vld [vmem:[%s7873_s1 + $0xa4] ss:$40 sps:$4 sm:$0xff]   ;;  %v5013_v22 = vld [vmem:[%s7873_s1 + $0xa0] ss:$40 sps:$4 sm:$0xff]  }
  0xa5   :  { %1913 = vmatprep.subr.bf16.mxu0 %v5003_v16  ;;  %2026 = vmatprep.subr.bf16.mxu1 %v5005_v17  ;;  %v5011_v21 = vld [vmem:[%s7873_s1 + $0xac] ss:$40 sps:$4 sm:$0xff]   ;;  %v5014_v23 = vld [vmem:[%s7873_s1 + $0xa8] ss:$40 sps:$4 sm:$0xff]   ;;  %v5017_v25 = vld [vmem:[%s7873_s1 + $0xfc] ss:$40 sps:$4 sm:$0xff]  }
  0xa6   :  { %v5015_v24 = vld [vmem:[%s7873_s1 + $0xf4] ss:$40 sps:$4 sm:$0xff]   ;;  %v5019_v26 = vld [vmem:[%s7873_s1 + $0xf0] ss:$40 sps:$4 sm:$0xff]   ;;  %v5021_v28 = vld [vmem:[%s7873_s1 + $0x144] ss:$40 sps:$4 sm:$0xff]  }
  0xa7   :  { %v5020_v27 = vld [vmem:[%s7873_s1 + $0xf8] ss:$40 sps:$4 sm:$0xff]   ;;  %v5023_v29 = vld [vmem:[%s7873_s1 + $0x14c] ss:$40 sps:$4 sm:$0xff]   ;;  %v5026_v31 = vld [vmem:[%s7873_s1 + $0x148] ss:$40 sps:$4 sm:$0xff]  }
  0xa8   :  { %1914 = vmatpush1.bf16.msra.mxu0 %v5007_v18  ;;  %2027 = vmatpush1.bf16.msra.mxu1 %v5008_v19  ;;  %v5025_v30 = vld [vmem:[%s7873_s1 + $0x140] ss:$40 sps:$4 sm:$0xff]   ;;  %v5027_v32 = vld [vmem:[%s7873_s1 + $0x194] ss:$40 sps:$4 sm:$0xff]   ;;  %v5031_v34 = vld [vmem:[%s7873_s1 + $0x190] ss:$40 sps:$4 sm:$0xff]  }
  0xa9   :  { %1915 = vmatprep.subr.bf16.mxu0 %v5009_v20  ;;  %2028 = vmatprep.subr.bf16.mxu1 %v5011_v21  ;;  %v5029_v33 = vld [vmem:[%s7873_s1 + $0x19c] ss:$40 sps:$4 sm:$0xff]   ;;  %v5032_v35 = vld [vmem:[%s7873_s1 + $0x198] ss:$40 sps:$4 sm:$0xff]   ;;  %v5035_v37 = vld [vmem:[%s7873_s1 + $0x1ec] ss:$40 sps:$4 sm:$0xff]  }
  0xaa   :  { %v5033_v36 = vld [vmem:[%s7873_s1 + $0x1e4] ss:$40 sps:$4 sm:$0xff]   ;;  %v5037_v38 = vld [vmem:[%s7873_s1 + $0x1e0] ss:$40 sps:$4 sm:$0xff]   ;;  %v5039_v40 = vld [vmem:[%s7873_s1 + $0x234] ss:$40 sps:$4 sm:$0xff]  }
  0xab   :  { %v5038_v39 = vld [vmem:[%s7873_s1 + $0x1e8] ss:$40 sps:$4 sm:$0xff]   ;;  %v5041_v41 = vld [vmem:[%s7873_s1 + $0x23c] ss:$40 sps:$4 sm:$0xff]   ;;  %v5044_v43 = vld [vmem:[%s7873_s1 + $0x238] ss:$40 sps:$4 sm:$0xff]  }
  0xac   :  { %1916 = vmatpush1.bf16.msra.mxu0 %v5013_v22  ;;  %2029 = vmatpush1.bf16.msra.mxu1 %v5014_v23  ;;  %v5043_v42 = vld [vmem:[%s7873_s1 + $0x230] ss:$40 sps:$4 sm:$0xff]   ;;  %v5048_v44 = vld [vmem:[%s7873_s1 + $0x14] ss:$40 sps:$4 sm:$0xff]   ;;  %v6145_v45 = vld [vmem:[%s7872_s0] sm:$0xff]  }
  0xad   :  { %1917 = vmatprep.subr.bf16.mxu0 %v5015_v24  ;;  %2030 = vmatprep.subr.bf16.mxu1 %v5017_v25  ;;  %v5046_v46 = vld [vmem:[%s7873_s1 + $0x10] ss:$40 sps:$4 sm:$0xff]   ;;  %v5052_v47 = vld [vmem:[%s7873_s1 + $0x64] ss:$40 sps:$4 sm:$0xff]   ;;  %v5050_v49 = vld [vmem:[%s7873_s1 + $0x60] ss:$40 sps:$4 sm:$0xff]  }
  0xae   :  { %v5067_v48 = vld [vmem:[%s7873_s1 + $0x1c] ss:$40 sps:$4 sm:$0xff]   ;;  %v5065_v50 = vld [vmem:[%s7873_s1 + $0x18] ss:$40 sps:$4 sm:$0xff]   ;;  %v5070_v51 = vld [vmem:[%s7873_s1 + $0x6c] ss:$40 sps:$4 sm:$0xff]  }
  0xaf   :  { %v5056_v52 = vld [vmem:[%s7873_s1 + $0xb4] ss:$40 sps:$4 sm:$0xff]   ;;  %v6175_v53 = vld [vmem:[%s7872_s0 + $0x8] sm:$0xff]   ;;  %v5054_v55 = vld [vmem:[%s7873_s1 + $0xb0] ss:$40 sps:$4 sm:$0xff]  }
  0xb0   :  { %1918 = vmatpush1.bf16.msra.mxu0 %v5019_v26  ;;  %2031 = vmatpush1.bf16.msra.mxu1 %v5020_v27  ;;  %v5068_v54 = vld [vmem:[%s7873_s1 + $0x68] ss:$40 sps:$4 sm:$0xff]   ;;  %v5060_v56 = vld [vmem:[%s7873_s1 + $0x104] ss:$40 sps:$4 sm:$0xff]   ;;  %v5075_v58 = vld [vmem:[%s7873_s1 + $0xb8] ss:$40 sps:$4 sm:$0xff]  }
  0xb1   :  { %1919 = vmatprep.subr.bf16.mxu0 %v5021_v28  ;;  %2032 = vmatprep.subr.bf16.mxu1 %v5023_v29  ;;  %v5077_v57 = vld [vmem:[%s7873_s1 + $0xbc] ss:$40 sps:$4 sm:$0xff]   ;;  %v5080_v59 = vld [vmem:[%s7873_s1 + $0x10c] ss:$40 sps:$4 sm:$0xff]   ;;  %v5058_v61 = vld [vmem:[%s7873_s1 + $0x100] ss:$40 sps:$4 sm:$0xff]  }
  0xb2   :  { %v5064_v62 = vld [vmem:[%s7873_s1 + $0x154] ss:$40 sps:$4 sm:$0xff]   ;;  %v5078_v63 = vld [vmem:[%s7873_s1 + $0x108] ss:$40 sps:$4 sm:$0xff]   ;;  %v5074_v1 = vld [vmem:[%s7873_s1 + $0x1a4] ss:$40 sps:$4 sm:$0xff]  }
  0xb3   :  { %v5062_v0 = vld [vmem:[%s7873_s1 + $0x150] ss:$40 sps:$4 sm:$0xff]   ;;  %v5087_v2 = vld [vmem:[%s7873_s1 + $0x15c] ss:$40 sps:$4 sm:$0xff]   ;;  %v5090_v4 = vld [vmem:[%s7873_s1 + $0x1ac] ss:$40 sps:$4 sm:$0xff]  }
  0xb4   :  { %1920 = vmatpush1.bf16.msra.mxu0 %v5025_v30  ;;  %2033 = vmatpush1.bf16.msra.mxu1 %v5026_v31  ;;  %v5085_v3 = vld [vmem:[%s7873_s1 + $0x158] ss:$40 sps:$4 sm:$0xff]   ;;  %v5084_v7 = vld [vmem:[%s7873_s1 + $0x1f4] ss:$40 sps:$4 sm:$0xff]   ;;  %v5088_v8 = vld [vmem:[%s7873_s1 + $0x1a8] ss:$40 sps:$4 sm:$0xff]  }
  0xb5   :  { %1921 = vmatprep.subr.bf16.mxu0 %v5027_v32  ;;  %2034 = vmatprep.subr.bf16.mxu1 %v5029_v33  ;;  %v5072_v5 = vld [vmem:[%s7873_s1 + $0x1a0] ss:$40 sps:$4 sm:$0xff]   ;;  %v6238_v6 = vld [vmem:[%s7872_s0 + $0x18] sm:$0xff]   ;;  %v5094_v10 = vld [vmem:[%s7873_s1 + $0x244] ss:$40 sps:$4 sm:$0xff]  }
  0xb6   :  { %v5082_v9 = vld [vmem:[%s7873_s1 + $0x1f0] ss:$40 sps:$4 sm:$0xff]   ;;  %v5097_v11 = vld [vmem:[%s7873_s1 + $0x1fc] ss:$40 sps:$4 sm:$0xff]   ;;  %v5100_v14 = vld [vmem:[%s7873_s1 + $0x24c] ss:$40 sps:$4 sm:$0xff]  }
  0xb7   :  { %v5095_v13 = vld [vmem:[%s7873_s1 + $0x1f8] ss:$40 sps:$4 sm:$0xff]   ;;  %v5103_v16 = vld [vmem:[%s7873_s1 + $0x24] ss:$40 sps:$4 sm:$0xff]   ;;  %v5098_v18 = vld [vmem:[%s7873_s1 + $0x248] ss:$40 sps:$4 sm:$0xff]  }
  0xb8   :  { %1922 = vmatpush1.bf16.msra.mxu0 %v5031_v34  ;;  %2035 = vmatpush1.bf16.msra.mxu1 %v5032_v35  ;;  %v5092_v15 = vld [vmem:[%s7873_s1 + $0x240] ss:$40 sps:$4 sm:$0xff]   ;;  %v6295_v20 = vld [vmem:[%s7872_s0 + $0x30] sm:$0xff]   ;;  %v6304_v21 = vld [vmem:[%s7872_s0 + $0x38] sm:$0xff]  }
  0xb9   :  { %1923 = vmatprep.subr.bf16.mxu0 %v5033_v36  ;;  %2036 = vmatprep.subr.bf16.mxu1 %v5035_v37  ;;  %v6274_v17 = vld [vmem:[%s7872_s0 + $0x20] sm:$0xff]   ;;  %v6286_v19 = vld [vmem:[%s7872_s0 + $0x28] sm:$0xff]   ;;  %v5106_v23 = vld [vmem:[%s7873_s1 + $0x74] ss:$40 sps:$4 sm:$0xff]  }
  0xba   :  { %v5101_v22 = vld [vmem:[%s7873_s1 + $0x20] ss:$40 sps:$4 sm:$0xff]   ;;  %v5104_v24 = vld [vmem:[%s7873_s1 + $0x70] ss:$40 sps:$4 sm:$0xff]   ;;  %v5109_v25 = vld [vmem:[%s7873_s1 + $0xc4] ss:$40 sps:$4 sm:$0xff]  }
  0xbb   :  { %v5107_v26 = vld [vmem:[%s7873_s1 + $0xc0] ss:$40 sps:$4 sm:$0xff]   ;;  %v5112_v27 = vld [vmem:[%s7873_s1 + $0x114] ss:$40 sps:$4 sm:$0xff]   ;;  %v5110_v28 = vld [vmem:[%s7873_s1 + $0x110] ss:$40 sps:$4 sm:$0xff]  }
  0xbc   :  { %1924 = vmatpush1.bf16.msra.mxu0 %v5037_v38  ;;  %2037 = vmatpush1.bf16.msra.mxu1 %v5038_v39  ;;  %v5115_v29 = vld [vmem:[%s7873_s1 + $0x164] ss:$40 sps:$4 sm:$0xff]   ;;  %v5113_v30 = vld [vmem:[%s7873_s1 + $0x160] ss:$40 sps:$4 sm:$0xff]   ;;  %v5118_v31 = vld [vmem:[%s7873_s1 + $0x1b4] ss:$40 sps:$4 sm:$0xff]  }
  0xbd   :  { %1925 = vmatprep.subr.bf16.mxu0 %v5039_v40  ;;  %2038 = vmatprep.subr.bf16.mxu1 %v5041_v41  ;;  %v5116_v32 = vld [vmem:[%s7873_s1 + $0x1b0] ss:$40 sps:$4 sm:$0xff]   ;;  %v5121_v33 = vld [vmem:[%s7873_s1 + $0x204] ss:$40 sps:$4 sm:$0xff]   ;;  %v5119_v34 = vld [vmem:[%s7873_s1 + $0x200] ss:$40 sps:$4 sm:$0xff]  }
  0xbe   :  { %v5124_v35 = vld [vmem:[%s7873_s1 + $0x254] ss:$40 sps:$4 sm:$0xff]   ;;  %v5122_v36 = vld [vmem:[%s7873_s1 + $0x250] ss:$40 sps:$4 sm:$0xff]  }
  0xc0   :  { %1926 = vmatpush1.bf16.msra.mxu0 %v5043_v42  ;;  %2039 = vmatpush1.bf16.msra.mxu1 %v5044_v43 }
  0xc1   :  { %2137 = vmatprep.subr.bf16.mxu0 %v5048_v44  ;;  %2250 = vmatprep.subr.bf16.mxu1 %v5067_v48 }
  0xc3   :  { %1944 = vmatmul.mubr.bf16.vlgmr.msra.gmra.mrb[0].mxu0 %v6145_v45  ;;  %2057 = vmatmul.mubr.bf16.vlgmr.msra.gmra.mrb[0].mxu1 %v6145_v45 }
  0xc4   :  { %2138 = vmatpush1.bf16.msra.mxu0 %v5046_v46  ;;  %1953 = vmatprep.mubr.bf16.mxu0 %v7879_v12 }
  0xc5   :  { %2066 = vmatprep.mubr.bf16.mxu1 %v7879_v12  ;;  %2139 = vmatprep.subr.bf16.mxu0 %v5052_v47 }
  0xc6   :  { %2251 = vmatpush1.bf16.msra.mxu1 %v5065_v50 }
  0xc7   :  { %2252 = vmatprep.subr.bf16.mxu1 %v5070_v51 }
  0xc8   :  { %2140 = vmatpush1.bf16.msra.mxu0 %v5050_v49 }
  0xc9   :  { %2141 = vmatprep.subr.bf16.mxu0 %v5056_v52 }
  0xca   :  { %2253 = vmatpush1.bf16.msra.mxu1 %v5068_v54 }
  0xcb   :  { %1954 = vmatmul.mubr.bf16.gmra.mrb[4].mxu0 %v6175_v53  ;;  %2067 = vmatmul.mubr.bf16.gmra.mrb[4].mxu1 %v6175_v53 }
  0xcc   :  { %1963 = vmatprep.mubr.bf16.mxu0 %v7879_v12  ;;  %2076 = vmatprep.mubr.bf16.mxu1 %v7879_v12 }
  0xcd   :  { %2142 = vmatpush1.bf16.msra.mxu0 %v5054_v55  ;;  %2254 = vmatprep.subr.bf16.mxu1 %v5077_v57 }
  0xce   :  { %2143 = vmatprep.subr.bf16.mxu0 %v5060_v56  ;;  %2255 = vmatpush1.bf16.msra.mxu1 %v5075_v58  ;;  %v6409_v56 = vld [vmem:[%s7874_s2] sm:$0xff] }
  0xcf   :  { %2256 = vmatprep.subr.bf16.mxu1 %v5080_v59 }
  0xd1   :  { %2144 = vmatpush1.bf16.msra.mxu0 %v5058_v61 }
  0xd2   :  { %2145 = vmatprep.subr.bf16.mxu0 %v5064_v62  ;;  %2257 = vmatpush1.bf16.msra.mxu1 %v5078_v63 }
  0xd3   :  { %1964 = vmatmul.mubr.bf16.gmra.mrb[8].mxu0 %v6202_v60  ;;  %2077 = vmatmul.mubr.bf16.gmra.mrb[8].mxu1 %v6202_v60 }
  0xd4   :  { %1973 = vmatprep.mubr.bf16.mxu0 %v7879_v12  ;;  %2086 = vmatprep.mubr.bf16.mxu1 %v7879_v12 }
  0xd5   :  { %2146 = vmatpush1.bf16.msra.mxu0 %v5062_v0  ;;  %2258 = vmatprep.subr.bf16.mxu1 %v5087_v2 }
  0xd6   :  { %2147 = vmatprep.subr.bf16.mxu0 %v5074_v1  ;;  %2259 = vmatpush1.bf16.msra.mxu1 %v5085_v3 }
  0xd7   :  { %2260 = vmatprep.subr.bf16.mxu1 %v5090_v4 }
  0xd9   :  { %2148 = vmatpush1.bf16.msra.mxu0 %v5072_v5 }
  0xda   :  { %2149 = vmatprep.subr.bf16.mxu0 %v5084_v7  ;;  %2261 = vmatpush1.bf16.msra.mxu1 %v5088_v8 }
  0xdb   :  { %1974 = vmatmul.mubr.bf16.gmra.mrb[12].mxu0 %v6238_v6  ;;  %2087 = vmatmul.mubr.bf16.gmra.mrb[12].mxu1 %v6238_v6 }
  0xdc   :  { %1983 = vmatprep.mubr.bf16.mxu0 %v7879_v12  ;;  %2096 = vmatprep.mubr.bf16.mxu1 %v7879_v12 }
  0xdd   :  { %2150 = vmatpush1.bf16.msra.mxu0 %v5082_v9  ;;  %2262 = vmatprep.subr.bf16.mxu1 %v5097_v11 }
  0xde   :  { %2151 = vmatprep.subr.bf16.mxu0 %v5094_v10  ;;  %2263 = vmatpush1.bf16.msra.mxu1 %v5095_v13 }
  0xdf   :  { %2264 = vmatprep.subr.bf16.mxu1 %v5100_v14 }
  0xe1   :  { %2152 = vmatpush1.bf16.msra.mxu0 %v5092_v15 }
  0xe2   :  { %2363 = vmatprep.subr.bf16.mxu0 %v5103_v16  ;;  %2265 = vmatpush1.bf16.msra.mxu1 %v5098_v18 }
  0xe3   :  { %1984 = vmatmul.mubr.bf16.gmra.mrb[16].mxu0 %v6274_v17  ;;  %2097 = vmatmul.mubr.bf16.gmra.mrb[16].mxu1 %v6274_v17 }
  0xe4   :  { %1993 = vmatprep.mubr.bf16.mxu0 %v7879_v12  ;;  %2106 = vmatprep.mubr.bf16.mxu1 %v7879_v12 }
  0xeb   :  { %1994 = vmatmul.mubr.bf16.gmra.mrb[20].mxu0 %v6286_v19  ;;  %2107 = vmatmul.mubr.bf16.gmra.mrb[20].mxu1 %v6286_v19 }
  0xec   :  { %2003 = vmatprep.mubr.bf16.mxu0 %v7879_v12  ;;  %2116 = vmatprep.mubr.bf16.mxu1 %v7879_v12 }
  0xf3   :  { %2004 = vmatmul.mubr.bf16.gmra.mrb[24].mxu0 %v6295_v20  ;;  %2117 = vmatmul.mubr.bf16.gmra.mrb[24].mxu1 %v6295_v20 }
  0xf4   :  { %2013 = vmatprep.mubr.bf16.mxu0 %v7879_v12  ;;  %2126 = vmatprep.mubr.bf16.mxu1 %v7879_v12 }
  0xfb   :  { %2014 = vmatmul.mubr.bf16.gmra.mrb[28].mxu0 %v6304_v21  ;;  %2127 = vmatmul.mubr.bf16.gmra.mrb[28].mxu1 %v6304_v21 }
  0xfc   :  { %2169 = vmatprep.mubr.bf16.mxu0 %v7879_v12  ;;  %2282 = vmatprep.mubr.bf16.mxu1 %v7879_v12 }
 0x103   :  { %2170 = vmatmul.mubr.bf16.vlgmr.msra.gmra.mrb[32].mxu0 %v6145_v45  ;;  %2283 = vmatmul.mubr.bf16.vlgmr.msra.gmra.mrb[32].mxu1 %v6145_v45 }
 0x104   :  { %2364 = vmatpush1.bf16.msra.mxu0 %v5101_v22  ;;  %2179 = vmatprep.mubr.bf16.mxu0 %v7879_v12 }
 0x105   :  { %2292 = vmatprep.mubr.bf16.mxu1 %v7879_v12  ;;  %2365 = vmatprep.subr.bf16.mxu0 %v5106_v23 }
 0x108   :  { %2366 = vmatpush1.bf16.msra.mxu0 %v5104_v24 }
 0x109   :  { %2367 = vmatprep.subr.bf16.mxu0 %v5109_v25 }
 0x10b   :  { %2180 = vmatmul.mubr.bf16.gmra.mrb[36].mxu0 %v6175_v53  ;;  %2293 = vmatmul.mubr.bf16.gmra.mrb[36].mxu1 %v6175_v53 }
 0x10c   :  { %2189 = vmatprep.mubr.bf16.mxu0 %v7879_v12  ;;  %2302 = vmatprep.mubr.bf16.mxu1 %v7879_v12 }
 0x10d   :  { %2368 = vmatpush1.bf16.msra.mxu0 %v5107_v26 }
 0x10e   :  { %2369 = vmatprep.subr.bf16.mxu0 %v5112_v27 }
 0x111   :  { %2370 = vmatpush1.bf16.msra.mxu0 %v5110_v28 }
 0x112   :  { %2371 = vmatprep.subr.bf16.mxu0 %v5115_v29 }
 0x113   :  { %2190 = vmatmul.mubr.bf16.gmra.mrb[40].mxu0 %v6202_v60  ;;  %2303 = vmatmul.mubr.bf16.gmra.mrb[40].mxu1 %v6202_v60 }
 0x114   :  { %2199 = vmatprep.mubr.bf16.mxu0 %v7879_v12  ;;  %2312 = vmatprep.mubr.bf16.mxu1 %v7879_v12 }
 0x115   :  { %2372 = vmatpush1.bf16.msra.mxu0 %v5113_v30 }
 0x116   :  { %2373 = vmatprep.subr.bf16.mxu0 %v5118_v31 }
 0x119   :  { %2374 = vmatpush1.bf16.msra.mxu0 %v5116_v32 }
 0x11a   :  { %2375 = vmatprep.subr.bf16.mxu0 %v5121_v33 }
 0x11b   :  { %2200 = vmatmul.mubr.bf16.gmra.mrb[44].mxu0 %v6238_v6  ;;  %2313 = vmatmul.mubr.bf16.gmra.mrb[44].mxu1 %v6238_v6 }
 0x11c   :  { %2209 = vmatprep.mubr.bf16.mxu0 %v7879_v12  ;;  %2322 = vmatprep.mubr.bf16.mxu1 %v7879_v12 }
 0x11d   :  { %2376 = vmatpush1.bf16.msra.mxu0 %v5119_v34 }
 0x11e   :  { %2377 = vmatprep.subr.bf16.mxu0 %v5124_v35 }
 0x121   :  { %2378 = vmatpush1.bf16.msra.mxu0 %v5122_v36 }
 0x123   :  { %2210 = vmatmul.mubr.bf16.gmra.mrb[48].mxu0 %v6274_v17  ;;  %2323 = vmatmul.mubr.bf16.gmra.mrb[48].mxu1 %v6274_v17 }
 0x124   :  { %2219 = vmatprep.mubr.bf16.mxu0 %v7879_v12  ;;  %2332 = vmatprep.mubr.bf16.mxu1 %v7879_v12 }
 0x12b   :  { %2220 = vmatmul.mubr.bf16.gmra.mrb[52].mxu0 %v6286_v19  ;;  %2333 = vmatmul.mubr.bf16.gmra.mrb[52].mxu1 %v6286_v19 }
 0x12c   :  { %2229 = vmatprep.mubr.bf16.mxu0 %v7879_v12  ;;  %2342 = vmatprep.mubr.bf16.mxu1 %v7879_v12 }
 0x133   :  { %2230 = vmatmul.mubr.bf16.gmra.mrb[56].mxu0 %v6295_v20  ;;  %2343 = vmatmul.mubr.bf16.gmra.mrb[56].mxu1 %v6295_v20 }
 0x134   :  { %2239 = vmatprep.mubr.bf16.mxu0 %v7879_v12  ;;  %2352 = vmatprep.mubr.bf16.mxu1 %v7879_v12 }
 0x13b   :  { %2240 = vmatmul.mubr.bf16.gmra.mrb[60].mxu0 %v6304_v21  ;;  %2353 = vmatmul.mubr.bf16.gmra.mrb[60].mxu1 %v6304_v21 }
 0x13c   :  { %2395 = vmatprep.mubr.bf16.mxu0 %v7879_v12 }
 0x143   :  { %2396 = vmatmul.mubr.bf16.vlgmr.msra.gmra.mrb[64].mxu0 %v6145_v45  ;;  %v1413_v45 = vlaneseq }
 0x144   :  { %2405 = vmatprep.mubr.bf16.mxu0 %v7879_v12 }
 0x145   :  { %v6401_v47 = vshrl.u32 %v1413_v45, 7 }
 0x147   :  { %v6404_v55 = vsub.s32 0, %v6401_v47  ;;  %v6412_v57 = vsub.s32 1, %v6401_v47  ;;  %v6419_v61 = vsub.s32 2, %v6401_v47  ;;  %v1427_v62 = vsub.s32 3, %v6401_v47 }
 0x149   :  { %7938 = vst [vmem:[#allocation9_spill] sm:$0xff] %v6404_v55  ;;  %7939 = vst [vmem:[#allocation10_spill] sm:$0xff] %v6412_v57  ;;  %v6416_v59 = vrot.slane %v6409_v56, %v6404_v55  ;;  %v6426_v4 = vrot.slane %v6409_v56, %v6412_v57  ;;  %v6435_v7 = vrot.slane %v6409_v56, %v6419_v61 }
 0x14a   :  { %7940 = vst [vmem:[#allocation11_spill] sm:$0xff] %v6419_v61  ;;  %v6438_v8 = vrot.slane %v6409_v56, %v1427_v62 }
 0x14b   :  { %2406 = vmatmul.mubr.bf16.gmra.mrb[68].mxu0 %v6175_v53 }
 0x14c   :  { %2415 = vmatprep.mubr.bf16.mxu0 %v7879_v12 }
 0x153   :  { %2416 = vmatmul.mubr.bf16.gmra.mrb[72].mxu0 %v6202_v60 }
 0x154   :  { %2425 = vmatprep.mubr.bf16.mxu0 %v7879_v12 }
 0x15b   :  { %2426 = vmatmul.mubr.bf16.gmra.mrb[76].mxu0 %v6238_v6 }
 0x15c   :  { %2435 = vmatprep.mubr.bf16.mxu0 %v7879_v12 }
 0x163   :  { %2436 = vmatmul.mubr.bf16.gmra.mrb[80].mxu0 %v6274_v17 }
 0x164   :  { %2445 = vmatprep.mubr.bf16.mxu0 %v7879_v12 }
 0x16b   :  { %2446 = vmatmul.mubr.bf16.gmra.mrb[84].mxu0 %v6286_v19 }
 0x16c   :  { %2455 = vmatprep.mubr.bf16.mxu0 %v7879_v12 }
 0x173   :  { %2456 = vmatmul.mubr.bf16.gmra.mrb[88].mxu0 %v6295_v20 }
 0x174   :  { %2465 = vmatprep.mubr.bf16.mxu0 %v7879_v12 }
 0x17b   :  { %2466 = vmatmul.mubr.bf16.gmra.mrb[92].mxu0 %v6304_v21 }
 0x196   :  { %v1945_v37 = vpop.f32.mrb[0].mxu0  ;;  %v2058_v39 = vpop.f32.mrb[0].mxu1 }
 0x197   :  { %v1947_v38 = vpop.f32.mrb[1].mxu0  ;;  %v2060_v41 = vpop.f32.mrb[1].mxu1  ;;  %v6431_v6 = vadd.f32 %v1945_v37, %v6416_v59  ;;  %v6452_v15 = vadd.f32 %v2058_v39, %v6435_v7 }
 0x198   :  { %v1949_v40 = vpop.f32.mrb[2].mxu0  ;;  %v2062_v43 = vpop.f32.mrb[2].mxu1  ;;  %v6441_v9 = vadd.f32 %v1947_v38, %v6426_v4  ;;  %v6455_v16 = vadd.f32 %v2060_v41, %v6438_v8 }
 0x199   :  { %v1951_v42 = vpop.f32.mrb[3].mxu0  ;;  %v2064_v44 = vpop.f32.mrb[3].mxu1  ;;  %v2476_v11 = vmax.f32 %v6431_v6, 0.0  ;;  %v6447_v13 = vadd.f32 %v1949_v40, %v6416_v59  ;;  %v6468_v21 = vadd.f32 %v2062_v43, %v6435_v7  ;;  %v2478_v37 = vmax.f32 %v6452_v15, 0.0 }
 0x19a   :  { %v6460_v18 = vadd.f32 %v1951_v42, %v6426_v4  ;;  %v6471_v22 = vadd.f32 %v2064_v44, %v6438_v8  ;;  %v2477_v30 = vmax.f32 %v6441_v9, 0.0  ;;  %v2479_v38 = vmax.f32 %v6455_v16, 0.0 }
 0x19b   :  { %v2486_v35 = vmax.f32 %v6447_v13, 0.0  ;;  %v2488_v41 = vmax.f32 %v6468_v21, 0.0 }
 0x19c   :  { %v2487_v39 = vmax.f32 %v6460_v18, 0.0  ;;  %v2489_v42 = vmax.f32 %v6471_v22, 0.0 }
 0x19e   :  { %v1955_v46 = vpop.f32.mrb[4].mxu0  ;;  %v2068_v49 = vpop.f32.mrb[4].mxu1 }
 0x19f   :  { %v1957_v48 = vpop.f32.mrb[5].mxu0  ;;  %v2070_v51 = vpop.f32.mrb[5].mxu1  ;;  %v6463_v19 = vadd.f32 %v1955_v46, %v6416_v59  ;;  %v6484_v27 = vadd.f32 %v2068_v49, %v6435_v7 }
 0x1a0   :  { %v1959_v50 = vpop.f32.mrb[6].mxu0  ;;  %v2072_v53 = vpop.f32.mrb[6].mxu1  ;;  %v6476_v24 = vadd.f32 %v1957_v48, %v6426_v4  ;;  %v6487_v28 = vadd.f32 %v2070_v51, %v6438_v8 }
 0x1a1   :  { %v1961_v52 = vpop.f32.mrb[7].mxu0  ;;  %v2074_v54 = vpop.f32.mrb[7].mxu1  ;;  %v6479_v25 = vadd.f32 %v1959_v50, %v6416_v59  ;;  %v6496_v32 = vadd.f32 %v2072_v53, %v6435_v7  ;;  %v2496_v40 = vmax.f32 %v6463_v19, 0.0 }
 0x1a2   :  { %v6493_v31 = vadd.f32 %v1961_v52, %v6426_v4  ;;  %v6499_v33 = vadd.f32 %v2074_v54, %v6438_v8  ;;  %v2497_v43 = vmax.f32 %v6476_v24, 0.0 }
 0x1a6   :  { %v1965_v58 = vpop.f32.mrb[8].mxu0  ;;  %v2078_v63 = vpop.f32.mrb[8].mxu1 }
 0x1a7   :  { %v1967_v60 = vpop.f32.mrb[9].mxu0  ;;  %v2080_v1 = vpop.f32.mrb[9].mxu1  ;;  %v6505_v36 = vadd.f32 %v1965_v58, %v6416_v59  ;;  %v6529_v9 = vadd.f32 %v2078_v63, %v6435_v7 }
 0x1a8   :  { %v1969_v0 = vpop.f32.mrb[10].mxu0  ;;  %v6422_v3 = vpop.f32.mrb[10].mxu1  ;;  %v6519_v49 = vadd.f32 %v1967_v60, %v6426_v4  ;;  %v6536_v18 = vadd.f32 %v2080_v1, %v6438_v8 }
 0x1a9   :  { %v1971_v2 = vpop.f32.mrb[11].mxu0  ;;  %v6428_v5 = vpop.f32.mrb[11].mxu1  ;;  %v6525_v54 = vadd.f32 %v1969_v0, %v6416_v59  ;;  %v6542_v63 = vadd.f32 %v6422_v3, %v6435_v7 }
 0x1aa   :  { %v6532_v60 = vadd.f32 %v1971_v2, %v6426_v4 }
 0x1ae   :  { %v6443_v10 = vpop.f32.mrb[12].mxu0  ;;  %v6457_v17 = vpop.f32.mrb[12].mxu1 }
 0x1af   :  { %v6449_v14 = vpop.f32.mrb[13].mxu0  ;;  %v6473_v23 = vpop.f32.mrb[13].mxu1 }
 0x1b0   :  { %v6465_v20 = vpop.f32.mrb[14].mxu0  ;;  %v6489_v29 = vpop.f32.mrb[14].mxu1  ;;  %v6611_v24 = vadd.f32 %v6449_v14, %v6426_v4 }
 0x1b1   :  { %v6481_v26 = vpop.f32.mrb[15].mxu0  ;;  %v6501_v34 = vpop.f32.mrb[15].mxu1 }
 0x1b6   :  { %v1985_v50 = vpop.f32.mrb[16].mxu0  ;;  %v2098_v13 = vpop.f32.mrb[16].mxu1 }
 0x1b7   :  { %v1986_v58 = vadd.f32 %v1985_v50, %v6416_v59  ;;  %v1987_v62 = vpop.f32.mrb[17].mxu0  ;;  %v2099_v21 = vadd.f32 %v2098_v13, %v6435_v7  ;;  %v2100_v0 = vpop.f32.mrb[17].mxu1 }
 0x1b8   :  { %v1988_v15 = vadd.f32 %v1987_v62, %v6426_v4  ;;  %v1989_v16 = vpop.f32.mrb[18].mxu0  ;;  %v2101_v2 = vadd.f32 %v2100_v0, %v6438_v8  ;;  %v2102_v53 = vpop.f32.mrb[18].mxu1 }
 0x1b9   :  { %v2556_v22 = vmax.f32 %v1986_v58, 0.0  ;;  %v1990_v50 = vadd.f32 %v1989_v16, %v6416_v59  ;;  %v1991_v12 = vpop.f32.mrb[19].mxu0  ;;  %v2558_v51 = vmax.f32 %v2099_v21, 0.0  ;;  %v2103_v1 = vadd.f32 %v2102_v53, %v6435_v7  ;;  %v2104_v48 = vpop.f32.mrb[19].mxu1 }
 0x1ba   :  { %v2557_v52 = vmax.f32 %v1988_v15, 0.0  ;;  %v1992_v62 = vadd.f32 %v1991_v12, %v6426_v4  ;;  %v2559_v16 = vmax.f32 %v2101_v2, 0.0  ;;  %v2105_v46 = vadd.f32 %v2104_v48, %v6438_v8 }
 0x1bb   :  { %v6549_v58 = vmax.f32 %v2476_v11, %v2556_v22  ;;  %v2566_v13 = vmax.f32 %v1990_v50, 0.0  ;;  %v6554_v0 = vmax.f32 %v2478_v37, %v2558_v51  ;;  %v2568_v15 = vmax.f32 %v2103_v1, 0.0 }
 0x1bc   :  { %v6552_v3 = vmax.f32 %v2477_v30, %v2557_v52  ;;  %v2567_v44 = vmax.f32 %v1992_v62, 0.0  ;;  %v2517_v12 = vmax.f32 %v6519_v49, 0.0  ;;  %v6559_v53 = vmax.f32 %v2479_v38, %v2559_v16 }
 0x1bd   :  { %7941 = vst [vmem:[#allocation12_spill] sm:$0xff] %v6554_v0  ;;  %v6557_v21 = vmax.f32 %v2486_v35, %v2566_v13  ;;  %v2569_v45 = vmax.f32 %v2105_v46, 0.0  ;;  %v2518_v48 = vmax.f32 %v6529_v9, 0.0  ;;  %v6565_v30 = vmax.f32 %v2488_v41, %v2568_v15 }
 0x1be   :  { %7942 = vst [vmem:[#allocation13_spill] sm:$0xff] %v6559_v53  ;;  %v6562_v11 = vmax.f32 %v2487_v39, %v2567_v44  ;;  %v1995_v22 = vpop.f32.mrb[20].mxu0  ;;  %v6571_v35 = vadd.f32 %v6428_v5, %v6438_v8  ;;  %v2108_v46 = vpop.f32.mrb[20].mxu1  ;;  %v6581_v1 = vadd.f32 %v6443_v10, %v6416_v59 }
 0x1bf   :  { %7943 = vst [vmem:[#allocation14_spill] sm:$0xff] %v6565_v30  ;;  %v1996_v37 = vadd.f32 %v1995_v22, %v6416_v59  ;;  %v1997_v51 = vpop.f32.mrb[21].mxu0  ;;  %v6573_v38 = vmax.f32 %v2489_v42, %v2569_v45  ;;  %v2109_v2 = vadd.f32 %v2108_v46, %v6435_v7  ;;  %v2110_v62 = vpop.f32.mrb[21].mxu1 }
 0x1c0   :  { %v1998_v44 = vadd.f32 %v1997_v51, %v6426_v4  ;;  %v1999_v50 = vpop.f32.mrb[22].mxu0  ;;  %v2111_v45 = vadd.f32 %v2110_v62, %v6438_v8  ;;  %v2112_v16 = vpop.f32.mrb[22].mxu1  ;;  %v2529_v19 = vmax.f32 %v6571_v35, 0.0  ;;  %v7951_v35 = vmax.f32 %v6496_v32, 0.0 }
 0x1c1   :  { %7944 = vst [vmem:[#allocation15_spill] sm:$0xff] %v6573_v38  ;;  %v2576_v13 = vmax.f32 %v1996_v37, 0.0  ;;  %v2000_v5 = vadd.f32 %v1999_v50, %v6416_v59  ;;  %v2001_v42 = vpop.f32.mrb[23].mxu0  ;;  %v2578_v51 = vmax.f32 %v2109_v2, 0.0  ;;  %v2113_v41 = vadd.f32 %v2112_v16, %v6435_v7  ;;  %v2114_v39 = vpop.f32.mrb[23].mxu1 }
 0x1c2   :  { %v2577_v15 = vmax.f32 %v1998_v44, 0.0  ;;  %v2002_v22 = vadd.f32 %v2001_v42, %v6426_v4  ;;  %v2579_v52 = vmax.f32 %v2111_v45, 0.0  ;;  %v2115_v37 = vadd.f32 %v2114_v39, %v6438_v8 }
 0x1c3   :  { %v6589_v46 = vmax.f32 %v2496_v40, %v2576_v13  ;;  %v2586_v10 = vmax.f32 %v2000_v5, 0.0  ;;  %v7945_v44 = vmax.f32 %v6484_v27, 0.0  ;;  %v2588_v2 = vmax.f32 %v2113_v41, 0.0 }
 0x1c4   :  { %v6594_v50 = vmax.f32 %v2497_v43, %v2577_v15  ;;  %v2587_v62 = vmax.f32 %v2002_v22, 0.0  ;;  %v7947_v16 = vmax.f32 %v6479_v25, 0.0  ;;  %v7948_v40 = vmax.f32 %v6487_v28, 0.0 }
 0x1c5   :  { %v6598_v42 = vmax.f32 %v7945_v44, %v2578_v51  ;;  %v2589_v39 = vmax.f32 %v2115_v37, 0.0  ;;  %v7950_v27 = vmax.f32 %v6493_v31, 0.0  ;;  %v6619_v25 = vadd.f32 %v6457_v17, %v6435_v7 }
 0x1c6   :  { %v6602_v6 = vmax.f32 %v7947_v16, %v2586_v10  ;;  %v6607_v13 = vmax.f32 %v7948_v40, %v2579_v52  ;;  %v2005_v41 = vpop.f32.mrb[24].mxu0  ;;  %v6623_v5 = vmax.f32 %v7951_v35, %v2588_v2  ;;  %v2536_v28 = vmax.f32 %v6581_v1, 0.0  ;;  %v2118_v22 = vpop.f32.mrb[24].mxu1 }
 0x1c7   :  { %7946 = vst [vmem:[#allocation16_spill] sm:$0xff] %v6598_v42  ;;  %v6615_v43 = vmax.f32 %v7950_v27, %v2587_v62  ;;  %v6628_v52 = vadd.f32 %v6465_v20, %v6416_v59  ;;  %v2006_v14 = vadd.f32 %v2005_v41, %v6416_v59  ;;  %v2007_v31 = vpop.f32.mrb[25].mxu0  ;;  %v7953_v45 = vmax.f32 %v6499_v33, 0.0  ;;  %v2120_v37 = vpop.f32.mrb[25].mxu1 }
 0x1c8   :  { %7949 = vst [vmem:[#allocation17_spill] sm:$0xff] %v6607_v13  ;;  %7952 = vst [vmem:[#allocation18_spill] sm:$0xff] %v6623_v5  ;;  %v6637_v17 = vadd.f32 %v6481_v26, %v6426_v4  ;;  %v2008_v32 = vadd.f32 %v2007_v31, %v6426_v4  ;;  %v2009_v51 = vpop.f32.mrb[26].mxu0  ;;  %v6642_v10 = vadd.f32 %v6473_v23, %v6438_v8  ;;  %v2122_v16 = vpop.f32.mrb[26].mxu1  ;;  %v7955_v35 = vmax.f32 %v6505_v36, 0.0 }
 0x1c9   :  { %v6633_v15 = vmax.f32 %v7953_v45, %v2589_v39  ;;  %v2119_v20 = vadd.f32 %v2118_v22, %v6435_v7  ;;  %v2596_v62 = vmax.f32 %v2006_v14, 0.0  ;;  %v2010_v33 = vadd.f32 %v2009_v51, %v6416_v59  ;;  %v2011_v44 = vpop.f32.mrb[27].mxu0  ;;  %v2124_v41 = vpop.f32.mrb[27].mxu1 }
 0x1ca   :  { %v2093_v2 = vadd.f32 %v6489_v29, %v6435_v7  ;;  %v2121_v26 = vadd.f32 %v2120_v37, %v6438_v8  ;;  %v2597_v40 = vmax.f32 %v2008_v32, 0.0  ;;  %v2012_v39 = vadd.f32 %v2011_v44, %v6426_v4 }
 0x1cb   :  { %7954 = vst [vmem:[#allocation19_spill] sm:$0xff] %v6633_v15  ;;  %v2598_v27 = vmax.f32 %v2119_v20, 0.0  ;;  %v2123_v23 = vadd.f32 %v2122_v16, %v6435_v7  ;;  %v6653_v31 = vmax.f32 %v7955_v35, %v2596_v62  ;;  %v2606_v14 = vmax.f32 %v2010_v33, 0.0 }
 0x1cc   :  { %v2599_v45 = vmax.f32 %v2121_v26, 0.0  ;;  %v2125_v22 = vadd.f32 %v2124_v41, %v6438_v8  ;;  %v6658_v29 = vmax.f32 %v2517_v12, %v2597_v40  ;;  %v2607_v51 = vmax.f32 %v2012_v39, 0.0 }
 0x1cd   :  { %7956 = vst [vmem:[#allocation20_spill] sm:$0xff] %v6653_v31  ;;  %v6662_v32 = vmax.f32 %v2518_v48, %v2598_v27  ;;  %v2608_v20 = vmax.f32 %v2123_v23, 0.0  ;;  %v7958_v37 = vmax.f32 %v6525_v54, 0.0  ;;  %v2095_v36 = vadd.f32 %v6501_v34, %v6438_v8 }
 0x1ce   :  { %v7960_v62 = vmax.f32 %v6536_v18, 0.0  ;;  %v2609_v49 = vmax.f32 %v2125_v22, 0.0  ;;  %v2537_v12 = vmax.f32 %v6611_v24, 0.0  ;;  %v7962_v26 = vmax.f32 %v6532_v60, 0.0  ;;  %v2015_v48 = vpop.f32.mrb[28].mxu0  ;;  %v2128_v24 = vpop.f32.mrb[28].mxu1 }
 0x1cf   :  { %7957 = vst [vmem:[#allocation21_spill] sm:$0xff] %v6662_v32  ;;  %v6666_v44 = vmax.f32 %v7958_v37, %v2606_v14  ;;  %v2538_v16 = vmax.f32 %v6619_v25, 0.0  ;;  %v7964_v54 = vmax.f32 %v6542_v63, 0.0  ;;  %v2546_v34 = vmax.f32 %v6628_v52, 0.0  ;;  %v2017_v39 = vpop.f32.mrb[29].mxu0  ;;  %v2130_v14 = vpop.f32.mrb[29].mxu1 }
 0x1d0   :  { %v6672_v33 = vmax.f32 %v7960_v62, %v2599_v45  ;;  %v6677_v9 = vmax.f32 %v7962_v26, %v2607_v51  ;;  %v2016_v18 = vadd.f32 %v2015_v48, %v6416_v59  ;;  %v2539_v27 = vmax.f32 %v6642_v10, 0.0  ;;  %v2019_v35 = vpop.f32.mrb[30].mxu0  ;;  %v2132_v10 = vpop.f32.mrb[30].mxu1 }
 0x1d1   :  { %7959 = vst [vmem:[#allocation22_spill] sm:$0xff] %v6666_v44  ;;  %v6682_v40 = vmax.f32 %v7964_v54, %v2608_v20  ;;  %v6687_v23 = vmax.f32 %v2529_v19, %v2609_v49  ;;  %v2547_v60 = vmax.f32 %v6637_v17, 0.0  ;;  %v2018_v41 = vadd.f32 %v2017_v39, %v6426_v4  ;;  %v2021_v22 = vpop.f32.mrb[31].mxu0  ;;  %v2134_v49 = vpop.f32.mrb[31].mxu1 }
 0x1d2   :  { %7961 = vst [vmem:[#allocation23_spill] sm:$0xff] %v6672_v33  ;;  %7963 = vst [vmem:[#allocation24_spill] sm:$0xff] %v6677_v9  ;;  %v2548_v25 = vmax.f32 %v2093_v2, 0.0  ;;  %v2129_v63 = vadd.f32 %v2128_v24, %v6435_v7  ;;  %v2616_v45 = vmax.f32 %v2016_v18, 0.0  ;;  %v2020_v52 = vadd.f32 %v2019_v35, %v6416_v59 }
 0x1d3   :  { %7965 = vst [vmem:[#allocation25_spill] sm:$0xff] %v6682_v40  ;;  %7966 = vst [vmem:[#allocation26_spill] sm:$0xff] %v6687_v23  ;;  %v2549_v51 = vmax.f32 %v2095_v36, 0.0  ;;  %v2131_v20 = vadd.f32 %v2130_v14, %v6438_v8  ;;  %v2617_v19 = vmax.f32 %v2018_v41, 0.0  ;;  %v2022_v37 = vadd.f32 %v2021_v22, %v6426_v4 }
 0x1d4   :  { %v2618_v62 = vmax.f32 %v2129_v63, 0.0  ;;  %v2133_v17 = vadd.f32 %v2132_v10, %v6435_v7  ;;  %v6698_v2 = vmax.f32 %v2536_v28, %v2616_v45  ;;  %v2626_v26 = vmax.f32 %v2020_v52, 0.0 }
 0x1d5   :  { %v2619_v48 = vmax.f32 %v2131_v20, 0.0  ;;  %v2135_v59 = vadd.f32 %v2134_v49, %v6438_v8  ;;  %v6701_v54 = vmax.f32 %v2537_v12, %v2617_v19  ;;  %v2627_v36 = vmax.f32 %v2022_v37, 0.0 }
 0x1d6   :  { %7967 = vst [vmem:[#allocation27_spill] sm:$0xff] %v6698_v2  ;;  %v6703_v18 = vmax.f32 %v2538_v16, %v2618_v62  ;;  %v2628_v39 = vmax.f32 %v2133_v17, 0.0  ;;  %v6705_v24 = vmax.f32 %v2546_v34, %v2626_v26  ;;  %v2171_v1 = vpop.f32.mrb[32].mxu0  ;;  %v2284_v8 = vpop.f32.mrb[32].mxu1  ;;  %v1435_v19 = vsub.s32 5, %v6401_v47 }
 0x1d7   :  { %7968 = vst [vmem:[#allocation28_spill] sm:$0xff] %v6701_v54  ;;  %v6707_v4 = vmax.f32 %v2539_v27, %v2619_v48  ;;  %v2629_v7 = vmax.f32 %v2135_v59, 0.0  ;;  %v6709_v41 = vmax.f32 %v2547_v60, %v2627_v36  ;;  %v2173_v35 = vpop.f32.mrb[33].mxu0  ;;  %v2286_v14 = vpop.f32.mrb[33].mxu1  ;;  %v1431_v27 = vsub.s32 4, %v6401_v47 }
 0x1d8   :  { %7969 = vst [vmem:[#allocation29_spill] sm:$0xff] %v6703_v18  ;;  %7970 = vst [vmem:[#allocation30_spill] sm:$0xff] %v6705_v24  ;;  %v6711_v28 = vmax.f32 %v2548_v25, %v2628_v39  ;;  %v2175_v12 = vpop.f32.mrb[34].mxu0  ;;  %v2288_v16 = vpop.f32.mrb[34].mxu1  ;;  %v1439_v37 = vsub.s32 6, %v6401_v47  ;;  %v6723_v26 = vrot.slane %v6409_v56, %v1435_v19 }
 0x1d9   :  { %7971 = vst [vmem:[#allocation31_spill] sm:$0xff] %v6707_v4  ;;  %7972 = vst [vmem:[#allocation32_spill] sm:$0xff] %v6709_v41  ;;  %v6713_v63 = vmax.f32 %v2549_v51, %v2629_v7  ;;  %v2177_v45 = vpop.f32.mrb[35].mxu0  ;;  %v2290_v52 = vpop.f32.mrb[35].mxu1  ;;  %v1443_v51 = vsub.s32 7, %v6401_v47  ;;  %v6720_v49 = vrot.slane %v6409_v56, %v1431_v27 }
 0x1da   :  { %7973 = vst [vmem:[#allocation33_spill] sm:$0xff] %v6711_v28  ;;  %v6726_v48 = vrot.slane %v6409_v56, %v1439_v37  ;;  %v6735_v27 = vadd.f32 %v2173_v35, %v6723_v26  ;;  %v6747_v23 = vadd.f32 %v2177_v45, %v6723_v26 }
 0x1db   :  { %7974 = vst [vmem:[#allocation34_spill] sm:$0xff] %v6713_v63  ;;  %v6729_v59 = vrot.slane %v6409_v56, %v1443_v51  ;;  %v6732_v61 = vadd.f32 %v2171_v1, %v6720_v49  ;;  %v6738_v19 = vadd.f32 %v2175_v12, %v6720_v49 }
 0x1dc   :  { %v6741_v37 = vadd.f32 %v2284_v8, %v6726_v48  ;;  %v6753_v35 = vadd.f32 %v2288_v16, %v6726_v48 }
 0x1dd   :  { %v6744_v56 = vadd.f32 %v2286_v14, %v6729_v59  ;;  %v6756_v12 = vadd.f32 %v2290_v52, %v6729_v59 }
 0x1de   :  { %v2181_v22 = vpop.f32.mrb[36].mxu0  ;;  %v2294_v20 = vpop.f32.mrb[36].mxu1 }
 0x1df   :  { %v2183_v34 = vpop.f32.mrb[37].mxu0  ;;  %v2296_v60 = vpop.f32.mrb[37].mxu1  ;;  %v6750_v1 = vadd.f32 %v2181_v22, %v6720_v49  ;;  %v6763_v15 = vadd.f32 %v2294_v20, %v6726_v48 }
 0x1e0   :  { %v2185_v10 = vpop.f32.mrb[38].mxu0  ;;  %v2298_v62 = vpop.f32.mrb[38].mxu1  ;;  %v6759_v8 = vadd.f32 %v2183_v34, %v6723_v26  ;;  %v6781_v45 = vadd.f32 %v2296_v60, %v6729_v59 }
 0x1e1   :  { %v2187_v25 = vpop.f32.mrb[39].mxu0  ;;  %v2300_v17 = vpop.f32.mrb[39].mxu1  ;;  %v6775_v57 = vadd.f32 %v2185_v10, %v6720_v49  ;;  %v6788_v53 = vadd.f32 %v2298_v62, %v6726_v48 }
 0x1e2   :  { %v6778_v22 = vadd.f32 %v2187_v25, %v6723_v26  ;;  %v6791_v20 = vadd.f32 %v2300_v17, %v6729_v59 }
 0x1e6   :  { %v2191_v36 = vpop.f32.mrb[40].mxu0  ;;  %v2304_v7 = vpop.f32.mrb[40].mxu1 }
 0x1e7   :  { %v2193_v39 = vpop.f32.mrb[41].mxu0  ;;  %v2306_v63 = vpop.f32.mrb[41].mxu1  ;;  %v6784_v38 = vadd.f32 %v2191_v36, %v6720_v49  ;;  %v6800_v55 = vadd.f32 %v2304_v7, %v6726_v48 }
 0x1e8   :  { %v2195_v47 = vpop.f32.mrb[42].mxu0  ;;  %v2308_v4 = vpop.f32.mrb[42].mxu1  ;;  %v6794_v25 = vadd.f32 %v2193_v39, %v6723_v26  ;;  %v6803_v36 = vadd.f32 %v2306_v63, %v6729_v59 }
 0x1e9   :  { %v2197_v51 = vpop.f32.mrb[43].mxu0  ;;  %v2310_v33 = vpop.f32.mrb[43].mxu1  ;;  %v6797_v60 = vadd.f32 %v2195_v47, %v6720_v49  ;;  %v6812_v39 = vadd.f32 %v2308_v4, %v6726_v48 }
 0x1ea   :  { %v6806_v28 = vadd.f32 %v2197_v51, %v6723_v26  ;;  %v6815_v47 = vadd.f32 %v2310_v33, %v6729_v59 }
 0x1eb   :  { %7977 = vst [vmem:[#allocation37_spill] sm:$0xff] %v6812_v39 }
 0x1ec   :  { %7975 = vst [vmem:[#allocation35_spill] sm:$0xff] %v6806_v28  ;;  %7978 = vst [vmem:[#allocation38_spill] sm:$0xff] %v6815_v47 }
 0x1ee   :  { %v2201_v14 = vpop.f32.mrb[44].mxu0  ;;  %v2314_v52 = vpop.f32.mrb[44].mxu1 }
 0x1ef   :  { %v2203_v16 = vpop.f32.mrb[45].mxu0  ;;  %v2316_v13 = vpop.f32.mrb[45].mxu1  ;;  %v6809_v17 = vadd.f32 %v2201_v14, %v6720_v49  ;;  %v6829_v33 = vadd.f32 %v2314_v52, %v6726_v48 }
 0x1f0   :  { %v2205_v10 = vpop.f32.mrb[46].mxu0  ;;  %v2318_v62 = vpop.f32.mrb[46].mxu1  ;;  %v6823_v51 = vadd.f32 %v2203_v16, %v6723_v26  ;;  %v6844_v7 = vadd.f32 %v2316_v13, %v6729_v59 }
 0x1f1   :  { %v2207_v34 = vpop.f32.mrb[47].mxu0  ;;  %7976 = vst [vmem:[#allocation36_spill] sm:$0xff] %v6809_v17  ;;  %v6817_v24 = vpop.f32.mrb[47].mxu1  ;;  %7980 = vst [vmem:[#allocation40_spill] sm:$0xff] %v6829_v33  ;;  %v6841_v40 = vadd.f32 %v2205_v10, %v6720_v49  ;;  %v6854_v10 = vadd.f32 %v2318_v62, %v6726_v48 }
 0x1f2   :  { %7979 = vst [vmem:[#allocation39_spill] sm:$0xff] %v6823_v51  ;;  %v6848_v16 = vadd.f32 %v2207_v34, %v6723_v26 }
 0x1f6   :  { %v2211_v4 = vpop.f32.mrb[48].mxu0  ;;  %v2324_v41 = vpop.f32.mrb[48].mxu1 }
 0x1f7   :  { %v2212_v2 = vadd.f32 %v2211_v4, %v6720_v49  ;;  %v2213_v63 = vpop.f32.mrb[49].mxu0  ;;  %v2325_v18 = vadd.f32 %v2324_v41, %v6726_v48  ;;  %v2326_v52 = vpop.f32.mrb[49].mxu1 }
 0x1f8   :  { %v2214_v14 = vadd.f32 %v2213_v63, %v6723_v26  ;;  %v2215_v51 = vpop.f32.mrb[50].mxu0  ;;  %v2327_v17 = vadd.f32 %v2326_v52, %v6729_v59  ;;  %v2328_v44 = vpop.f32.mrb[50].mxu1  ;;  %v7981_v63 = vmax.f32 %v6732_v61, 0.0  ;;  %v7982_v52 = vmax.f32 %v6741_v37, 0.0 }
 0x1f9   :  { %v2560_v13 = vmax.f32 %v2212_v2, 0.0  ;;  %v2216_v4 = vadd.f32 %v2215_v51, %v6720_v49  ;;  %v2217_v9 = vpop.f32.mrb[51].mxu0  ;;  %v2562_v34 = vmax.f32 %v2325_v18, 0.0  ;;  %v2329_v54 = vadd.f32 %v2328_v44, %v6726_v48  ;;  %v2330_v33 = vpop.f32.mrb[51].mxu1 }
 0x1fa   :  { %v2561_v47 = vmax.f32 %v2214_v14, 0.0  ;;  %v2218_v41 = vadd.f32 %v2217_v9, %v6723_v26  ;;  %v2563_v62 = vmax.f32 %v2327_v17, 0.0  ;;  %v2331_v2 = vadd.f32 %v2330_v33, %v6729_v59 }
 0x1fb   :  { %v6862_v32 = vmax.f32 %v7981_v63, %v2560_v13  ;;  %v2570_v28 = vmax.f32 %v2216_v4, 0.0  ;;  %v6867_v51 = vmax.f32 %v7982_v52, %v2562_v34  ;;  %v7983_v18 = vmax.f32 %v6735_v27, 0.0 }
 0x1fc   :  { %v2572_v44 = vmax.f32 %v2329_v54, 0.0  ;;  %v2571_v39 = vmax.f32 %v2218_v41, 0.0  ;;  %v7984_v61 = vmax.f32 %v6744_v56, 0.0  ;;  %v7986_v17 = vmax.f32 %v6738_v19, 0.0 }
 0x1fd   :  { %v6871_v14 = vmax.f32 %v7983_v18, %v2561_v47  ;;  %v2573_v33 = vmax.f32 %v2331_v2, 0.0  ;;  %v7987_v54 = vmax.f32 %v6753_v35, 0.0  ;;  %v7988_v34 = vmax.f32 %v6747_v23, 0.0 }
 0x1fe   :  { %v6876_v13 = vmax.f32 %v7984_v61, %v2563_v62  ;;  %v6880_v4 = vmax.f32 %v7986_v17, %v2570_v28  ;;  %v2221_v41 = vpop.f32.mrb[52].mxu0  ;;  %v7989_v63 = vmax.f32 %v6756_v12, 0.0  ;;  %v2334_v52 = vpop.f32.mrb[52].mxu1 }
 0x1ff   :  { %v6888_v47 = vmax.f32 %v7987_v54, %v2572_v44  ;;  %v6892_v56 = vmax.f32 %v7988_v34, %v2571_v39  ;;  %v2222_v2 = vadd.f32 %v2221_v41, %v6720_v49  ;;  %v2223_v35 = vpop.f32.mrb[53].mxu0  ;;  %v2335_v39 = vadd.f32 %v2334_v52, %v6726_v48  ;;  %v2336_v61 = vpop.f32.mrb[53].mxu1 }
 0x200   :  { %7985 = vst [vmem:[#allocation41_spill] sm:$0xff] %v6876_v13  ;;  %v6899_v62 = vmax.f32 %v7989_v63, %v2573_v33  ;;  %v2224_v44 = vadd.f32 %v2223_v35, %v6723_v26  ;;  %v2225_v17 = vpop.f32.mrb[54].mxu0  ;;  %v2337_v54 = vadd.f32 %v2336_v61, %v6729_v59  ;;  %v2338_v41 = vpop.f32.mrb[54].mxu1  ;;  %v7991_v35 = vmax.f32 %v6750_v1, 0.0 }
 0x201   :  { %v2580_v33 = vmax.f32 %v2222_v2, 0.0  ;;  %v2226_v34 = vadd.f32 %v2225_v17, %v6720_v49  ;;  %v2227_v63 = vpop.f32.mrb[55].mxu0  ;;  %v2582_v28 = vmax.f32 %v2335_v39, 0.0  ;;  %v2339_v23 = vadd.f32 %v2338_v41, %v6726_v48  ;;  %v2340_v18 = vpop.f32.mrb[55].mxu1 }
 0x202   :  { %7990 = vst [vmem:[#allocation42_spill] sm:$0xff] %v6899_v62  ;;  %v2581_v27 = vmax.f32 %v2224_v44, 0.0  ;;  %v2228_v52 = vadd.f32 %v2227_v63, %v6723_v26  ;;  %v2583_v9 = vmax.f32 %v2337_v54, 0.0  ;;  %v2341_v2 = vadd.f32 %v2340_v18, %v6729_v59 }
 0x203   :  { %v6916_v37 = vmax.f32 %v7991_v35, %v2580_v33  ;;  %v2590_v12 = vmax.f32 %v2226_v34, 0.0  ;;  %v7992_v61 = vmax.f32 %v6763_v15, 0.0  ;;  %v7993_v39 = vmax.f32 %v6759_v8, 0.0 }
 0x204   :  { %v2592_v41 = vmax.f32 %v2339_v23, 0.0  ;;  %v2591_v19 = vmax.f32 %v2228_v52, 0.0  ;;  %v6929_v63 = vadd.f32 %v6817_v24, %v6729_v59  ;;  %v7994_v1 = vmax.f32 %v6781_v45, 0.0 }
 0x205   :  { %v6921_v17 = vmax.f32 %v7992_v61, %v2582_v28  ;;  %v6925_v44 = vmax.f32 %v7993_v39, %v2581_v27  ;;  %v7996_v18 = vmax.f32 %v6775_v57, 0.0  ;;  %v2593_v15 = vmax.f32 %v2341_v2, 0.0 }
 0x206   :  { %v6933_v33 = vmax.f32 %v7994_v1, %v2583_v9  ;;  %v7997_v28 = vmax.f32 %v6788_v53, 0.0  ;;  %v7998_v24 = vmax.f32 %v6778_v22, 0.0  ;;  %v2231_v9 = vpop.f32.mrb[56].mxu0  ;;  %v7999_v34 = vmax.f32 %v6791_v20, 0.0  ;;  %v2344_v2 = vpop.f32.mrb[56].mxu1 }
 0x207   :  { %v6937_v54 = vmax.f32 %v7996_v18, %v2590_v12  ;;  %v2232_v35 = vadd.f32 %v2231_v9, %v6720_v49  ;;  %v2233_v53 = vpop.f32.mrb[57].mxu0 }
 0x208   :  { %7995 = vst [vmem:[#allocation43_spill] sm:$0xff] %v6933_v33  ;;  %v6945_v23 = vmax.f32 %v7997_v28, %v2592_v41  ;;  %v6949_v45 = vmax.f32 %v7998_v24, %v2591_v19  ;;  %v6956_v52 = vmax.f32 %v7999_v34, %v2593_v15  ;;  %v2345_v19 = vadd.f32 %v2344_v2, %v6726_v48  ;;  %v2346_v41 = vpop.f32.mrb[57].mxu1  ;;  %v2235_v1 = vpop.f32.mrb[58].mxu0 }
 0x209   :  { %v2234_v39 = vadd.f32 %v2233_v53, %v6723_v26  ;;  %v2600_v18 = vmax.f32 %v2232_v35, 0.0  ;;  %v2347_v15 = vadd.f32 %v2346_v41, %v6729_v59  ;;  %v2236_v28 = vadd.f32 %v2235_v1, %v6720_v49  ;;  %v2348_v24 = vpop.f32.mrb[58].mxu1  ;;  %v2237_v9 = vpop.f32.mrb[59].mxu0 }
 0x20a   :  { %8000 = vst [vmem:[#allocation44_spill] sm:$0xff] %v6956_v52  ;;  %v2602_v34 = vmax.f32 %v2345_v19, 0.0  ;;  %v2349_v22 = vadd.f32 %v2348_v24, %v6726_v48  ;;  %v2238_v2 = vadd.f32 %v2237_v9, %v6723_v26  ;;  %v2350_v27 = vpop.f32.mrb[59].mxu1  ;;  %v8001_v53 = vmax.f32 %v6784_v38, 0.0 }
 0x20b   :  { %v2601_v12 = vmax.f32 %v2234_v39, 0.0  ;;  %v2603_v8 = vmax.f32 %v2347_v15, 0.0  ;;  %v2610_v20 = vmax.f32 %v2236_v28, 0.0  ;;  %v2351_v35 = vadd.f32 %v2350_v27, %v6729_v59 }
 0x20c   :  { %v6973_v61 = vmax.f32 %v8001_v53, %v2600_v18  ;;  %v8003_v41 = vmax.f32 %v6800_v55, 0.0  ;;  %v8004_v19 = vmax.f32 %v6794_v25, 0.0  ;;  %v2612_v24 = vmax.f32 %v2349_v22, 0.0 }
 0x20d   :  { %v2611_v57 = vmax.f32 %v2238_v2, 0.0  ;;  %v2552_v9 = vmax.f32 %v6854_v10, 0.0  ;;  %v8006_v38 = vmax.f32 %v6803_v36, 0.0  ;;  %v8008_v15 = vmax.f32 %v6797_v60, 0.0  ;;  %v8011_v10 = vld [vmem:[#allocation35_spill] sm:$0xff] }
 0x20e   :  { %8002 = vst [vmem:[#allocation45_spill] sm:$0xff] %v6973_v61  ;;  %v6978_v1 = vmax.f32 %v8003_v41, %v2602_v34  ;;  %v6982_v39 = vmax.f32 %v8004_v19, %v2601_v12  ;;  %v2613_v27 = vmax.f32 %v2351_v35, 0.0  ;;  %v8009_v12 = vld [vmem:[#allocation37_spill] sm:$0xff]  ;;  %v8012_v2 = vmax.f32 %v8011_v10, 0.0  ;;  %v8015_v35 = vld [vmem:[#allocation38_spill] sm:$0xff] }
 0x20f   :  { %v6987_v18 = vmax.f32 %v8006_v38, %v2603_v8  ;;  %v6991_v28 = vmax.f32 %v8008_v15, %v2610_v20  ;;  %v8010_v22 = vmax.f32 %v8009_v12, 0.0  ;;  %v2241_v8 = vpop.f32.mrb[60].mxu0  ;;  %v2553_v60 = vmax.f32 %v6929_v63, 0.0  ;;  %v2354_v15 = vpop.f32.mrb[60].mxu1 }
 0x210   :  { %8005 = vst [vmem:[#allocation46_spill] sm:$0xff] %v6982_v39  ;;  %v7003_v36 = vmax.f32 %v8012_v2, %v2611_v57  ;;  %v8016_v41 = vmax.f32 %v8015_v35, 0.0  ;;  %v2242_v38 = vadd.f32 %v2241_v8, %v6720_v49  ;;  %v2243_v12 = vpop.f32.mrb[61].mxu0  ;;  %v2355_v2 = vadd.f32 %v2354_v15, %v6726_v48  ;;  %v2356_v25 = vpop.f32.mrb[61].mxu1 }
 0x211   :  { %8007 = vst [vmem:[#allocation47_spill] sm:$0xff] %v6987_v18  ;;  %v6999_v34 = vmax.f32 %v8010_v22, %v2612_v24  ;;  %v8018_v24 = vld [vmem:[#allocation24_spill] sm:$0xff]  ;;  %v2244_v63 = vadd.f32 %v2243_v12, %v6723_v26  ;;  %v2245_v53 = vpop.f32.mrb[62].mxu0  ;;  %v2357_v8 = vadd.f32 %v2356_v25, %v6729_v59  ;;  %v2358_v18 = vpop.f32.mrb[62].mxu1 }
 0x212   :  { %8013 = vst [vmem:[#allocation37_spill] sm:$0xff] %v7003_v36  ;;  %v7010_v19 = vmax.f32 %v8016_v41, %v2613_v27  ;;  %v2620_v41 = vmax.f32 %v2242_v38, 0.0  ;;  %v2246_v55 = vadd.f32 %v2245_v53, %v6720_v49  ;;  %v2247_v20 = vpop.f32.mrb[63].mxu0  ;;  %v2622_v22 = vmax.f32 %v2355_v2, 0.0  ;;  %v2360_v5 = vpop.f32.mrb[63].mxu1  ;;  %v8021_v12 = vld [vmem:[#allocation36_spill] sm:$0xff] }
 0x213   :  { %v2621_v52 = vmax.f32 %v2244_v63, 0.0  ;;  %v2359_v10 = vadd.f32 %v2358_v18, %v6726_v48  ;;  %v2248_v15 = vadd.f32 %v2247_v20, %v6723_v26  ;;  %v8022_v33 = vmax.f32 %v8021_v12, 0.0  ;;  %v8023_v25 = vld [vmem:[#allocation40_spill] sm:$0xff]  ;;  %v8026_v53 = vld [vmem:[#allocation39_spill] sm:$0xff] }
 0x214   :  { %8017 = vst [vmem:[#allocation35_spill] sm:$0xff] %v7010_v19  ;;  %v2623_v62 = vmax.f32 %v2357_v8, 0.0  ;;  %v2630_v27 = vmax.f32 %v2246_v55, 0.0  ;;  %v2361_v38 = vadd.f32 %v2360_v5, %v6729_v59  ;;  %v8024_v19 = vmax.f32 %v8023_v25, 0.0 }
 0x215   :  { %v7027_v42 = vmax.f32 %v8022_v33, %v2620_v41  ;;  %v8027_v2 = vmax.f32 %v8026_v53, 0.0  ;;  %v2632_v48 = vmax.f32 %v2359_v10, 0.0  ;;  %v2631_v18 = vmax.f32 %v2248_v15, 0.0  ;;  %v1410_v53 = vld [vmem:[%s7874_s2 + $0x8] sm:$0x3] }
 0x216   :  { %v7032_v49 = vmax.f32 %v8024_v19, %v2622_v22  ;;  %v8029_v26 = vmax.f32 %v6844_v7, 0.0  ;;  %v8031_v33 = vmax.f32 %v6841_v40, 0.0  ;;  %v2633_v55 = vmax.f32 %v2361_v38, 0.0  ;;  %v2397_v7 = vpop.f32.mrb[64].mxu0 }
 0x217   :  { %v7036_v63 = vmax.f32 %v8027_v2, %v2621_v52  ;;  %v7050_v8 = vmax.f32 %v2552_v9, %v2632_v48  ;;  %v8035_v52 = vmax.f32 %v6848_v16, 0.0 }
 0x218   :  { %8025 = vst [vmem:[#allocation38_spill] sm:$0xff] %v7032_v49  ;;  %v7040_v20 = vmax.f32 %v8029_v26, %v2623_v62  ;;  %v7044_v41 = vmax.f32 %v8031_v33, %v2630_v27  ;;  %v7058_v40 = vmax.f32 %v2553_v60, %v2633_v55  ;;  %v2399_v27 = vpop.f32.mrb[65].mxu0  ;;  %v8043_v62 = vld [vmem:[#allocation10_spill] sm:$0xff] }
 0x219   :  { %8028 = vst [vmem:[#allocation24_spill] sm:$0xff] %v7036_v63  ;;  %8034 = vst [vmem:[#allocation40_spill] sm:$0xff] %v7050_v8  ;;  %v7054_v10 = vmax.f32 %v8035_v52, %v2631_v18  ;;  %v2401_v2 = vpop.f32.mrb[66].mxu0  ;;  %v7087_v35 = vrot.slane %v1410_v53, %v8043_v62 }
 0x21a   :  { %8030 = vst [vmem:[#allocation36_spill] sm:$0xff] %v7040_v20  ;;  %8038 = vst [vmem:[#allocation48_spill] sm:$0xff] %v7058_v40  ;;  %v2403_v16 = vpop.f32.mrb[67].mxu0  ;;  %v8042_v40 = vld [vmem:[#allocation9_spill] sm:$0xff] }
 0x21b   :  { %8036 = vst [vmem:[#allocation39_spill] sm:$0xff] %v7054_v10  ;;  %v7082_v9 = vrot.slane %v1410_v53, %v8042_v40  ;;  %v2400_v13 = vadd.f32 %v2399_v27, %v7087_v35  ;;  %v2404_v19 = vadd.f32 %v2403_v16, %v7087_v35 }
 0x21d   :  { %v2398_v30 = vadd.f32 %v2397_v7, %v7082_v9  ;;  %v2402_v10 = vadd.f32 %v2401_v2, %v7082_v9  ;;  %v2485_v5 = vmax.f32 %v2400_v13, 0.0 }
 0x21e   :  { %v2407_v18 = vpop.f32.mrb[68].mxu0 }
 0x21f   :  { %v2409_v26 = vpop.f32.mrb[69].mxu0  ;;  %v2484_v12 = vmax.f32 %v2398_v30, 0.0  ;;  %v2494_v36 = vmax.f32 %v2402_v10, 0.0  ;;  %v8045_v30 = vld [vmem:[#allocation13_spill] sm:$0xff] }
 0x220   :  { %v2411_v33 = vpop.f32.mrb[70].mxu0  ;;  %v2410_v13 = vadd.f32 %v2409_v26, %v7087_v35 }
 0x221   :  { %v2413_v52 = vpop.f32.mrb[71].mxu0 }
 0x226   :  { %v2417_v22 = vpop.f32.mrb[72].mxu0 }
 0x227   :  { %v7066_v15 = vpop.f32.mrb[73].mxu0 }
 0x228   :  { %v7068_v60 = vpop.f32.mrb[74].mxu0 }
 0x229   :  { %v7070_v55 = vpop.f32.mrb[75].mxu0 }
 0x22e   :  { %v7075_v38 = vpop.f32.mrb[76].mxu0 }
 0x22f   :  { %v7077_v59 = vpop.f32.mrb[77].mxu0 }
 0x230   :  { %v7079_v48 = vpop.f32.mrb[78].mxu0 }
 0x231   :  { %v7084_v20 = vpop.f32.mrb[79].mxu0 }
 0x236   :  { %v2437_v0 = vpop.f32.mrb[80].mxu0 }
 0x237   :  { %v2438_v25 = vadd.f32 %v2437_v0, %v7082_v9  ;;  %v2439_v63 = vpop.f32.mrb[81].mxu0  ;;  %v2495_v0 = vmax.f32 %v2404_v19, 0.0  ;;  %v2412_v19 = vadd.f32 %v2411_v33, %v7082_v9  ;;  %v2505_v33 = vmax.f32 %v2410_v13, 0.0 }
 0x238   :  { %v2440_v40 = vadd.f32 %v2439_v63, %v7087_v35  ;;  %v2441_v8 = vpop.f32.mrb[82].mxu0  ;;  %v2408_v63 = vadd.f32 %v2407_v18, %v7082_v9  ;;  %v2414_v18 = vadd.f32 %v2413_v52, %v7087_v35  ;;  %v2420_v13 = vadd.f32 %v7066_v15, %v7087_v35 }
 0x239   :  { %v2564_v49 = vmax.f32 %v2438_v25, 0.0  ;;  %v2442_v53 = vadd.f32 %v2441_v8, %v7082_v9  ;;  %v2443_v62 = vpop.f32.mrb[83].mxu0 }
 0x23a   :  { %v2565_v7 = vmax.f32 %v2440_v40, 0.0  ;;  %v2444_v27 = vadd.f32 %v2443_v62, %v7087_v35  ;;  %v2514_v62 = vmax.f32 %v2412_v19, 0.0  ;;  %v2515_v52 = vmax.f32 %v2414_v18, 0.0 }
 0x23b   :  { %v7097_v57 = vmax.f32 %v2484_v12, %v2564_v49  ;;  %v2574_v2 = vmax.f32 %v2442_v53, 0.0  ;;  %v2422_v18 = vadd.f32 %v7068_v60, %v7082_v9 }
 0x23c   :  { %v7099_v39 = vmax.f32 %v2485_v5, %v2565_v7  ;;  %v2575_v16 = vmax.f32 %v2444_v27, 0.0  ;;  %v8047_v5 = vld [vmem:[#allocation15_spill] sm:$0xff]  ;;  %v2504_v7 = vmax.f32 %v2408_v63, 0.0  ;;  %v8049_v63 = vld [vmem:[#allocation17_spill] sm:$0xff] }
 0x23d   :  { %v7104_v31 = vmax.f32 %v2494_v36, %v2574_v2 }
 0x23e   :  { %8044 = vst [vmem:[#allocation49_spill] sm:$0xff] %v7099_v39  ;;  %v7109_v10 = vmax.f32 %v2495_v0, %v2575_v16  ;;  %v2447_v49 = vpop.f32.mrb[84].mxu0 }
 0x23f   :  { %v2448_v40 = vadd.f32 %v2447_v49, %v7082_v9  ;;  %v2449_v12 = vpop.f32.mrb[85].mxu0 }
 0x240   :  { %8046 = vst [vmem:[#allocation13_spill] sm:$0xff] %v7109_v10  ;;  %v2450_v26 = vadd.f32 %v2449_v12, %v7087_v35  ;;  %v2451_v53 = vpop.f32.mrb[86].mxu0  ;;  %v2418_v12 = vadd.f32 %v2417_v22, %v7082_v9 }
 0x241   :  { %v2584_v27 = vmax.f32 %v2448_v40, 0.0  ;;  %v2452_v2 = vadd.f32 %v2451_v53, %v7082_v9  ;;  %v2453_v0 = vpop.f32.mrb[87].mxu0 }
 0x242   :  { %v2585_v16 = vmax.f32 %v2450_v26, 0.0  ;;  %v2454_v8 = vadd.f32 %v2453_v0, %v7087_v35 }
 0x243   :  { %v7121_v49 = vmax.f32 %v2504_v7, %v2584_v27  ;;  %v2594_v25 = vmax.f32 %v2452_v2, 0.0  ;;  %v2524_v2 = vmax.f32 %v2418_v12, 0.0  ;;  %v8052_v12 = vld [vmem:[#allocation23_spill] sm:$0xff] }
 0x244   :  { %v7123_v39 = vmax.f32 %v2505_v33, %v2585_v16  ;;  %v2595_v36 = vmax.f32 %v2454_v8, 0.0  ;;  %v8050_v8 = vld [vmem:[#allocation19_spill] sm:$0xff]  ;;  %v2525_v16 = vmax.f32 %v2420_v13, 0.0  ;;  %v2430_v13 = vadd.f32 %v7077_v59, %v7087_v35 }
 0x245   :  { %v7128_v10 = vmax.f32 %v2514_v62, %v2594_v25  ;;  %v2424_v25 = vadd.f32 %v7070_v55, %v7087_v35 }
 0x246   :  { %8048 = vst [vmem:[#allocation15_spill] sm:$0xff] %v7123_v39  ;;  %v7134_v26 = vmax.f32 %v2515_v52, %v2595_v36  ;;  %v2457_v53 = vpop.f32.mrb[88].mxu0 }
 0x247   :  { %v2458_v7 = vadd.f32 %v2457_v53, %v7082_v9  ;;  %v2459_v27 = vpop.f32.mrb[89].mxu0  ;;  %v2534_v53 = vmax.f32 %v2422_v18, 0.0  ;;  %v2535_v55 = vmax.f32 %v2424_v25, 0.0 }
 0x248   :  { %v2460_v62 = vadd.f32 %v2459_v27, %v7087_v35  ;;  %v2461_v36 = vpop.f32.mrb[90].mxu0  ;;  %v2428_v27 = vadd.f32 %v7075_v38, %v7082_v9 }
 0x249   :  { %v2604_v0 = vmax.f32 %v2458_v7, 0.0  ;;  %v2462_v33 = vadd.f32 %v2461_v36, %v7082_v9  ;;  %v2463_v60 = vpop.f32.mrb[91].mxu0 }
 0x24a   :  { %v2605_v52 = vmax.f32 %v2460_v62, 0.0  ;;  %v2464_v19 = vadd.f32 %v2463_v60, %v7087_v35 }
 0x24b   :  { %v7148_v22 = vmax.f32 %v2524_v2, %v2604_v0  ;;  %v2614_v40 = vmax.f32 %v2462_v33, 0.0  ;;  %v8054_v2 = vld [vmem:[#allocation26_spill] sm:$0xff] }
 0x24c   :  { %v7150_v39 = vmax.f32 %v2525_v16, %v2605_v52  ;;  %v2615_v15 = vmax.f32 %v2464_v19, 0.0  ;;  %v2432_v19 = vadd.f32 %v7079_v48, %v7082_v9  ;;  %v2544_v16 = vmax.f32 %v2428_v27, 0.0 }
 0x24d   :  { %v7156_v36 = vmax.f32 %v2534_v53, %v2614_v40  ;;  %v2434_v40 = vadd.f32 %v7084_v20, %v7087_v35 }
 0x24e   :  { %8051 = vst [vmem:[#allocation17_spill] sm:$0xff] %v7150_v39  ;;  %v7162_v62 = vmax.f32 %v2535_v55, %v2615_v15  ;;  %v2467_v25 = vpop.f32.mrb[92].mxu0  ;;  %v2545_v55 = vmax.f32 %v2430_v13, 0.0 }
 0x24f   :  { %v2468_v0 = vadd.f32 %v2467_v25, %v7082_v9  ;;  %v2469_v33 = vpop.f32.mrb[93].mxu0  ;;  %v2554_v25 = vmax.f32 %v2432_v19, 0.0  ;;  %v2555_v20 = vmax.f32 %v2434_v40, 0.0 }
 0x250   :  { %8053 = vst [vmem:[#allocation19_spill] sm:$0xff] %v7162_v62  ;;  %v2470_v60 = vadd.f32 %v2469_v33, %v7087_v35  ;;  %v2471_v15 = vpop.f32.mrb[94].mxu0  ;;  %v8055_v33 = vld [vmem:[#allocation31_spill] sm:$0xff] }
 0x251   :  { %v2624_v52 = vmax.f32 %v2468_v0, 0.0  ;;  %v2472_v53 = vadd.f32 %v2471_v15, %v7082_v9  ;;  %v2473_v48 = vpop.f32.mrb[95].mxu0 }
 0x252   :  { %v2625_v18 = vmax.f32 %v2470_v60, 0.0  ;;  %v2474_v38 = vadd.f32 %v2473_v48, %v7087_v35  ;;  %v8056_v35 = vld [vmem:[#allocation34_spill] sm:$0xff] }
 0x253   :  { %v7176_v7 = vmax.f32 %v2544_v16, %v2624_v52  ;;  %v2634_v39 = vmax.f32 %v2472_v53, 0.0 }
 0x254   :  { %v7178_v61 = vmax.f32 %v2545_v55, %v2625_v18  ;;  %v2635_v59 = vmax.f32 %v2474_v38, 0.0 }
 0x255   :  { %v2749_v62 = vmax.f32 %v8055_v33, %v7176_v7  ;;  %v7182_v27 = vmax.f32 %v2554_v25, %v2634_v39 }
 0x256   :  { %v2750_v9 = vmax.f32 %v7027_v42, %v7178_v61  ;;  %v7186_v13 = vmax.f32 %v2555_v20, %v2635_v59 }
 0x257   :  { %v2754_v19 = vmax.f32 %v8056_v35, %v7182_v27 }
 0x258   :  { %v2755_v0 = vmax.f32 %v7044_v41, %v7186_v13 }
 0x259   :  { %5197 = dma.done.wait [#allocation4], 18432 }
 0x25a   :  { %5198 = vsyncadd [#allocation4], 4294948864  ;;  %v8057_v18 = vmax.f32 %v6552_v3, %v6867_v51  ;;  %v8058_v39 = vmax.f32 %v6562_v11, %v6888_v47  ;;  %v2761_v40 = vld [vmem:[#allocation2 + $0x8] sm:$0xff]  ;;  %v2760_v59 = vld [vmem:[#allocation2] sm:$0xff]  ;;  %vm5203_vm0 = vmmov 0  }
 0x25b   :  { %v2764_v60 = vld [vmem:[#allocation2 + $0x20] sm:$0xff]  ;;  %2943 = vmatprep.subr.bf16.mxu1 %v2761_v40  ;;  %v2763_v15 = vld [vmem:[#allocation2 + $0x18] sm:$0xff]  ;;  %v2786_v52 = vld [vmem:[#allocation2 + $0xd0] sm:$0xff] }
 0x25c   :  { %v2908_v38 = vpack.c.bf16 %v8058_v39, %v8057_v18  ;;  %2944 = vmatpush1.bf16.msra.mxu1 %v2760_v59  ;;  %v2767_v16 = vld [vmem:[#allocation2 + $0x38] sm:$0xff]  ;;  %4481 = vmatprep.subr.bf16.mxu0 %v2786_v52  ;;  %v2762_v53 = vld [vmem:[#allocation2 + $0x10] sm:$0xff]  ;;  %v2789_v48 = vld [vmem:[#allocation2 + $0xe8] sm:$0xff] }
 0x25d   :  { %2945 = vmatprep.subr.bf16.mxu1 %v2764_v60  ;;  %4482 = vmatpush3.bf16.msra.mxu0 %v2762_v53  ;;  %v2766_v3 = vld [vmem:[#allocation2 + $0x30] sm:$0xff]  ;;  %v2765_v11 = vld [vmem:[#allocation2 + $0x28] sm:$0xff]  ;;  %v2792_v47 = vld [vmem:[#allocation2 + $0x100] sm:$0xff] }
 0x25e   :  { %3194 = vmatprep.mubr.bf16.mxu0 %v2908_v38  ;;  %2975 = vmatprep.mubr.bf16.mxu1 %v2908_v38  ;;  %v2770_v51 = vld [vmem:[#allocation2 + $0x50] sm:$0xff]  ;;  %v2769_v55 = vld [vmem:[#allocation2 + $0x48] sm:$0xff]  ;;  %v2768_v25 = vld [vmem:[#allocation2 + $0x40] sm:$0xff] }
 0x25f   :  { %4483 = vmatprep.subr.bf16.mxu0 %v2789_v48  ;;  %v2773_v20 = vld [vmem:[#allocation2 + $0x68] sm:$0xff]  ;;  %v2795_v18 = vld [vmem:[#allocation2 + $0x118] sm:$0xff]  ;;  %v2772_v39 = vld [vmem:[#allocation2 + $0x60] sm:$0xff] }
 0x260   :  { %2946 = vmatpush1.bf16.msra.mxu1 %v2763_v15  ;;  %v2771_v38 = vld [vmem:[#allocation2 + $0x58] sm:$0xff]  ;;  %v2776_v40 = vld [vmem:[#allocation2 + $0x80] sm:$0xff]  ;;  %v2798_v59 = vld [vmem:[#allocation2 + $0x130] sm:$0xff] }
 0x261   :  { %2947 = vmatprep.subr.bf16.mxu1 %v2767_v16  ;;  %4484 = vmatpush3.bf16.msra.mxu0 %v2765_v11  ;;  %v2775_v60 = vld [vmem:[#allocation2 + $0x78] sm:$0xff]  ;;  %v2774_v15 = vld [vmem:[#allocation2 + $0x70] sm:$0xff]  ;;  %v2801_v52 = vld [vmem:[#allocation2 + $0x148] sm:$0xff] }
 0x262   :  { %4485 = vmatprep.subr.bf16.mxu0 %v2792_v47  ;;  %v2779_v16 = vld [vmem:[#allocation2 + $0x98] sm:$0xff]  ;;  %v2778_v53 = vld [vmem:[#allocation2 + $0x90] sm:$0xff]  ;;  %v2777_v48 = vld [vmem:[#allocation2 + $0x88] sm:$0xff] }
 0x263   :  { %v2804_v11 = vld [vmem:[#allocation2 + $0x160] sm:$0xff]  ;;  %v8110_v7 = vld [vmem:[#allocation36_spill] sm:$0xff]  ;;  %v7392_v41 = vld [vmem:[#allocation2 + $0x418] sm:$0xff] }
 0x264   :  { %2948 = vmatpush1.bf16.msra.mxu1 %v2766_v3  ;;  %v2782_v3 = vld [vmem:[#allocation2 + $0xb0] sm:$0xff]  ;;  %v2780_v47 = vld [vmem:[#allocation2 + $0xa0] sm:$0xff]  ;;  %v8113_v27 = vld [vmem:[#allocation48_spill] sm:$0xff] }
 0x265   :  { %2949 = vmatprep.subr.bf16.mxu1 %v2770_v51  ;;  %4486 = vmatpush3.bf16.msra.mxu0 %v2768_v25  ;;  %v2781_v51 = vld [vmem:[#allocation2 + $0xa8] sm:$0xff]  ;;  %v2807_v25 = vld [vmem:[#allocation2 + $0x178] sm:$0xff]  ;;  %v2844_v42 = vld [vmem:[#allocation2 + $0x2a0] sm:$0xff] }
 0x266   :  { %4487 = vmatprep.subr.bf16.mxu0 %v2795_v18  ;;  %v2783_v18 = vld [vmem:[#allocation2 + $0xb8] sm:$0xff]  ;;  %v2848_v61 = vld [vmem:[#allocation2 + $0x2c0] sm:$0xff] }
 0x267   :  { %v2851_v13 = vld [vmem:[#allocation2 + $0x2d8] sm:$0xff] }
 0x268   :  { %2950 = vmatpush1.bf16.msra.mxu1 %v2769_v55  ;;  %v2785_v55 = vld [vmem:[#allocation2 + $0xc8] sm:$0xff] }
 0x269   :  { %2951 = vmatprep.subr.bf16.mxu1 %v2773_v20  ;;  %4488 = vmatpush3.bf16.msra.mxu0 %v2771_v38  ;;  %v2784_v20 = vld [vmem:[#allocation2 + $0xc0] sm:$0xff]  ;;  %v2834_v38 = vld [vmem:[#allocation2 + $0x250] sm:$0xff] }
 0x26a   :  { %4489 = vmatprep.subr.bf16.mxu0 %v2798_v59  ;;  %v8060_v59 = vmax.f32 %v6557_v21, %v6892_v56  ;;  %v2790_v21 = vld [vmem:[#allocation2 + $0xf0] sm:$0xff] }
 0x26b   :  { %v2794_v56 = vld [vmem:[#allocation2 + $0x110] sm:$0xff] }
 0x26c   :  { %2952 = vmatpush1.bf16.msra.mxu1 %v2772_v39  ;;  %v2788_v39 = vld [vmem:[#allocation2 + $0xe0] sm:$0xff] }
 0x26d   :  { %2953 = vmatprep.subr.bf16.mxu1 %v2776_v40  ;;  %4490 = vmatpush3.bf16.msra.mxu0 %v2774_v15  ;;  %v8059_v40 = vmax.f32 %v6549_v58, %v6871_v14  ;;  %v2787_v15 = vld [vmem:[#allocation2 + $0xd8] sm:$0xff]  ;;  %v2813_v14 = vld [vmem:[#allocation2 + $0x1a8] sm:$0xff] }
 0x26e   :  { %4491 = vmatprep.subr.bf16.mxu0 %v2801_v52  ;;  %v2791_v52 = vld [vmem:[#allocation2 + $0xf8] sm:$0xff] }
 0x270   :  { %2954 = vmatpush1.bf16.msra.mxu1 %v2775_v60  ;;  %v7204_v60 = vpack.c.bf16 %v8060_v59, %v8059_v40  ;;  %v8071_v40 = vld [vmem:[#allocation37_spill] sm:$0xff]  ;;  %v2799_v59 = vld [vmem:[#allocation2 + $0x138] sm:$0xff] }
 0x271   :  { %2955 = vmatprep.subr.bf16.mxu1 %v2779_v16  ;;  %4492 = vmatpush3.bf16.msra.mxu0 %v2777_v48  ;;  %v2810_v16 = vld [vmem:[#allocation2 + $0x190] sm:$0xff]  ;;  %v8061_v48 = vmax.f32 %v6594_v50, %v6921_v17  ;;  %v8063_v50 = vmax.f32 %v6589_v46, %v6925_v44  ;;  %v2819_v44 = vld [vmem:[#allocation2 + $0x1d8] sm:$0xff] }
 0x272   :  { %4493 = vmatprep.subr.bf16.mxu0 %v2804_v11  ;;  %v2840_v11 = vld [vmem:[#allocation2 + $0x280] sm:$0xff] }
 0x274   :  { %2956 = vmatpush1.bf16.msra.mxu1 %v2778_v53  ;;  %v2837_v53 = vld [vmem:[#allocation2 + $0x268] sm:$0xff] }
 0x275   :  { %2957 = vmatprep.subr.bf16.mxu1 %v2782_v3  ;;  %4494 = vmatpush3.bf16.msra.mxu0 %v2780_v47  ;;  %v8062_v3 = vmax.f32 %v6615_v43, %v6945_v23  ;;  %v8064_v43 = vmax.f32 %v6602_v6, %v6949_v45  ;;  %v2793_v23 = vld [vmem:[#allocation2 + $0x108] sm:$0xff]  ;;  %v2796_v6 = vld [vmem:[#allocation2 + $0x120] sm:$0xff] }
 0x276   :  { %4495 = vmatprep.subr.bf16.mxu0 %v2807_v25  ;;  %v2797_v47 = vld [vmem:[#allocation2 + $0x128] sm:$0xff]  ;;  %v8065_v25 = vmax.f32 %v6658_v29, %v6978_v1  ;;  %v2800_v45 = vld [vmem:[#allocation2 + $0x140] sm:$0xff]  ;;  %v8070_v1 = vld [vmem:[#allocation22_spill] sm:$0xff] }
 0x277   :  { %v7212_v58 = vpack.c.bf16 %v8062_v3, %v8061_v48  ;;  %v7222_v17 = vpack.c.bf16 %v8064_v43, %v8063_v50  ;;  %v8074_v48 = vld [vmem:[#allocation38_spill] sm:$0xff]  ;;  %v2802_v50 = vld [vmem:[#allocation2 + $0x150] sm:$0xff]  ;;  %v2825_v43 = vld [vmem:[#allocation2 + $0x208] sm:$0xff] }
 0x278   :  { %2958 = vmatpush1.bf16.msra.mxu1 %v2781_v51  ;;  %v2816_v51 = vld [vmem:[#allocation2 + $0x1c0] sm:$0xff] }
 0x279   :  { %2959 = vmatprep.subr.bf16.mxu1 %v2785_v55  ;;  %4496 = vmatpush3.bf16.msra.mxu0 %v2783_v18  ;;  %v2843_v55 = vld [vmem:[#allocation2 + $0x298] sm:$0xff]  ;;  %v2846_v18 = vld [vmem:[#allocation2 + $0x2b0] sm:$0xff] }
 0x27a   :  { %4521 = vmatprep.subr.bf16.mxu0 %v2834_v38  ;;  %v8068_v38 = vld [vmem:[#allocation46_spill] sm:$0xff] }
 0x27c   :  { %2960 = vmatpush1.bf16.msra.mxu1 %v2784_v20  ;;  %3195 = vmatmul.mubr.bf16.vlgmr.msra.gmra.mrb[96].mxu0 %v7204_v60  ;;  %v8066_v20 = vmax.f32 %v8018_v24, %v6999_v34  ;;  %v8072_v34 = vmax.f32 %v8070_v1, %v8071_v40  ;;  %v8085_v1 = vmax.f32 %v8045_v30, %v7097_v57  ;;  %v8087_v57 = vld [vmem:[#allocation12_spill] sm:$0xff]  ;;  %v8088_v30 = vld [vmem:[#allocation41_spill] sm:$0xff] }
 0x27d   :  { %2961 = vmatprep.subr.bf16.mxu1 %v2788_v39  ;;  %4522 = vmatpush3.bf16.msra.mxu0 %v2810_v16  ;;  %v8067_v39 = vld [vmem:[#allocation20_spill] sm:$0xff]  ;;  %v2803_v16 = vld [vmem:[#allocation2 + $0x158] sm:$0xff]  ;;  %v8086_v40 = vmax.f32 %v8047_v5, %v7104_v31 }
 0x27e   :  { %4523 = vmatprep.subr.bf16.mxu0 %v2837_v53  ;;  %3202 = vmatprep.mubr.bf16.mxu0 %v7212_v58  ;;  %v7230_v46 = vpack.c.bf16 %v8066_v20, %v8065_v25  ;;  %v8069_v29 = vmax.f32 %v8067_v39, %v8068_v38  ;;  %v8073_v53 = vld [vmem:[#allocation28_spill] sm:$0xff]  ;;  %v8082_v20 = vld [vmem:[#allocation30_spill] sm:$0xff]  ;;  %v2828_v39 = vld [vmem:[#allocation2 + $0x220] sm:$0xff] }
 0x27f   :  { %v8075_v3 = vmax.f32 %v8073_v53, %v8074_v48  ;;  %v2809_v38 = vld [vmem:[#allocation2 + $0x188] sm:$0xff]  ;;  %v8089_v53 = vmax.f32 %v8087_v57, %v8088_v30  ;;  %v8090_v31 = vld [vmem:[#allocation14_spill] sm:$0xff]  ;;  %v7325_v57 = vpack.c.bf16 %v2754_v19, %v2749_v62  ;;  %v2830_v30 = vld [vmem:[#allocation2 + $0x230] sm:$0xff] }
 0x280   :  { %2962 = vmatpush1.bf16.msra.mxu1 %v2787_v15  ;;  %v7240_v24 = vpack.c.bf16 %v8072_v34, %v8069_v29  ;;  %v2822_v15 = vld [vmem:[#allocation2 + $0x1f0] sm:$0xff]  ;;  %v2855_v29 = vld [vmem:[#allocation2 + $0x2f8] sm:$0xff]  ;;  %v7266_v34 = vpack.c.bf16 %v8086_v40, %v8085_v1  ;;  %v2829_v19 = vld [vmem:[#allocation2 + $0x228] sm:$0xff] }
 0x281   :  { %2963 = vmatprep.subr.bf16.mxu1 %v2791_v52  ;;  %4524 = vmatpush3.bf16.msra.mxu0 %v2813_v14  ;;  %v2849_v52 = vld [vmem:[#allocation2 + $0x2c8] sm:$0xff]  ;;  %v8091_v5 = vld [vmem:[#allocation42_spill] sm:$0xff]  ;;  %v2870_v1 = vld [vmem:[#allocation2 + $0x370] sm:$0xff] }
 0x282   :  { %4525 = vmatprep.subr.bf16.mxu0 %v2840_v11  ;;  %v8077_v14 = vld [vmem:[#allocation40_spill] sm:$0xff]  ;;  %v8092_v48 = vmax.f32 %v8090_v31, %v8091_v5  ;;  %v8103_v40 = vld [vmem:[#allocation21_spill] sm:$0xff] }
 0x283   :  { %v8109_v31 = vld [vmem:[#allocation29_spill] sm:$0xff] }
 0x284   :  { %2964 = vmatpush1.bf16.msra.mxu1 %v2790_v21  ;;  %3203 = vmatmul.mubr.bf16.gmra.mrb[100].mxu0 %v7222_v17  ;;  %v8076_v21 = vld [vmem:[#allocation32_spill] sm:$0xff]  ;;  %v8111_v33 = vmax.f32 %v8109_v31, %v8110_v7  ;;  %v8112_v5 = vld [vmem:[#allocation33_spill] sm:$0xff]  ;;  %v2868_v31 = vld [vmem:[#allocation2 + $0x360] sm:$0xff] }
 0x285   :  { %2965 = vmatprep.subr.bf16.mxu1 %v2794_v56  ;;  %4526 = vmatpush3.bf16.msra.mxu0 %v2816_v51  ;;  %v8078_v56 = vmax.f32 %v8076_v21, %v8077_v14  ;;  %v2852_v51 = vld [vmem:[#allocation2 + $0x2e0] sm:$0xff]  ;;  %v2811_v21 = vld [vmem:[#allocation2 + $0x198] sm:$0xff]  ;;  %v8114_v62 = vmax.f32 %v8112_v5, %v8113_v27  ;;  %v2878_v5 = vld [vmem:[#allocation2 + $0x3b0] sm:$0xff] }
 0x286   :  { %4527 = vmatprep.subr.bf16.mxu0 %v2843_v55  ;;  %3210 = vmatprep.mubr.bf16.mxu0 %v7230_v46  ;;  %v8080_v55 = vld [vmem:[#allocation24_spill] sm:$0xff]  ;;  %v2815_v14 = vld [vmem:[#allocation2 + $0x1b8] sm:$0xff]  ;;  %v2872_v7 = vld [vmem:[#allocation2 + $0x380] sm:$0xff] }
 0x287   :  { %v7248_v11 = vpack.c.bf16 %v8078_v56, %v8075_v3  ;;  %v7277_v3 = vpack.c.bf16 %v8092_v48, %v8089_v53  ;;  %v2861_v56 = vld [vmem:[#allocation2 + $0x328] sm:$0xff]  ;;  %v2876_v53 = vld [vmem:[#allocation2 + $0x3a0] sm:$0xff]  ;;  %v7336_v35 = vpack.c.bf16 %v8114_v62, %v8111_v33  ;;  %v2879_v48 = vld [vmem:[#allocation2 + $0x3b8] sm:$0xff] }
 0x288   :  { %2966 = vmatpush1.bf16.msra.mxu1 %v2793_v23  ;;  %v2806_v23 = vld [vmem:[#allocation2 + $0x170] sm:$0xff]  ;;  %v7438_v27 = vld [vmem:[#allocation2 + $0x3c0] sm:$0xff] }
 0x289   :  { %2967 = vmatprep.subr.bf16.mxu1 %v2797_v47  ;;  %4528 = vmatpush3.bf16.msra.mxu0 %v2819_v44  ;;  %v8079_v47 = vld [vmem:[#allocation27_spill] sm:$0xff]  ;;  %v2874_v33 = vld [vmem:[#allocation2 + $0x390] sm:$0xff] }
 0x28a   :  { %4529 = vmatprep.subr.bf16.mxu0 %v2846_v18  ;;  %v8081_v25 = vmax.f32 %v8079_v47, %v8080_v55  ;;  %v2805_v18 = vld [vmem:[#allocation2 + $0x168] sm:$0xff]  ;;  %v2864_v47 = vld [vmem:[#allocation2 + $0x340] sm:$0xff] }
 0x28b   :  { %v8095_v55 = vld [vmem:[#allocation16_spill] sm:$0xff]  ;;  %v7441_v62 = vld [vmem:[#allocation2 + $0x3e0] sm:$0xff] }
 0x28c   :  { %2968 = vmatpush1.bf16.msra.mxu1 %v2796_v6  ;;  %3211 = vmatmul.mubr.bf16.gmra.mrb[104].mxu0 %v7240_v24  ;;  %v8083_v6 = vld [vmem:[#allocation39_spill] sm:$0xff] }
 0x28d   :  { %2969 = vmatprep.subr.bf16.mxu1 %v2800_v45  ;;  %4530 = vmatpush3.bf16.msra.mxu0 %v2822_v15  ;;  %v8084_v44 = vmax.f32 %v8082_v20, %v8083_v6  ;;  %v2831_v15 = vld [vmem:[#allocation2 + $0x238] sm:$0xff]  ;;  %v2821_v6 = vld [vmem:[#allocation2 + $0x1e8] sm:$0xff] }
 0x28e   :  { %4531 = vmatprep.subr.bf16.mxu0 %v2849_v52  ;;  %3218 = vmatprep.mubr.bf16.mxu0 %v7248_v11  ;;  %v2858_v52 = vld [vmem:[#allocation2 + $0x310] sm:$0xff] }
 0x28f   :  { %v7258_v45 = vpack.c.bf16 %v8084_v44, %v8081_v25  ;;  %v8098_v25 = vld [vmem:[#allocation18_spill] sm:$0xff] }
 0x290   :  { %2970 = vmatpush1.bf16.msra.mxu1 %v2799_v59  ;;  %v2808_v59 = vld [vmem:[#allocation2 + $0x180] sm:$0xff]  ;;  %v2867_v44 = vld [vmem:[#allocation2 + $0x358] sm:$0xff] }
 0x291   :  { %2971 = vmatprep.subr.bf16.mxu1 %v2803_v16  ;;  %4532 = vmatpush3.bf16.msra.mxu0 %v2825_v43  ;;  %v2812_v16 = vld [vmem:[#allocation2 + $0x1a0] sm:$0xff] }
 0x292   :  { %4533 = vmatprep.subr.bf16.mxu0 %v2852_v51  ;;  %v2818_v51 = vld [vmem:[#allocation2 + $0x1d0] sm:$0xff] }
 0x294   :  { %2972 = vmatpush1.bf16.msra.mxu1 %v2802_v50  ;;  %3219 = vmatmul.mubr.bf16.gmra.mrb[108].mxu0 %v7258_v45  ;;  %v8093_v50 = vmax.f32 %v8049_v63, %v7121_v49  ;;  %v8096_v49 = vld [vmem:[#allocation43_spill] sm:$0xff] }
 0x295   :  { %2973 = vmatprep.subr.bf16.mxu1 %v2806_v23  ;;  %4534 = vmatpush3.bf16.msra.mxu0 %v2828_v39  ;;  %v2814_v23 = vld [vmem:[#allocation2 + $0x1b0] sm:$0xff]  ;;  %v8097_v63 = vmax.f32 %v8095_v55, %v8096_v49  ;;  %v8102_v39 = vmax.f32 %v8054_v2, %v7156_v36  ;;  %v8107_v36 = vld [vmem:[#allocation35_spill] sm:$0xff] }
 0x296   :  { %4535 = vmatprep.subr.bf16.mxu0 %v2855_v29  ;;  %3259 = vmatprep.mubr.bf16.mxu0 %v7266_v34  ;;  %v2824_v29 = vld [vmem:[#allocation2 + $0x200] sm:$0xff]  ;;  %v8123_v55 = vld [vmem:[#allocation17_spill] sm:$0xff] }
 0x298   :  { %2974 = vmatpush1.bf16.msra.mxu1 %v2805_v18  ;;  %v8101_v18 = vmax.f32 %v8052_v12, %v7148_v22  ;;  %v8104_v22 = vld [vmem:[#allocation47_spill] sm:$0xff] }
 0x299   :  { %3016 = vmatprep.subr.bf16.mxu1 %v2809_v38  ;;  %4536 = vmatpush3.bf16.msra.mxu0 %v2831_v15  ;;  %v8105_v12 = vmax.f32 %v8103_v40, %v8104_v22  ;;  %v7400_v40 = vld [vmem:[#allocation2 + $0x448] sm:$0xff] }
 0x29a   :  { %4671 = vmatprep.subr.bf16.mxu0 %v2858_v52  ;;  %v7305_v38 = vpack.c.bf16 %v8102_v39, %v8101_v18  ;;  %v2841_v18 = vld [vmem:[#allocation2 + $0x288] sm:$0xff] }
 0x29b   :  { %2976 = vmatmul.mubr.bf16.vlgmr.msra.gmra.mrb[64].mxu1 %v7204_v60  ;;  %v8094_v60 = vmax.f32 %v8050_v8, %v7128_v10  ;;  %v8099_v10 = vld [vmem:[#allocation44_spill] sm:$0xff] }
 0x29c   :  { %3017 = vmatpush1.bf16.msra.mxu1 %v2808_v59  ;;  %2985 = vmatprep.mubr.bf16.mxu1 %v7212_v58  ;;  %v8100_v8 = vmax.f32 %v8098_v25, %v8099_v10  ;;  %v2817_v58 = vld [vmem:[#allocation2 + $0x1c8] sm:$0xff]  ;;  %v8106_v59 = vld [vmem:[#allocation25_spill] sm:$0xff] }
 0x29d   :  { %3018 = vmatprep.subr.bf16.mxu1 %v2812_v16  ;;  %v7285_v43 = vpack.c.bf16 %v8094_v60, %v8093_v50  ;;  %3260 = vmatmul.mubr.bf16.vlgmr.msra.gmra.mrb[112].mxu0 %v7277_v3  ;;  %v8108_v2 = vmax.f32 %v8106_v59, %v8107_v36  ;;  %v2827_v16 = vld [vmem:[#allocation2 + $0x218] sm:$0xff]  ;;  %v2845_v39 = vld [vmem:[#allocation2 + $0x2a8] sm:$0xff]  ;;  %v7404_v59 = vld [vmem:[#allocation2 + $0x460] sm:$0xff] }
 0x29e   :  { %4672 = vmatpush3.bf16.msra.mxu0 %v2858_v52  ;;  %v7296_v20 = vpack.c.bf16 %v8100_v8, %v8097_v63  ;;  %v2873_v52 = vld [vmem:[#allocation2 + $0x388] sm:$0xff]  ;;  %v8125_v63 = vld [vmem:[#allocation19_spill] sm:$0xff]  ;;  %v2835_v8 = vld [vmem:[#allocation2 + $0x258] sm:$0xff] }
 0x29f   :  { %4673 = vmatprep.subr.bf16.mxu0 %v2861_v56  ;;  %3267 = vmatprep.mubr.bf16.mxu0 %v7285_v43  ;;  %v7316_v15 = vpack.c.bf16 %v8108_v2, %v8105_v12  ;;  %v8126_v25 = vmax.f32 %v6991_v28, %v8125_v63  ;;  %v2842_v28 = vld [vmem:[#allocation2 + $0x290] sm:$0xff]  ;;  %v2853_v22 = vld [vmem:[#allocation2 + $0x2e8] sm:$0xff]  ;;  %v2856_v36 = vld [vmem:[#allocation2 + $0x300] sm:$0xff] }
 0x2a0   :  { %3019 = vmatpush1.bf16.msra.mxu1 %v2811_v21  ;;  %v8115_v21 = vld [vmem:[#allocation49_spill] sm:$0xff]  ;;  %v2857_v12 = vld [vmem:[#allocation2 + $0x308] sm:$0xff]  ;;  %v2860_v2 = vld [vmem:[#allocation2 + $0x320] sm:$0xff] }
 0x2a1   :  { %3020 = vmatprep.subr.bf16.mxu1 %v2815_v14  ;;  %v8116_v14 = vmax.f32 %v6862_v32, %v8115_v21  ;;  %v7464_v21 = vld [vmem:[#allocation2 + $0x408] sm:$0xff] }
 0x2a2   :  { %4674 = vmatpush3.bf16.msra.mxu0 %v2861_v56  ;;  %v8117_v56 = vld [vmem:[#allocation13_spill] sm:$0xff] }
 0x2a3   :  { %2986 = vmatmul.mubr.bf16.gmra.mrb[68].mxu1 %v7222_v17  ;;  %4675 = vmatprep.subr.bf16.mxu0 %v2864_v47  ;;  %v2820_v17 = vld [vmem:[#allocation2 + $0x1e0] sm:$0xff]  ;;  %v8118_v50 = vmax.f32 %v6880_v4, %v8117_v56  ;;  %v8121_v4 = vmax.f32 %v6937_v54, %v7134_v26  ;;  %v2838_v54 = vld [vmem:[#allocation2 + $0x270] sm:$0xff]  ;;  %v7373_v26 = vld [vmem:[#allocation2 + $0x3e8] sm:$0xff] }
 0x2a4   :  { %3021 = vmatpush1.bf16.msra.mxu1 %v2814_v23  ;;  %2995 = vmatprep.mubr.bf16.mxu1 %v7230_v46  ;;  %v2823_v46 = vld [vmem:[#allocation2 + $0x1f8] sm:$0xff]  ;;  %v2836_v23 = vld [vmem:[#allocation2 + $0x260] sm:$0xff] }
 0x2a5   :  { %3022 = vmatprep.subr.bf16.mxu1 %v2818_v51  ;;  %3268 = vmatmul.mubr.bf16.gmra.mrb[116].mxu0 %v7296_v20  ;;  %v7345_v60 = vpack.c.bf16 %v8118_v50, %v8116_v14  ;;  %v8119_v51 = vld [vmem:[#allocation15_spill] sm:$0xff]  ;;  %v7466_v14 = vld [vmem:[#allocation2 + $0x428] sm:$0xff] }
 0x2a6   :  { %4676 = vmatpush3.bf16.msra.mxu0 %v2864_v47  ;;  %3275 = vmatprep.mubr.bf16.mxu0 %v7305_v38  ;;  %v8120_v32 = vmax.f32 %v6916_v37, %v8119_v51  ;;  %v2839_v37 = vld [vmem:[#allocation2 + $0x278] sm:$0xff]  ;;  %v7470_v56 = vld [vmem:[#allocation2 + $0x420] sm:$0xff]  ;;  %v7486_v51 = vld [vmem:[#allocation2 + $0x470] sm:$0xff] }
 0x2a7   :  { %4677 = vmatprep.subr.bf16.mxu0 %v2867_v44  ;;  %v7472_v50 = vld [vmem:[#allocation2 + $0x440] sm:$0xff] }
 0x2a8   :  { %3023 = vmatpush1.bf16.msra.mxu1 %v2817_v58  ;;  %v7356_v47 = vpack.c.bf16 %v8121_v4, %v8120_v32  ;;  %v7936_v58 = vmov 0.0   ;;  %v7492_v32 = vld [vmem:[#allocation2 + $0x468] sm:$0xff]  ;;  %v7517_v4 = vld [vmem:[%s7875_s3] ss:$2 sm:$0x7] }
 0x2a9   :  { %3024 = vmatprep.subr.bf16.mxu1 %v2821_v6  ;;  %v7367_v6 = vld [vmem:[#allocation2 + $0x3d0] sm:$0xff] }
 0x2aa   :  { %4678 = vmatpush3.bf16.msra.mxu0 %v2867_v44  ;;  %v7381_v44 = vpack.c.bf16 %v2755_v0, %v2750_v9  ;;  %v2847_v9 = vld [vmem:[#allocation2 + $0x2b8] sm:$0xff]  ;;  %v7396_v0 = vld [vmem:[#allocation2 + $0x430] sm:$0xff] }
 0x2ab   :  { %2996 = vmatmul.mubr.bf16.gmra.mrb[72].mxu1 %v7240_v24  ;;  %4679 = vmatprep.subr.bf16.mxu0 %v2870_v1  ;;  %v2826_v24 = vld [vmem:[#allocation2 + $0x210] sm:$0xff] }
 0x2ac   :  { %3025 = vmatpush1.bf16.msra.mxu1 %v2820_v17  ;;  %3005 = vmatprep.mubr.bf16.mxu1 %v7248_v11  ;;  %v2833_v11 = vld [vmem:[#allocation2 + $0x248] sm:$0xff]  ;;  %v7385_v17 = vld [vmem:[#allocation2 + $0x400] sm:$0xff] }
 0x2ad   :  { %3026 = vmatprep.subr.bf16.mxu1 %v2824_v29  ;;  %3276 = vmatmul.mubr.bf16.gmra.mrb[120].mxu0 %v7316_v15  ;;  %v2850_v29 = vld [vmem:[#allocation2 + $0x2d0] sm:$0xff] }
 0x2ae   :  { %4680 = vmatpush3.bf16.msra.mxu0 %v2870_v1  ;;  %3283 = vmatprep.mubr.bf16.mxu0 %v7325_v57  ;;  %v2854_v1 = vld [vmem:[#allocation2 + $0x2f0] sm:$0xff] }
 0x2af   :  { %4681 = vmatprep.subr.bf16.mxu0 %v2873_v52 }
 0x2b0   :  { %3027 = vmatpush1.bf16.msra.mxu1 %v2823_v46  ;;  %v7408_v46 = vld [vmem:[#allocation2 + $0x478] sm:$0xff] }
 0x2b1   :  { %3028 = vmatprep.subr.bf16.mxu1 %v2827_v16  ;;  %v2859_v16 = vld [vmem:[#allocation2 + $0x318] sm:$0xff] }
 0x2b2   :  { %4682 = vmatpush3.bf16.msra.mxu0 %v2873_v52  ;;  %v2863_v52 = vld [vmem:[#allocation2 + $0x338] sm:$0xff] }
 0x2b3   :  { %3006 = vmatmul.mubr.bf16.gmra.mrb[76].mxu1 %v7258_v45  ;;  %4683 = vmatprep.subr.bf16.mxu0 %v2876_v53  ;;  %v2832_v45 = vld [vmem:[#allocation2 + $0x240] sm:$0xff] }
 0x2b4   :  { %3029 = vmatpush1.bf16.msra.mxu1 %v2826_v24  ;;  %3048 = vmatprep.mubr.bf16.mxu1 %v7266_v34  ;;  %v8122_v34 = vld [vmem:[#allocation45_spill] sm:$0xff]  ;;  %v8127_v24 = vmov 0  }
 0x2b5   :  { %3030 = vmatprep.subr.bf16.mxu1 %v2830_v30  ;;  %3284 = vmatmul.mubr.bf16.gmra.mrb[124].mxu0 %v7336_v35  ;;  %v8124_v49 = vmax.f32 %v8122_v34, %v8123_v55  ;;  %v2862_v30 = vld [vmem:[#allocation2 + $0x330] sm:$0xff]  ;;  %v8128_v55 = vld [vmem:[#allocation11_spill] sm:$0xff] }
 0x2b6   :  { %4684 = vmatpush3.bf16.msra.mxu0 %v2876_v53  ;;  %4687 = vmatprep.mubr.bf16.mxu0 %v7345_v60  ;;  %v2866_v53 = vld [vmem:[#allocation2 + $0x350] sm:$0xff] }
 0x2b7   :  { %4685 = vmatprep.subr.bf16.mxu0 %v2879_v48  ;;  %v7364_v10 = vpack.c.bf16 %v8126_v25, %v8124_v49  ;;  %v2939_v49 = vrot.slane %v7517_v4, %v8128_v55 }
 0x2b8   :  { %3031 = vmatpush1.bf16.msra.mxu1 %v2829_v19  ;;  %v7451_v19 = vld [vmem:[#allocation2 + $0x3f8] sm:$0xff] }
 0x2b9   :  { %3032 = vmatprep.subr.bf16.mxu1 %v2833_v11  ;;  %v7456_v11 = vld [vmem:[#allocation2 + $0x3f0] sm:$0xff] }
 0x2ba   :  { %4686 = vmatpush3.bf16.msra.mxu0 %v2879_v48  ;;  %v7458_v48 = vld [vmem:[#allocation2 + $0x410] sm:$0xff] }
 0x2bb   :  { %4695 = vmatprep.subr.bf16.mxu0 %v7936_v58 }
 0x2bc   :  { %3033 = vmatpush1.bf16.msra.mxu1 %v2832_v45  ;;  %v7480_v45 = vld [vmem:[#allocation2 + $0x458] sm:$0xff] }
 0x2bd   :  { %3034 = vmatprep.subr.bf16.mxu1 %v2836_v23  ;;  %4688 = vmatmul.mubr.bf16.vlgmr.msra.gmra.mrb[128].mxu0 %v7356_v47  ;;  %v7484_v23 = vld [vmem:[#allocation2 + $0x450] sm:$0xff] }
 0x2be   :  { %4691 = vmatprep.mubr.bf16.mxu0 %v7364_v10  ;;  %4696 = vmatpush3.bf16.msra.mxu0 %v7367_v6 }
 0x2bf   :  { %4697 = vmatprep.subr.bf16.mxu0 %v7936_v58 }
 0x2c0   :  { %3035 = vmatpush1.bf16.msra.mxu1 %v2835_v8 }
 0x2c1   :  { %3036 = vmatprep.subr.bf16.mxu1 %v2839_v37 }
 0x2c2   :  { %4698 = vmatpush3.bf16.msra.mxu0 %v7373_v26 }
 0x2c3   :  { %4699 = vmatprep.subr.bf16.mxu0 %v7936_v58 }
 0x2c4   :  { %3037 = vmatpush1.bf16.msra.mxu1 %v2838_v54 }
 0x2c5   :  { %3038 = vmatprep.subr.bf16.mxu1 %v2842_v28  ;;  %4692 = vmatmul.mubr.bf16.gmra.mrb[132].mxu0 %v7381_v44 }
 0x2c6   :  { %4711 = vmatprep.mubr.msk.bf16.mxu0 %vm5203_vm0, %v7936_v58  ;;  %4700 = vmatpush3.bf16.msra.mxu0 %v7385_v17 }
 0x2c7   :  { %4701 = vmatprep.subr.bf16.mxu0 %v7936_v58 }
 0x2c8   :  { %3039 = vmatpush1.bf16.msra.mxu1 %v2841_v18 }
 0x2c9   :  { %3040 = vmatprep.subr.bf16.mxu1 %v2845_v39 }
 0x2ca   :  { %4702 = vmatpush3.bf16.msra.mxu0 %v7392_v41 }
 0x2cb   :  { %4703 = vmatprep.subr.bf16.mxu0 %v7936_v58 }
 0x2cc   :  { %3041 = vmatpush1.bf16.msra.mxu1 %v2844_v42 }
 0x2cd   :  { %3042 = vmatprep.subr.bf16.mxu1 %v2848_v61 }
 0x2ce   :  { %4704 = vmatpush3.bf16.msra.mxu0 %v7396_v0 }
 0x2cf   :  { %4705 = vmatprep.subr.bf16.mxu0 %v7936_v58 }
 0x2d0   :  { %3043 = vmatpush1.bf16.msra.mxu1 %v2847_v9 }
 0x2d1   :  { %3044 = vmatprep.subr.bf16.mxu1 %v2851_v13 }
 0x2d2   :  { %4706 = vmatpush3.bf16.msra.mxu0 %v7400_v40 }
 0x2d3   :  { %4707 = vmatprep.subr.bf16.mxu0 %v7936_v58 }
 0x2d4   :  { %3045 = vmatpush1.bf16.msra.mxu1 %v2850_v29 }
 0x2d5   :  { %3046 = vmatprep.subr.bf16.mxu1 %v2854_v1 }
 0x2d6   :  { %4708 = vmatpush3.bf16.msra.mxu0 %v7404_v59 }
 0x2d7   :  { %4709 = vmatprep.subr.bf16.mxu0 %v7936_v58 }
 0x2d8   :  { %3047 = vmatpush1.bf16.msra.mxu1 %v2853_v22 }
 0x2d9   :  { %3089 = vmatprep.subr.bf16.mxu1 %v2857_v12 }
 0x2da   :  { %4710 = vmatpush3.bf16.msra.mxu0 %v7408_v46 }
 0x2db   :  { %3049 = vmatmul.mubr.bf16.vlgmr.msra.gmra.mrb[64].mxu1 %v7277_v3  ;;  %4715 = vmatprep.subr.bf16.mxu0 %v7936_v58  ;;  %v2865_v3 = vld [vmem:[#allocation2 + $0x348] sm:$0xff] }
 0x2dc   :  { %3090 = vmatpush1.bf16.msra.mxu1 %v2856_v36  ;;  %3058 = vmatprep.mubr.bf16.mxu1 %v7285_v43  ;;  %v2869_v43 = vld [vmem:[#allocation2 + $0x368] sm:$0xff] }
 0x2dd   :  { %3091 = vmatprep.subr.bf16.mxu1 %v2860_v2  ;;  %4712 = vmatmul.mubr.bf16.vlgmr.msra.gmra.mrb[136].mxu0 %v8127_v24 }
 0x2de   :  { %4716 = vmatpush3.bf16.msra.mxu0 %v7367_v6  ;;  %4731 = vmatprep.mubr.msk.bf16.mxu0 %vm5203_vm0, %v7936_v58 }
 0x2df   :  { %4717 = vmatprep.subr.bf16.mxu0 %v7936_v58 }
 0x2e0   :  { %3092 = vmatpush1.bf16.msra.mxu1 %v2859_v16 }
 0x2e1   :  { %3093 = vmatprep.subr.bf16.mxu1 %v2863_v52 }
 0x2e2   :  { %4718 = vmatpush3.bf16.msra.mxu0 %v7373_v26 }
 0x2e3   :  { %3059 = vmatmul.mubr.bf16.gmra.mrb[68].mxu1 %v7296_v20  ;;  %4719 = vmatprep.subr.bf16.mxu0 %v7936_v58  ;;  %v2871_v20 = vld [vmem:[#allocation2 + $0x378] sm:$0xff] }
 0x2e4   :  { %3094 = vmatpush1.bf16.msra.mxu1 %v2862_v30  ;;  %3068 = vmatprep.mubr.bf16.mxu1 %v7305_v38  ;;  %v2875_v38 = vld [vmem:[#allocation2 + $0x398] sm:$0xff] }
 0x2e5   :  { %3095 = vmatprep.subr.bf16.mxu1 %v2866_v53 }
 0x2e6   :  { %4720 = vmatpush3.bf16.msra.mxu0 %v7385_v17 }
 0x2e7   :  { %4721 = vmatprep.subr.bf16.mxu0 %v7936_v58 }
 0x2e8   :  { %3096 = vmatpush1.bf16.msra.mxu1 %v2865_v3 }
 0x2e9   :  { %3097 = vmatprep.subr.bf16.mxu1 %v2869_v43 }
 0x2ea   :  { %4722 = vmatpush3.bf16.msra.mxu0 %v7392_v41 }
 0x2eb   :  { %3069 = vmatmul.mubr.bf16.gmra.mrb[72].mxu1 %v7316_v15  ;;  %4723 = vmatprep.subr.bf16.mxu0 %v7936_v58  ;;  %v2877_v15 = vld [vmem:[#allocation2 + $0x3a8] sm:$0xff] }
 0x2ec   :  { %3098 = vmatpush1.bf16.msra.mxu1 %v2868_v31  ;;  %3078 = vmatprep.mubr.bf16.mxu1 %v7325_v57  ;;  %v7434_v57 = vld [vmem:[#allocation2 + $0x3c8] sm:$0xff] }
 0x2ed   :  { %3099 = vmatprep.subr.bf16.mxu1 %v2872_v7 }
 0x2ee   :  { %4724 = vmatpush3.bf16.msra.mxu0 %v7396_v0 }
 0x2ef   :  { %4725 = vmatprep.subr.bf16.mxu0 %v7936_v58 }
 0x2f0   :  { %3100 = vmatpush1.bf16.msra.mxu1 %v2871_v20 }
 0x2f1   :  { %3101 = vmatprep.subr.bf16.mxu1 %v2875_v38 }
 0x2f2   :  { %4726 = vmatpush3.bf16.msra.mxu0 %v7400_v40 }
 0x2f3   :  { %3079 = vmatmul.mubr.bf16.gmra.mrb[76].mxu1 %v7336_v35  ;;  %4727 = vmatprep.subr.bf16.mxu0 %v7936_v58  ;;  %v7448_v35 = vld [vmem:[#allocation2 + $0x3d8] sm:$0xff] }
 0x2f4   :  { %3102 = vmatpush1.bf16.msra.mxu1 %v2874_v33  ;;  %3121 = vmatprep.mubr.bf16.mxu1 %v8127_v24 }
 0x2f5   :  { %3103 = vmatprep.subr.bf16.mxu1 %v2878_v5 }
 0x2f6   :  { %4728 = vmatpush3.bf16.msra.mxu0 %v7404_v59 }
 0x2f7   :  { %4729 = vmatprep.subr.bf16.mxu0 %v7936_v58 }
 0x2f8   :  { %3104 = vmatpush1.bf16.msra.mxu1 %v2877_v15 }
 0x2f9   :  { %3373 = vmatprep.subr.bf16.mxu1 %v7434_v57 }
 0x2fa   :  { %4730 = vmatpush3.bf16.msra.mxu0 %v7408_v46 }
 0x2fb   :  { %3122 = vmatmul.mubr.bf16.vlgmr.msra.gmra.mrb[64].mxu1 %v7345_v60  ;;  %4735 = vmatprep.subr.bf16.mxu0 %v7936_v58  ;;  %v7478_v60 = vld [vmem:[#allocation2 + $0x438] sm:$0xff] }
 0x2fc   :  { %3374 = vmatpush1.bf16.msra.mxu1 %v7438_v27  ;;  %3131 = vmatprep.mubr.bf16.mxu1 %v8127_v24 }
 0x2fd   :  { %3375 = vmatprep.subr.bf16.mxu1 %v7441_v62 }
 0x300   :  { %3376 = vmatpush1.bf16.msra.mxu1 %v7448_v35 }
 0x301   :  { %3377 = vmatprep.subr.bf16.mxu1 %v7451_v19 }
 0x303   :  { %3132 = vmatmul.mubr.bf16.gmra.mrb[68].mxu1 %v7356_v47 }
 0x304   :  { %3378 = vmatpush1.bf16.msra.mxu1 %v7456_v11  ;;  %3141 = vmatprep.mubr.bf16.mxu1 %v8127_v24 }
 0x305   :  { %3379 = vmatprep.subr.bf16.mxu1 %v7458_v48 }
 0x308   :  { %3380 = vmatpush1.bf16.msra.mxu1 %v7464_v21 }
 0x309   :  { %3381 = vmatprep.subr.bf16.mxu1 %v7466_v14 }
 0x30b   :  { %3142 = vmatmul.mubr.bf16.gmra.mrb[72].mxu1 %v7364_v10 }
 0x30c   :  { %3382 = vmatpush1.bf16.msra.mxu1 %v7470_v56  ;;  %3151 = vmatprep.mubr.bf16.mxu1 %v8127_v24 }
 0x30d   :  { %3383 = vmatprep.subr.bf16.mxu1 %v7472_v50 }
 0x310   :  { %3384 = vmatpush1.bf16.msra.mxu1 %v7478_v60 }
 0x311   :  { %3385 = vmatprep.subr.bf16.mxu1 %v7480_v45 }
 0x313   :  { %3152 = vmatmul.mubr.bf16.gmra.mrb[76].mxu1 %v7381_v44 }
 0x314   :  { %3386 = vmatpush1.bf16.msra.mxu1 %v7484_v23  ;;  %3405 = vmatprep.mubr.bf16.mxu1 %v8127_v24 }
 0x315   :  { %3387 = vmatprep.subr.bf16.mxu1 %v7486_v51 }
 0x318   :  { %3388 = vmatpush1.bf16.msra.mxu1 %v7492_v32 }
 0x319   :  { %3472 = vmatprep.subr.bf16.mxu1 %v7434_v57 }
 0x31b   :  { %3406 = vmatmul.mubr.bf16.vlgmr.msra.gmra.mrb[80].mxu1 %v8127_v24 }
 0x31c   :  { %3473 = vmatpush1.bf16.msra.mxu1 %v7438_v27  ;;  %3504 = vmatprep.mubr.bf16.mxu1 %v8127_v24 }
 0x31d   :  { %3474 = vmatprep.subr.bf16.mxu1 %v7441_v62 }
 0x320   :  { %3475 = vmatpush1.bf16.msra.mxu1 %v7448_v35 }
 0x321   :  { %3476 = vmatprep.subr.bf16.mxu1 %v7451_v19 }
 0x324   :  { %3477 = vmatpush1.bf16.msra.mxu1 %v7456_v11 }
 0x325   :  { %3478 = vmatprep.subr.bf16.mxu1 %v7458_v48 }
 0x328   :  { %3479 = vmatpush1.bf16.msra.mxu1 %v7464_v21 }
 0x329   :  { %3480 = vmatprep.subr.bf16.mxu1 %v7466_v14 }
 0x32c   :  { %3481 = vmatpush1.bf16.msra.mxu1 %v7470_v56 }
 0x32d   :  { %3482 = vmatprep.subr.bf16.mxu1 %v7472_v50 }
 0x330   :  { %3483 = vmatpush1.bf16.msra.mxu1 %v7478_v60 }
 0x331   :  { %3484 = vmatprep.subr.bf16.mxu1 %v7480_v45 }
 0x334   :  { %3485 = vmatpush1.bf16.msra.mxu1 %v7484_v23 }
 0x335   :  { %3486 = vmatprep.subr.bf16.mxu1 %v7486_v51 }
 0x338   :  { %3487 = vmatpush1.bf16.msra.mxu1 %v7492_v32 }
 0x339   :  { %3571 = vmatprep.subr.bf16.mxu1 %v7434_v57 }
 0x34f   :  { %v4497_v47 = vpop.f32.mrb[96].mxu0 }
 0x350   :  { %v4498_v34 = vpop.f32.mrb[97].mxu0 }
 0x351   :  { %v4499_v63 = vadd.f32 %v4498_v34, %v4497_v47  ;;  %v4500_v25 = vpop.f32.mrb[98].mxu0 }
 0x352   :  { %v4501_v10 = vpop.f32.mrb[99].mxu0 }
 0x353   :  { %v4502_v8 = vadd.f32 %v4501_v10, %v4500_v25  ;;  %v3197_v38 = vadd.f32 %v4499_v63, %v2939_v49 }
 0x355   :  { %v3200_v37 = vadd.f32 %v4502_v8, %v2939_v49 }
 0x357   :  { %v4503_v54 = vpop.f32.mrb[100].mxu0 }
 0x358   :  { %v4504_v28 = vpop.f32.mrb[101].mxu0 }
 0x359   :  { %v4505_v44 = vadd.f32 %v4504_v28, %v4503_v54  ;;  %v4506_v18 = vpop.f32.mrb[102].mxu0 }
 0x35a   :  { %v4507_v39 = vpop.f32.mrb[103].mxu0 }
 0x35b   :  { %v3205_v42 = vadd.f32 %v4505_v44, %v2939_v49  ;;  %v4508_v61 = vadd.f32 %v4507_v39, %v4506_v18 }
 0x35d   :  { %v3208_v9 = vadd.f32 %v4508_v61, %v2939_v49 }
 0x35f   :  { %v4509_v13 = vpop.f32.mrb[104].mxu0 }
 0x360   :  { %v4510_v29 = vpop.f32.mrb[105].mxu0 }
 0x361   :  { %v4511_v1 = vadd.f32 %v4510_v29, %v4509_v13  ;;  %v4512_v22 = vpop.f32.mrb[106].mxu0 }
 0x362   :  { %v4513_v12 = vpop.f32.mrb[107].mxu0 }
 0x363   :  { %v3213_v36 = vadd.f32 %v4511_v1, %v2939_v49  ;;  %v4514_v2 = vadd.f32 %v4513_v12, %v4512_v22 }
 0x365   :  { %v3216_v16 = vadd.f32 %v4514_v2, %v2939_v49 }
 0x367   :  { %v4515_v52 = vpop.f32.mrb[108].mxu0 }
 0x368   :  { %v4516_v30 = vpop.f32.mrb[109].mxu0 }
 0x369   :  { %v4517_v53 = vadd.f32 %v4516_v30, %v4515_v52  ;;  %v4518_v3 = vpop.f32.mrb[110].mxu0 }
 0x36a   :  { %v4519_v43 = vpop.f32.mrb[111].mxu0 }
 0x36b   :  { %v3221_v31 = vadd.f32 %v4517_v53, %v2939_v49  ;;  %v4520_v7 = vadd.f32 %v4519_v43, %v4518_v3 }
 0x36d   :  { %v3224_v20 = vadd.f32 %v4520_v7, %v2939_v49 }
 0x370   :  { %v4537_v33 = vpop.f32.mrb[112].mxu0 }
 0x371   :  { %v4538_v5 = vpop.f32.mrb[113].mxu0 }
 0x372   :  { %v4539_v15 = vadd.f32 %v4538_v5, %v4537_v33  ;;  %v4540_v47 = vpop.f32.mrb[114].mxu0 }
 0x373   :  { %v4541_v34 = vpop.f32.mrb[115].mxu0 }
 0x374   :  { %v4542_v25 = vadd.f32 %v4541_v34, %v4540_v47  ;;  %v3262_v10 = vadd.f32 %v4539_v15, %v3197_v38 }
 0x376   :  { %v3265_v8 = vadd.f32 %v4542_v25, %v3200_v37 }
 0x378   :  { %v4543_v54 = vpop.f32.mrb[116].mxu0 }
 0x379   :  { %v4544_v28 = vpop.f32.mrb[117].mxu0 }
 0x37a   :  { %v4545_v44 = vadd.f32 %v4544_v28, %v4543_v54  ;;  %v4546_v18 = vpop.f32.mrb[118].mxu0 }
 0x37b   :  { %v4547_v39 = vpop.f32.mrb[119].mxu0 }
 0x37c   :  { %v4548_v61 = vadd.f32 %v4547_v39, %v4546_v18  ;;  %v3270_v13 = vadd.f32 %v4545_v44, %v3205_v42 }
 0x37e   :  { %v3273_v29 = vadd.f32 %v4548_v61, %v3208_v9 }
 0x380   :  { %v4549_v1 = vpop.f32.mrb[120].mxu0 }
 0x381   :  { %v4550_v22 = vpop.f32.mrb[121].mxu0 }
 0x382   :  { %v4551_v12 = vadd.f32 %v4550_v22, %v4549_v1  ;;  %v4552_v49 = vpop.f32.mrb[122].mxu0 }
 0x383   :  { %v4553_v63 = vpop.f32.mrb[123].mxu0 }
 0x384   :  { %v4554_v2 = vadd.f32 %v4553_v63, %v4552_v49  ;;  %v3278_v52 = vadd.f32 %v4551_v12, %v3213_v36  ;;  %v8132_v12 = vld [vmem:[#allocation9_spill] sm:$0xff]  ;;  %v8133_v63 = vld [vmem:[#allocation10_spill] sm:$0xff] }
 0x386   :  { %v3281_v30 = vadd.f32 %v4554_v2, %v3216_v16  ;;  %v2935_v2 = vrot.slane %v7517_v4, %v8133_v63 }
 0x388   :  { %v4555_v53 = vpop.f32.mrb[124].mxu0 }
 0x389   :  { %v4556_v3 = vpop.f32.mrb[125].mxu0 }
 0x38a   :  { %v4557_v43 = vadd.f32 %v4556_v3, %v4555_v53  ;;  %v4558_v37 = vpop.f32.mrb[126].mxu0 }
 0x38b   :  { %v4559_v7 = vpop.f32.mrb[127].mxu0 }
 0x38c   :  { %v4560_v38 = vadd.f32 %v4559_v7, %v4558_v37  ;;  %v3286_v33 = vadd.f32 %v4557_v43, %v3221_v31 }
 0x38e   :  { %v3289_v5 = vadd.f32 %v4560_v38, %v3224_v20 }
 0x390   :  { %v4689_v15 = vpop.f32.mrb[128].mxu0 }
 0x391   :  { %v7521_v47 = vadd.f32 %v4689_v15, %v3270_v13  ;;  %v3326_v42 = vpop.f32.mrb[129].mxu0 }
 0x392   :  { %v7523_v9 = vadd.f32 %v3326_v42, %v3262_v10  ;;  %v4690_v34 = vpop.f32.mrb[130].mxu0 }
 0x393   :  { %v7525_v25 = vadd.f32 %v4690_v34, %v3273_v29  ;;  %v3329_v54 = vpop.f32.mrb[131].mxu0 }
 0x394   :  { %v7527_v36 = vadd.f32 %v3329_v54, %v3265_v8  ;;  %v2931_v8 = vrot.slane %v7517_v4, %v8132_v12 }
 0x398   :  { %v4693_v16 = vpop.f32.mrb[132].mxu0 }
 0x399   :  { %v7529_v28 = vadd.f32 %v4693_v16, %v3286_v33  ;;  %v3342_v44 = vpop.f32.mrb[133].mxu0 }
 0x39a   :  { %v7531_v18 = vadd.f32 %v3342_v44, %v3278_v52  ;;  %v4694_v31 = vpop.f32.mrb[134].mxu0 }
 0x39b   :  { %8129 = vst [vmem:[#allocation23_spill] sm:$0xff] %v7529_v28  ;;  %v7533_v20 = vadd.f32 %v4694_v31, %v3289_v5  ;;  %v3345_v39 = vpop.f32.mrb[135].mxu0 }
 0x39c   :  { %v7535_v61 = vadd.f32 %v3345_v39, %v3281_v30 }
 0x39d   :  { %8130 = vst [vmem:[#allocation26_spill] sm:$0xff] %v7533_v20 }
 0x39e   :  { %8131 = vst [vmem:[#allocation31_spill] sm:$0xff] %v7535_v61 }
 0x3b0   :  { %v3448_v10 = vpop.f32.mrb[136].mxu0 }
 0x3b1   :  { %v4713_v13 = vpop.f32.mrb[137].mxu0 }
 0x3b2   :  { %v3451_v1 = vpop.f32.mrb[138].mxu0 }
 0x3b3   :  { %v4714_v29 = vpop.f32.mrb[139].mxu0 }
 0x3ce   :  { %v3123_v22 = vpop.f32.mrb[64].mxu1 }
 0x3cf   :  { %v3125_v49 = vpop.f32.mrb[65].mxu1 }
 0x3d0   :  { %v3127_v52 = vpop.f32.mrb[66].mxu1  ;;  %v4946_v20 = vadd.f32 %v3125_v49, %v2935_v2 }
 0x3d1   :  { %v7541_v53 = vadd.f32 %v3127_v52, %v2931_v8  ;;  %v3129_v3 = vpop.f32.mrb[67].mxu1 }
 0x3d2   :  { %v7543_v43 = vadd.f32 %v3129_v3, %v2935_v2 }
 0x3d6   :  { %v3133_v30 = vpop.f32.mrb[68].mxu1 }
 0x3d7   :  { %v7545_v37 = vadd.f32 %v3133_v30, %v2931_v8  ;;  %v3135_v7 = vpop.f32.mrb[69].mxu1 }
 0x3d8   :  { %v7547_v38 = vadd.f32 %v3135_v7, %v2935_v2  ;;  %v3137_v33 = vpop.f32.mrb[70].mxu1  ;;  %v4475_v7 = vld [vmem:[%s7875_s3 + $0x1] ss:$2 sm:$0x7] }
 0x3d9   :  { %v7549_v5 = vadd.f32 %v3137_v33, %v2931_v8  ;;  %v3139_v15 = vpop.f32.mrb[71].mxu1 }
 0x3da   :  { %v7551_v42 = vadd.f32 %v3139_v15, %v2935_v2 }
 0x3de   :  { %v3143_v34 = vpop.f32.mrb[72].mxu1 }
 0x3df   :  { %v7553_v4 = vadd.f32 %v3143_v34, %v2931_v8  ;;  %v3145_v54 = vpop.f32.mrb[73].mxu1 }
 0x3e0   :  { %v7555_v16 = vadd.f32 %v3145_v54, %v2935_v2  ;;  %v3147_v44 = vpop.f32.mrb[74].mxu1  ;;  %v7573_v54 = vrot.slane %v4475_v7, %v8132_v12  ;;  %v7581_v12 = vrot.slane %v4475_v7, %v8128_v55 }
 0x3e1   :  { %v7557_v31 = vadd.f32 %v3147_v44, %v2931_v8  ;;  %v3149_v39 = vpop.f32.mrb[75].mxu1  ;;  %v7576_v44 = vrot.slane %v4475_v7, %v8133_v63 }
 0x3e2   :  { %v7559_v13 = vadd.f32 %v3149_v39, %v2935_v2 }
 0x3e6   :  { %v3153_v1 = vpop.f32.mrb[76].mxu1 }
 0x3e7   :  { %v7561_v29 = vadd.f32 %v3153_v1, %v2931_v8  ;;  %v3155_v52 = vpop.f32.mrb[77].mxu1  ;;  %v4945_v1 = vadd.f32 %v3123_v22, %v2931_v8  ;;  %v3449_v22 = vadd.f32 %v3448_v10, %v7581_v12 }
 0x3e8   :  { %v7563_v3 = vadd.f32 %v3155_v52, %v2935_v2  ;;  %v3157_v30 = vpop.f32.mrb[78].mxu1 }
 0x3e9   :  { %8134 = vst [vmem:[#allocation34_spill] sm:$0xff] %v7561_v29  ;;  %v7568_v33 = vadd.f32 %v3157_v30, %v2931_v8  ;;  %v3159_v15 = vpop.f32.mrb[79].mxu1 }
 0x3ea   :  { %8135 = vst [vmem:[#allocation20_spill] sm:$0xff] %v7563_v3  ;;  %v7570_v34 = vadd.f32 %v3159_v15, %v2935_v2 }
 0x3eb   :  { %8136 = vst [vmem:[#allocation46_spill] sm:$0xff] %v7568_v33 }
 0x3ec   :  { %8137 = vst [vmem:[#allocation22_spill] sm:$0xff] %v7570_v34 }
 0x3ee   :  { %v3407_v39 = vpop.f32.mrb[80].mxu1 }
 0x3ef   :  { %v3408_v52 = vadd.f32 %v3407_v39, %v7573_v54  ;;  %v3409_v58 = vpop.f32.mrb[81].mxu1 }
 0x3f0   :  { %v3410_v28 = vadd.f32 %v3409_v58, %v7576_v44  ;;  %v3411_v3 = vpop.f32.mrb[82].mxu1 }
 0x3f1   :  { %v3454_v30 = vadd.f32 %v4945_v1, %v3408_v52  ;;  %v3412_v33 = vpop.f32.mrb[83].mxu1 }
 0x3f2   :  { %v3455_v29 = vadd.f32 %v4946_v20, %v3410_v28 }
 0x3f3   :  { %v3456_v15 = vmul.f32 0.5, %v3454_v30 }
 0x3f4   :  { %v3457_v34 = vmul.f32 0.5, %v3455_v29 }
 0x3f5   :  { %5125 = vtanh.f32 %v3456_v15 }
 0x3f6   :  { %5127 = vtanh.f32 %v3457_v34 }
 0x3ff   :  { %v5126_v63 = vpop.eup %5125 }
 0x400   :  { %v3460_v8 = vmul.f32 0.5, %v5126_v63  ;;  %v5128_v49 = vpop.eup %5127 }
 0x401   :  { %v3461_v2 = vmul.f32 0.5, %v5128_v49 }
 0x402   :  { %v3462_v39 = vadd.f32 0.5, %v3460_v8 }
 0x403   :  { %v3463_v3 = vadd.f32 0.5, %v3461_v2 }
 0x404   :  { %v3464_v61 = vmul.f32 %v3462_v39, %v3449_v22 }
 0x405   :  { %v3467_v28 = vsub.f32 1.0, %v3463_v3  ;;  %v3469_v33 = vmul.f32 0.0, %v3463_v3 }
 0x406   :  { %v3465_v58 = vadd.f32 %v3464_v61, %v7523_v9  ;;  %v8138_v9 = vmov 0.0  }
 0x408   :  { %5129 = vtanh.f32 %v3465_v58 }
 0x412   :  { %v5130_v20 = vpop.eup %5129 }
 0x413   :  { %v3468_v29 = vmul.f32 %v5130_v20, %v3467_v28 }
 0x415   :  { %v7585_v34 = vadd.f32 %v3469_v33, %v3468_v29 }
 0x417   :  { %v3471_v55 = vpack.c.bf16 %v7585_v34, %v7585_v34 }
 0x419   :  { %3505 = vmatmul.mubr.bf16.vlgmr.msra.gmra.mrb[84].mxu1 %v3471_v55  ;;  %4732 = vmatmul.mubr.bf16.vlgmr.msra.gmra.mrb[140].mxu0 %v3471_v55 }
 0x41a   :  { %3572 = vmatpush1.bf16.msra.mxu1 %v7438_v27  ;;  %4736 = vmatpush3.bf16.msra.mxu0 %v7367_v6 }
 0x41b   :  { %3573 = vmatprep.subr.bf16.mxu1 %v7441_v62  ;;  %4737 = vmatprep.subr.bf16.mxu0 %v8138_v9 }
 0x41c   :  { %3603 = vmatprep.mubr.bf16.mxu1 %v8127_v24  ;;  %4751 = vmatprep.mubr.msk.bf16.mxu0 %vm5203_vm0, %v8138_v9 }
 0x41e   :  { %3574 = vmatpush1.bf16.msra.mxu1 %v7448_v35  ;;  %4738 = vmatpush3.bf16.msra.mxu0 %v7373_v26 }
 0x41f   :  { %3575 = vmatprep.subr.bf16.mxu1 %v7451_v19  ;;  %4739 = vmatprep.subr.bf16.mxu0 %v8138_v9 }
 0x422   :  { %3576 = vmatpush1.bf16.msra.mxu1 %v7456_v11  ;;  %4740 = vmatpush3.bf16.msra.mxu0 %v7385_v17 }
 0x423   :  { %3577 = vmatprep.subr.bf16.mxu1 %v7458_v48  ;;  %4741 = vmatprep.subr.bf16.mxu0 %v8138_v9 }
 0x426   :  { %3578 = vmatpush1.bf16.msra.mxu1 %v7464_v21  ;;  %4742 = vmatpush3.bf16.msra.mxu0 %v7392_v41 }
 0x427   :  { %3579 = vmatprep.subr.bf16.mxu1 %v7466_v14  ;;  %4743 = vmatprep.subr.bf16.mxu0 %v8138_v9 }
 0x42a   :  { %3580 = vmatpush1.bf16.msra.mxu1 %v7470_v56  ;;  %4744 = vmatpush3.bf16.msra.mxu0 %v7396_v0 }
 0x42b   :  { %3581 = vmatprep.subr.bf16.mxu1 %v7472_v50  ;;  %4745 = vmatprep.subr.bf16.mxu0 %v8138_v9 }
 0x42e   :  { %3582 = vmatpush1.bf16.msra.mxu1 %v7478_v60  ;;  %4746 = vmatpush3.bf16.msra.mxu0 %v7400_v40 }
 0x42f   :  { %3583 = vmatprep.subr.bf16.mxu1 %v7480_v45  ;;  %4747 = vmatprep.subr.bf16.mxu0 %v8138_v9 }
 0x432   :  { %3584 = vmatpush1.bf16.msra.mxu1 %v7484_v23  ;;  %4748 = vmatpush3.bf16.msra.mxu0 %v7404_v59 }
 0x433   :  { %3585 = vmatprep.subr.bf16.mxu1 %v7486_v51  ;;  %4749 = vmatprep.subr.bf16.mxu0 %v8138_v9 }
 0x436   :  { %3586 = vmatpush1.bf16.msra.mxu1 %v7492_v32  ;;  %4750 = vmatpush3.bf16.msra.mxu0 %v7408_v46 }
 0x437   :  { %3670 = vmatprep.subr.bf16.mxu1 %v7434_v57  ;;  %4755 = vmatprep.subr.bf16.mxu0 %v8138_v9 }
 0x4ec   :  { %v3506_v61 = vpop.f32.mrb[84].mxu1  ;;  %v3547_v10 = vpop.f32.mrb[140].mxu0 }
 0x4ed   :  { %v3507_v7 = vadd.f32 %v3506_v61, %v7573_v54  ;;  %v3508_v1 = vpop.f32.mrb[85].mxu1  ;;  %v4733_v52 = vpop.f32.mrb[141].mxu0  ;;  %v3548_v20 = vadd.f32 %v3547_v10, %v7581_v12 }
 0x4ee   :  { %v3509_v30 = vadd.f32 %v3508_v1, %v7576_v44  ;;  %v3510_v15 = vpop.f32.mrb[86].mxu1  ;;  %v3550_v63 = vpop.f32.mrb[142].mxu0 }
 0x4ef   :  { %v3553_v22 = vadd.f32 %v7541_v53, %v3507_v7  ;;  %v3511_v8 = vpop.f32.mrb[87].mxu1  ;;  %v4734_v39 = vpop.f32.mrb[143].mxu0 }
 0x4f0   :  { %v3554_v49 = vadd.f32 %v7543_v43, %v3509_v30 }
 0x4f1   :  { %v3555_v58 = vmul.f32 0.5, %v3553_v22 }
 0x4f2   :  { %v3556_v2 = vmul.f32 0.5, %v3554_v49 }
 0x4f3   :  { %5131 = vtanh.f32 %v3555_v58 }
 0x4f4   :  { %5133 = vtanh.f32 %v3556_v2 }
 0x4fd   :  { %v5132_v3 = vpop.eup %5131 }
 0x4fe   :  { %v3559_v28 = vmul.f32 0.5, %v5132_v3  ;;  %v5134_v55 = vpop.eup %5133 }
 0x4ff   :  { %v3560_v1 = vmul.f32 0.5, %v5134_v55 }
 0x500   :  { %v3561_v33 = vadd.f32 0.5, %v3559_v28 }
 0x501   :  { %v3562_v53 = vadd.f32 0.5, %v3560_v1 }
 0x502   :  { %v3563_v29 = vmul.f32 %v3561_v33, %v3548_v20 }
 0x503   :  { %v3566_v7 = vsub.f32 1.0, %v3562_v53  ;;  %v3568_v43 = vmul.f32 %v3562_v53, %v7585_v34 }
 0x504   :  { %v3564_v61 = vadd.f32 %v3563_v29, %v7527_v36 }
 0x506   :  { %5135 = vtanh.f32 %v3564_v61 }
 0x510   :  { %v5136_v52 = vpop.eup %5135 }
 0x511   :  { %v3567_v15 = vmul.f32 %v5136_v52, %v3566_v7 }
 0x513   :  { %v7631_v30 = vadd.f32 %v3568_v43, %v3567_v15 }
 0x515   :  { %v3570_v63 = vpack.c.bf16 %v7631_v30, %v7631_v30 }
 0x517   :  { %3604 = vmatmul.mubr.bf16.vlgmr.msra.gmra.mrb[88].mxu1 %v3570_v63  ;;  %4752 = vmatmul.mubr.bf16.vlgmr.msra.gmra.mrb[144].mxu0 %v3570_v63 }
 0x518   :  { %3671 = vmatpush1.bf16.msra.mxu1 %v7438_v27  ;;  %4756 = vmatpush3.bf16.msra.mxu0 %v7367_v6 }
 0x519   :  { %3672 = vmatprep.subr.bf16.mxu1 %v7441_v62  ;;  %4757 = vmatprep.subr.bf16.mxu0 %v8138_v9 }
 0x51a   :  { %3702 = vmatprep.mubr.bf16.mxu1 %v8127_v24  ;;  %4771 = vmatprep.mubr.msk.bf16.mxu0 %vm5203_vm0, %v8138_v9 }
 0x51c   :  { %3673 = vmatpush1.bf16.msra.mxu1 %v7448_v35  ;;  %4758 = vmatpush3.bf16.msra.mxu0 %v7373_v26 }
 0x51d   :  { %3674 = vmatprep.subr.bf16.mxu1 %v7451_v19  ;;  %4759 = vmatprep.subr.bf16.mxu0 %v8138_v9 }
 0x520   :  { %3675 = vmatpush1.bf16.msra.mxu1 %v7456_v11  ;;  %4760 = vmatpush3.bf16.msra.mxu0 %v7385_v17 }
 0x521   :  { %3676 = vmatprep.subr.bf16.mxu1 %v7458_v48  ;;  %4761 = vmatprep.subr.bf16.mxu0 %v8138_v9 }
 0x524   :  { %3677 = vmatpush1.bf16.msra.mxu1 %v7464_v21  ;;  %4762 = vmatpush3.bf16.msra.mxu0 %v7392_v41 }
 0x525   :  { %3678 = vmatprep.subr.bf16.mxu1 %v7466_v14  ;;  %4763 = vmatprep.subr.bf16.mxu0 %v8138_v9 }
 0x528   :  { %3679 = vmatpush1.bf16.msra.mxu1 %v7470_v56  ;;  %4764 = vmatpush3.bf16.msra.mxu0 %v7396_v0 }
 0x529   :  { %3680 = vmatprep.subr.bf16.mxu1 %v7472_v50  ;;  %4765 = vmatprep.subr.bf16.mxu0 %v8138_v9 }
 0x52c   :  { %3681 = vmatpush1.bf16.msra.mxu1 %v7478_v60  ;;  %4766 = vmatpush3.bf16.msra.mxu0 %v7400_v40 }
 0x52d   :  { %3682 = vmatprep.subr.bf16.mxu1 %v7480_v45  ;;  %4767 = vmatprep.subr.bf16.mxu0 %v8138_v9 }
 0x530   :  { %3683 = vmatpush1.bf16.msra.mxu1 %v7484_v23  ;;  %4768 = vmatpush3.bf16.msra.mxu0 %v7404_v59 }
 0x531   :  { %3684 = vmatprep.subr.bf16.mxu1 %v7486_v51  ;;  %4769 = vmatprep.subr.bf16.mxu0 %v8138_v9 }
 0x534   :  { %3685 = vmatpush1.bf16.msra.mxu1 %v7492_v32  ;;  %4770 = vmatpush3.bf16.msra.mxu0 %v7408_v46 }
 0x535   :  { %3769 = vmatprep.subr.bf16.mxu1 %v7434_v57  ;;  %4775 = vmatprep.subr.bf16.mxu0 %v8138_v9 }
 0x5ea   :  { %v3605_v36 = vpop.f32.mrb[88].mxu1  ;;  %v3646_v34 = vpop.f32.mrb[144].mxu0 }
 0x5eb   :  { %v3606_v10 = vadd.f32 %v3605_v36, %v7573_v54  ;;  %v3607_v22 = vpop.f32.mrb[89].mxu1  ;;  %v4753_v8 = vpop.f32.mrb[145].mxu0  ;;  %v3647_v1 = vadd.f32 %v3646_v34, %v7581_v12 }
 0x5ec   :  { %v3608_v39 = vadd.f32 %v3607_v22, %v7576_v44  ;;  %v3609_v49 = vpop.f32.mrb[90].mxu1  ;;  %v3649_v58 = vpop.f32.mrb[146].mxu0 }
 0x5ed   :  { %v3652_v2 = vadd.f32 %v7545_v37, %v3606_v10  ;;  %v3610_v3 = vpop.f32.mrb[91].mxu1  ;;  %v4754_v28 = vpop.f32.mrb[147].mxu0 }
 0x5ee   :  { %v3653_v20 = vadd.f32 %v7547_v38, %v3608_v39 }
 0x5ef   :  { %v3654_v33 = vmul.f32 0.5, %v3652_v2 }
 0x5f0   :  { %v3655_v29 = vmul.f32 0.5, %v3653_v20 }
 0x5f1   :  { %5137 = vtanh.f32 %v3654_v33 }
 0x5f2   :  { %5139 = vtanh.f32 %v3655_v29 }
 0x5fb   :  { %v5138_v55 = vpop.eup %5137 }
 0x5fc   :  { %v3658_v61 = vmul.f32 0.5, %v5138_v55  ;;  %v5140_v52 = vpop.eup %5139 }
 0x5fd   :  { %v3659_v43 = vmul.f32 0.5, %v5140_v52 }
 0x5fe   :  { %v3660_v53 = vadd.f32 0.5, %v3658_v61 }
 0x5ff   :  { %v3661_v37 = vadd.f32 0.5, %v3659_v43 }
 0x600   :  { %v3662_v7 = vmul.f32 %v3660_v53, %v3647_v1 }
 0x601   :  { %v3665_v63 = vsub.f32 1.0, %v3661_v37  ;;  %v3667_v38 = vmul.f32 %v3661_v37, %v7631_v30 }
 0x602   :  { %v3663_v15 = vadd.f32 %v3662_v7, %v7521_v47 }
 0x604   :  { %5141 = vtanh.f32 %v3663_v15 }
 0x60e   :  { %v5142_v36 = vpop.eup %5141 }
 0x60f   :  { %v3666_v10 = vmul.f32 %v5142_v36, %v3665_v63  ;;  %v7728_v36 = vld [vmem:[#allocation2 + $0x3d0] sm:$0xff] }
 0x611   :  { %v7677_v22 = vadd.f32 %v3667_v38, %v3666_v10  ;;  %v7743_v10 = vld [vmem:[#allocation2 + $0x400] sm:$0xff]  ;;  %v7749_v38 = vld [vmem:[#allocation2 + $0x418] sm:$0xff] }
 0x613   :  { %v3669_v8 = vpack.c.bf16 %v7677_v22, %v7677_v22 }
 0x615   :  { %3703 = vmatmul.mubr.bf16.vlgmr.msra.gmra.mrb[92].mxu1 %v3669_v8  ;;  %4772 = vmatmul.mubr.bf16.vlgmr.msra.gmra.mrb[148].mxu0 %v3669_v8 }
 0x616   :  { %3770 = vmatpush1.bf16.msra.mxu1 %v7438_v27  ;;  %4776 = vmatpush3.bf16.msra.mxu0 %v7367_v6 }
 0x617   :  { %3771 = vmatprep.subr.bf16.mxu1 %v7441_v62  ;;  %4777 = vmatprep.subr.bf16.mxu0 %v8138_v9 }
 0x618   :  { %3801 = vmatprep.mubr.bf16.mxu1 %v8127_v24  ;;  %4791 = vmatprep.mubr.msk.bf16.mxu0 %vm5203_vm0, %v8138_v9 }
 0x61a   :  { %3772 = vmatpush1.bf16.msra.mxu1 %v7448_v35  ;;  %4778 = vmatpush3.bf16.msra.mxu0 %v7373_v26 }
 0x61b   :  { %3773 = vmatprep.subr.bf16.mxu1 %v7451_v19  ;;  %4779 = vmatprep.subr.bf16.mxu0 %v8138_v9 }
 0x61e   :  { %3774 = vmatpush1.bf16.msra.mxu1 %v7456_v11  ;;  %4780 = vmatpush3.bf16.msra.mxu0 %v7385_v17 }
 0x61f   :  { %3775 = vmatprep.subr.bf16.mxu1 %v7458_v48  ;;  %4781 = vmatprep.subr.bf16.mxu0 %v8138_v9 }
 0x622   :  { %3776 = vmatpush1.bf16.msra.mxu1 %v7464_v21  ;;  %4782 = vmatpush3.bf16.msra.mxu0 %v7392_v41 }
 0x623   :  { %3777 = vmatprep.subr.bf16.mxu1 %v7466_v14  ;;  %4783 = vmatprep.subr.bf16.mxu0 %v8138_v9 }
 0x626   :  { %3778 = vmatpush1.bf16.msra.mxu1 %v7470_v56  ;;  %4784 = vmatpush3.bf16.msra.mxu0 %v7396_v0 }
 0x627   :  { %3779 = vmatprep.subr.bf16.mxu1 %v7472_v50  ;;  %4785 = vmatprep.subr.bf16.mxu0 %v8138_v9 }
 0x62a   :  { %3780 = vmatpush1.bf16.msra.mxu1 %v7478_v60  ;;  %4786 = vmatpush3.bf16.msra.mxu0 %v7400_v40 }
 0x62b   :  { %3781 = vmatprep.subr.bf16.mxu1 %v7480_v45  ;;  %4787 = vmatprep.subr.bf16.mxu0 %v8138_v9 }
 0x62e   :  { %3782 = vmatpush1.bf16.msra.mxu1 %v7484_v23  ;;  %4788 = vmatpush3.bf16.msra.mxu0 %v7404_v59 }
 0x62f   :  { %3783 = vmatprep.subr.bf16.mxu1 %v7486_v51  ;;  %4789 = vmatprep.subr.bf16.mxu0 %v8138_v9 }
 0x632   :  { %3784 = vmatpush1.bf16.msra.mxu1 %v7492_v32  ;;  %4790 = vmatpush3.bf16.msra.mxu0 %v7408_v46 }
 0x633   :  { %3868 = vmatprep.subr.bf16.mxu1 %v7434_v57  ;;  %4795 = vmatprep.subr.bf16.mxu0 %v8138_v9 }
 0x6e8   :  { %v3704_v6 = vpop.f32.mrb[92].mxu1  ;;  %v3745_v26 = vpop.f32.mrb[148].mxu0 }
 0x6e9   :  { %v3705_v17 = vadd.f32 %v3704_v6, %v7573_v54  ;;  %v3706_v41 = vpop.f32.mrb[93].mxu1  ;;  %v4773_v0 = vpop.f32.mrb[149].mxu0  ;;  %v3746_v29 = vadd.f32 %v3745_v26, %v7581_v12 }
 0x6ea   :  { %v3707_v47 = vadd.f32 %v3706_v41, %v7576_v44  ;;  %v3708_v30 = vpop.f32.mrb[94].mxu1  ;;  %v3748_v34 = vpop.f32.mrb[150].mxu0 }
 0x6eb   :  { %v3751_v39 = vadd.f32 %v7549_v5, %v3705_v17  ;;  %v3709_v49 = vpop.f32.mrb[95].mxu1  ;;  %v4774_v58 = vpop.f32.mrb[151].mxu0 }
 0x6ec   :  { %v3752_v2 = vadd.f32 %v7551_v42, %v3707_v47 }
 0x6ed   :  { %v3753_v3 = vmul.f32 0.5, %v3751_v39 }
 0x6ee   :  { %v3754_v28 = vmul.f32 0.5, %v3752_v2 }
 0x6ef   :  { %5143 = vtanh.f32 %v3753_v3 }
 0x6f0   :  { %5145 = vtanh.f32 %v3754_v28 }
 0x6f9   :  { %v5144_v20 = vpop.eup %5143 }
 0x6fa   :  { %v3757_v33 = vmul.f32 0.5, %v5144_v20  ;;  %v5146_v1 = vpop.eup %5145 }
 0x6fb   :  { %v3758_v7 = vmul.f32 0.5, %v5146_v1 }
 0x6fc   :  { %v3759_v55 = vadd.f32 0.5, %v3757_v33 }
 0x6fd   :  { %v3760_v5 = vadd.f32 0.5, %v3758_v7 }
 0x6fe   :  { %v3761_v61 = vmul.f32 %v3759_v55, %v3746_v29 }
 0x6ff   :  { %v3764_v52 = vsub.f32 1.0, %v3760_v5  ;;  %v3766_v42 = vmul.f32 %v3760_v5, %v7677_v22  ;;  %v7755_v22 = vld [vmem:[#allocation2 + $0x430] sm:$0xff] }
 0x700   :  { %v3762_v53 = vadd.f32 %v3761_v61, %v7525_v25  ;;  %v7737_v25 = vld [vmem:[#allocation2 + $0x3e8] sm:$0xff] }
 0x702   :  { %5147 = vtanh.f32 %v3762_v53 }
 0x70c   :  { %v5148_v15 = vpop.eup %5147 }
 0x70d   :  { %v3765_v43 = vmul.f32 %v5148_v15, %v3764_v52 }
 0x70f   :  { %v7723_v37 = vadd.f32 %v3766_v42, %v3765_v43 }
 0x711   :  { %v3768_v63 = vpack.c.bf16 %v7723_v37, %v7723_v37 }
 0x713   :  { %3802 = vmatmul.mubr.bf16.vlgmr.msra.gmra.mrb[96].mxu1 %v3768_v63  ;;  %4792 = vmatmul.mubr.bf16.vlgmr.msra.gmra.mrb[152].mxu0 %v3768_v63 }
 0x714   :  { %3869 = vmatpush1.bf16.msra.mxu1 %v7438_v27  ;;  %4796 = vmatpush3.bf16.msra.mxu0 %v7728_v36 }
 0x715   :  { %3870 = vmatprep.subr.bf16.mxu1 %v7441_v62  ;;  %4797 = vmatprep.subr.bf16.mxu0 %v8138_v9 }
 0x716   :  { %3900 = vmatprep.mubr.bf16.mxu1 %v8127_v24  ;;  %4811 = vmatprep.mubr.msk.bf16.mxu0 %vm5203_vm0, %v8138_v9 }
 0x718   :  { %3871 = vmatpush1.bf16.msra.mxu1 %v7448_v35  ;;  %4798 = vmatpush3.bf16.msra.mxu0 %v7737_v25 }
 0x719   :  { %3872 = vmatprep.subr.bf16.mxu1 %v7451_v19  ;;  %4799 = vmatprep.subr.bf16.mxu0 %v8138_v9 }
 0x71c   :  { %3873 = vmatpush1.bf16.msra.mxu1 %v7456_v11  ;;  %4800 = vmatpush3.bf16.msra.mxu0 %v7743_v10 }
 0x71d   :  { %3874 = vmatprep.subr.bf16.mxu1 %v7458_v48  ;;  %4801 = vmatprep.subr.bf16.mxu0 %v8138_v9 }
 0x720   :  { %3875 = vmatpush1.bf16.msra.mxu1 %v7464_v21  ;;  %4802 = vmatpush3.bf16.msra.mxu0 %v7749_v38 }
 0x721   :  { %3876 = vmatprep.subr.bf16.mxu1 %v7466_v14  ;;  %4803 = vmatprep.subr.bf16.mxu0 %v8138_v9 }
 0x724   :  { %3877 = vmatpush1.bf16.msra.mxu1 %v7470_v56  ;;  %4804 = vmatpush3.bf16.msra.mxu0 %v7755_v22 }
 0x725   :  { %3878 = vmatprep.subr.bf16.mxu1 %v7472_v50  ;;  %4805 = vmatprep.subr.bf16.mxu0 %v8138_v9 }
 0x728   :  { %3879 = vmatpush1.bf16.msra.mxu1 %v7478_v60  ;;  %4806 = vmatpush3.bf16.msra.mxu0 %v7400_v40 }
 0x729   :  { %3880 = vmatprep.subr.bf16.mxu1 %v7480_v45  ;;  %4807 = vmatprep.subr.bf16.mxu0 %v8138_v9 }
 0x72c   :  { %3881 = vmatpush1.bf16.msra.mxu1 %v7484_v23  ;;  %4808 = vmatpush3.bf16.msra.mxu0 %v7404_v59 }
 0x72d   :  { %3882 = vmatprep.subr.bf16.mxu1 %v7486_v51  ;;  %4809 = vmatprep.subr.bf16.mxu0 %v8138_v9 }
 0x730   :  { %3883 = vmatpush1.bf16.msra.mxu1 %v7492_v32  ;;  %4810 = vmatpush3.bf16.msra.mxu0 %v7408_v46 }
 0x731   :  { %3967 = vmatprep.subr.bf16.mxu1 %v7434_v57  ;;  %4815 = vmatprep.subr.bf16.mxu0 %v8138_v9 }
 0x7e6   :  { %v3803_v40 = vpop.f32.mrb[96].mxu1  ;;  %v3844_v8 = vpop.f32.mrb[152].mxu0 }
 0x7e7   :  { %v3804_v6 = vadd.f32 %v3803_v40, %v7573_v54  ;;  %v3805_v26 = vpop.f32.mrb[97].mxu1  ;;  %v4793_v17 = vpop.f32.mrb[153].mxu0  ;;  %v3845_v2 = vadd.f32 %v3844_v8, %v7581_v12  ;;  %v8139_v8 = vld [vmem:[#allocation31_spill] sm:$0xff] }
 0x7e8   :  { %v3806_v59 = vadd.f32 %v3805_v26, %v7576_v44  ;;  %v3807_v41 = vpop.f32.mrb[98].mxu1  ;;  %v3847_v0 = vpop.f32.mrb[154].mxu0 }
 0x7e9   :  { %v3850_v47 = vadd.f32 %v7553_v4, %v3804_v6  ;;  %v3808_v30 = vpop.f32.mrb[99].mxu1  ;;  %v4794_v34 = vpop.f32.mrb[155].mxu0 }
 0x7ea   :  { %v3851_v46 = vadd.f32 %v7555_v16, %v3806_v59  ;;  %v5182_v30 = vld [vmem:[#allocation2 + $0x3c0] sm:$0xff] }
 0x7eb   :  { %v3852_v39 = vmul.f32 0.5, %v3850_v47  ;;  %v5183_v34 = vld [vmem:[#allocation2 + $0x3e0] sm:$0xff] }
 0x7ec   :  { %v3853_v57 = vmul.f32 0.5, %v3851_v46  ;;  %v5184_v46 = vld [vmem:[#allocation2 + $0x3d8] sm:$0xff] }
 0x7ed   :  { %5149 = vtanh.f32 %v3852_v39  ;;  %v5185_v39 = vld [vmem:[#allocation2 + $0x3f8] sm:$0xff] }
 0x7ee   :  { %5151 = vtanh.f32 %v3853_v57  ;;  %v5186_v57 = vld [vmem:[#allocation2 + $0x3f0] sm:$0xff] }
 0x7f7   :  { %v5150_v49 = vpop.eup %5149 }
 0x7f8   :  { %v3856_v58 = vmul.f32 0.5, %v5150_v49  ;;  %v5152_v20 = vpop.eup %5151  ;;  %v5189_v49 = vld [vmem:[#allocation2 + $0x428] sm:$0xff] }
 0x7f9   :  { %v3857_v29 = vmul.f32 0.5, %v5152_v20 }
 0x7fa   :  { %v3858_v3 = vadd.f32 0.5, %v3856_v58  ;;  %v5191_v58 = vld [vmem:[#allocation2 + $0x440] sm:$0xff] }
 0x7fb   :  { %v3859_v4 = vadd.f32 0.5, %v3857_v29 }
 0x7fc   :  { %v3860_v28 = vmul.f32 %v3858_v3, %v3845_v2  ;;  %v5193_v2 = vld [vmem:[#allocation2 + $0x458] sm:$0xff]  ;;  %v5195_v3 = vld [vmem:[#allocation2 + $0x470] sm:$0xff] }
 0x7fd   :  { %v3863_v55 = vsub.f32 1.0, %v3859_v4  ;;  %v3865_v16 = vmul.f32 %v3859_v4, %v7723_v37 }
 0x7fe   :  { %v3861_v33 = vadd.f32 %v3860_v28, %v7531_v18 }
 0x800   :  { %5153 = vtanh.f32 %v3861_v33 }
 0x80a   :  { %v5154_v61 = vpop.eup %5153 }
 0x80b   :  { %v3864_v1 = vmul.f32 %v5154_v61, %v3863_v55 }
 0x80d   :  { %v7779_v53 = vadd.f32 %v3865_v16, %v3864_v1  ;;  %v8140_v16 = vld [vmem:[#allocation34_spill] sm:$0xff] }
 0x80f   :  { %v3867_v7 = vpack.c.bf16 %v7779_v53, %v7779_v53 }
 0x811   :  { %3901 = vmatmul.mubr.bf16.vlgmr.msra.gmra.mrb[100].mxu1 %v3867_v7  ;;  %4812 = vmatmul.mubr.bf16.vlgmr.msra.gmra.mrb[156].mxu0 %v3867_v7 }
 0x812   :  { %3968 = vmatpush1.bf16.msra.mxu1 %v7438_v27  ;;  %4816 = vmatpush3.bf16.msra.mxu0 %v7728_v36  ;;  %v7807_v27 = vld [vmem:[#allocation2 + $0x448] sm:$0xff] }
 0x813   :  { %3969 = vmatprep.subr.bf16.mxu1 %v7441_v62  ;;  %4817 = vmatprep.subr.bf16.mxu0 %v8138_v9  ;;  %v7813_v62 = vld [vmem:[#allocation2 + $0x460] sm:$0xff] }
 0x814   :  { %3999 = vmatprep.mubr.bf16.mxu1 %v8127_v24  ;;  %4831 = vmatprep.mubr.msk.bf16.mxu0 %vm5203_vm0, %v8138_v9 }
 0x816   :  { %3970 = vmatpush1.bf16.msra.mxu1 %v7448_v35  ;;  %4818 = vmatpush3.bf16.msra.mxu0 %v7737_v25  ;;  %v7819_v35 = vld [vmem:[#allocation2 + $0x478] sm:$0xff] }
 0x817   :  { %3971 = vmatprep.subr.bf16.mxu1 %v7451_v19  ;;  %4819 = vmatprep.subr.bf16.mxu0 %v8138_v9  ;;  %v5181_v19 = vld [vmem:[#allocation2 + $0x3c8] sm:$0xff] }
 0x81a   :  { %3972 = vmatpush1.bf16.msra.mxu1 %v7456_v11  ;;  %4820 = vmatpush3.bf16.msra.mxu0 %v7743_v10 }
 0x81b   :  { %3973 = vmatprep.subr.bf16.mxu1 %v7458_v48  ;;  %4821 = vmatprep.subr.bf16.mxu0 %v8138_v9 }
 0x81e   :  { %3974 = vmatpush1.bf16.msra.mxu1 %v7464_v21  ;;  %4822 = vmatpush3.bf16.msra.mxu0 %v7749_v38 }
 0x81f   :  { %3975 = vmatprep.subr.bf16.mxu1 %v7466_v14  ;;  %4823 = vmatprep.subr.bf16.mxu0 %v8138_v9 }
 0x822   :  { %3976 = vmatpush1.bf16.msra.mxu1 %v7470_v56  ;;  %4824 = vmatpush3.bf16.msra.mxu0 %v7755_v22 }
 0x823   :  { %3977 = vmatprep.subr.bf16.mxu1 %v7472_v50  ;;  %4825 = vmatprep.subr.bf16.mxu0 %v8138_v9 }
 0x826   :  { %3978 = vmatpush1.bf16.msra.mxu1 %v7478_v60  ;;  %4826 = vmatpush3.bf16.msra.mxu0 %v7807_v27 }
 0x827   :  { %3979 = vmatprep.subr.bf16.mxu1 %v7480_v45  ;;  %4827 = vmatprep.subr.bf16.mxu0 %v8138_v9 }
 0x82a   :  { %3980 = vmatpush1.bf16.msra.mxu1 %v7484_v23  ;;  %4828 = vmatpush3.bf16.msra.mxu0 %v7813_v62 }
 0x82b   :  { %3981 = vmatprep.subr.bf16.mxu1 %v7486_v51  ;;  %4829 = vmatprep.subr.bf16.mxu0 %v8138_v9 }
 0x82e   :  { %3982 = vmatpush1.bf16.msra.mxu1 %v7492_v32  ;;  %4830 = vmatpush3.bf16.msra.mxu0 %v7819_v35 }
 0x82f   :  { %4066 = vmatprep.subr.bf16.mxu1 %v5181_v19  ;;  %4835 = vmatprep.subr.bf16.mxu0 %v8138_v9 }
 0x8e4   :  { %v3902_v11 = vpop.f32.mrb[100].mxu1  ;;  %v3943_v48 = vpop.f32.mrb[156].mxu0 }
 0x8e5   :  { %v3903_v21 = vadd.f32 %v3902_v11, %v7573_v54  ;;  %v3904_v14 = vpop.f32.mrb[101].mxu1  ;;  %v4813_v56 = vpop.f32.mrb[157].mxu0  ;;  %v3944_v42 = vadd.f32 %v3943_v48, %v7581_v12 }
 0x8e6   :  { %v3905_v50 = vadd.f32 %v3904_v14, %v7576_v44  ;;  %v3906_v60 = vpop.f32.mrb[102].mxu1  ;;  %v3946_v45 = vpop.f32.mrb[158].mxu0 }
 0x8e7   :  { %v3949_v23 = vadd.f32 %v7557_v31, %v3903_v21  ;;  %v3907_v51 = vpop.f32.mrb[103].mxu1  ;;  %v4814_v32 = vpop.f32.mrb[159].mxu0  ;;  %v8142_v45 = vld [vmem:[#allocation23_spill] sm:$0xff] }
 0x8e8   :  { %v3950_v18 = vadd.f32 %v7559_v13, %v3905_v50 }
 0x8e9   :  { %v3951_v5 = vmul.f32 0.5, %v3949_v23 }
 0x8ea   :  { %v3952_v52 = vmul.f32 0.5, %v3950_v18 }
 0x8eb   :  { %5155 = vtanh.f32 %v3951_v5 }
 0x8ec   :  { %5157 = vtanh.f32 %v3952_v52 }
 0x8f5   :  { %v5156_v15 = vpop.eup %5155 }
 0x8f6   :  { %v3955_v43 = vmul.f32 0.5, %v5156_v15  ;;  %v5158_v40 = vpop.eup %5157 }
 0x8f7   :  { %v3956_v26 = vmul.f32 0.5, %v5158_v40 }
 0x8f8   :  { %v3957_v37 = vadd.f32 0.5, %v3955_v43 }
 0x8f9   :  { %v3958_v31 = vadd.f32 0.5, %v3956_v26 }
 0x8fa   :  { %v3959_v63 = vmul.f32 %v3957_v37, %v3944_v42 }
 0x8fb   :  { %v3962_v17 = vsub.f32 1.0, %v3958_v31  ;;  %v3964_v13 = vmul.f32 %v3958_v31, %v7779_v53 }
 0x8fc   :  { %v3960_v6 = vadd.f32 %v3959_v63, %v8139_v8 }
 0x8fe   :  { %5159 = vtanh.f32 %v3960_v6 }
 0x908   :  { %v5160_v59 = vpop.eup %5159 }
 0x909   :  { %v3963_v41 = vmul.f32 %v5160_v59, %v3962_v17  ;;  %v8143_v59 = vld [vmem:[#allocation46_spill] sm:$0xff] }
 0x90b   :  { %v7830_v0 = vadd.f32 %v3964_v13, %v3963_v41 }
 0x90d   :  { %v3966_v47 = vpack.c.bf16 %v7830_v0, %v7830_v0 }
 0x90f   :  { %4000 = vmatmul.mubr.bf16.vlgmr.msra.gmra.mrb[104].mxu1 %v3966_v47  ;;  %4832 = vmatmul.mubr.bf16.vlgmr.msra.gmra.mrb[160].mxu0 %v3966_v47 }
 0x910   :  { %4067 = vmatpush1.bf16.msra.mxu1 %v5182_v30  ;;  %4836 = vmatpush3.bf16.msra.mxu0 %v7728_v36  ;;  %v5187_v36 = vld [vmem:[#allocation2 + $0x410] sm:$0xff]  ;;  %v8144_v30 = vld [vmem:[#allocation22_spill] sm:$0xff] }
 0x911   :  { %4068 = vmatprep.subr.bf16.mxu1 %v5183_v34  ;;  %4837 = vmatprep.subr.bf16.mxu0 %v8138_v9 }
 0x912   :  { %4098 = vmatprep.mubr.bf16.mxu1 %v8127_v24  ;;  %4851 = vmatprep.mubr.msk.bf16.mxu0 %vm5203_vm0, %v8138_v9  ;;  %v5188_v24 = vld [vmem:[#allocation2 + $0x408] sm:$0xff] }
 0x914   :  { %4069 = vmatpush1.bf16.msra.mxu1 %v5184_v46  ;;  %4838 = vmatpush3.bf16.msra.mxu0 %v7737_v25  ;;  %v5190_v25 = vld [vmem:[#allocation2 + $0x420] sm:$0xff] }
 0x915   :  { %4070 = vmatprep.subr.bf16.mxu1 %v5185_v39  ;;  %4839 = vmatprep.subr.bf16.mxu0 %v8138_v9 }
 0x918   :  { %4071 = vmatpush1.bf16.msra.mxu1 %v5186_v57  ;;  %4840 = vmatpush3.bf16.msra.mxu0 %v7743_v10  ;;  %v5192_v10 = vld [vmem:[#allocation2 + $0x438] sm:$0xff] }
 0x919   :  { %4072 = vmatprep.subr.bf16.mxu1 %v5187_v36  ;;  %4841 = vmatprep.subr.bf16.mxu0 %v8138_v9 }
 0x91c   :  { %4073 = vmatpush1.bf16.msra.mxu1 %v5188_v24  ;;  %4842 = vmatpush3.bf16.msra.mxu0 %v7749_v38  ;;  %v5194_v38 = vld [vmem:[#allocation2 + $0x450] sm:$0xff] }
 0x91d   :  { %4074 = vmatprep.subr.bf16.mxu1 %v5189_v49  ;;  %4843 = vmatprep.subr.bf16.mxu0 %v8138_v9 }
 0x920   :  { %4075 = vmatpush1.bf16.msra.mxu1 %v5190_v25  ;;  %4844 = vmatpush3.bf16.msra.mxu0 %v7755_v22  ;;  %v5196_v22 = vld [vmem:[#allocation2 + $0x468] sm:$0xff] }
 0x921   :  { %4076 = vmatprep.subr.bf16.mxu1 %v5191_v58  ;;  %4845 = vmatprep.subr.bf16.mxu0 %v8138_v9 }
 0x924   :  { %4077 = vmatpush1.bf16.msra.mxu1 %v5192_v10  ;;  %4846 = vmatpush3.bf16.msra.mxu0 %v7807_v27 }
 0x925   :  { %4078 = vmatprep.subr.bf16.mxu1 %v5193_v2  ;;  %4847 = vmatprep.subr.bf16.mxu0 %v8138_v9 }
 0x928   :  { %4079 = vmatpush1.bf16.msra.mxu1 %v5194_v38  ;;  %4848 = vmatpush3.bf16.msra.mxu0 %v7813_v62  ;;  %v8141_v62 = vld [vmem:[#allocation20_spill] sm:$0xff] }
 0x929   :  { %4080 = vmatprep.subr.bf16.mxu1 %v5195_v3  ;;  %4849 = vmatprep.subr.bf16.mxu0 %v8138_v9 }
 0x92c   :  { %4081 = vmatpush1.bf16.msra.mxu1 %v5196_v22  ;;  %4850 = vmatpush3.bf16.msra.mxu0 %v7819_v35 }
 0x9e2   :  { %v4001_v28 = vpop.f32.mrb[104].mxu1  ;;  %v4042_v20 = vpop.f32.mrb[160].mxu0 }
 0x9e3   :  { %v4002_v33 = vadd.f32 %v4001_v28, %v7573_v54  ;;  %v4003_v29 = vpop.f32.mrb[105].mxu1  ;;  %v4833_v4 = vpop.f32.mrb[161].mxu0  ;;  %v4043_v14 = vadd.f32 %v4042_v20, %v7581_v12 }
 0x9e4   :  { %v4004_v55 = vadd.f32 %v4003_v29, %v7576_v44  ;;  %v4005_v61 = vpop.f32.mrb[106].mxu1  ;;  %v4045_v1 = vpop.f32.mrb[162].mxu0 }
 0x9e5   :  { %v4048_v53 = vadd.f32 %v8140_v16, %v4002_v33  ;;  %v4006_v7 = vpop.f32.mrb[107].mxu1  ;;  %v4834_v27 = vpop.f32.mrb[163].mxu0 }
 0x9e6   :  { %v4049_v19 = vadd.f32 %v8141_v62, %v4004_v55 }
 0x9e7   :  { %v4050_v11 = vmul.f32 0.5, %v4048_v53 }
 0x9e8   :  { %v4051_v48 = vmul.f32 0.5, %v4049_v19 }
 0x9e9   :  { %5161 = vtanh.f32 %v4050_v11 }
 0x9ea   :  { %5163 = vtanh.f32 %v4051_v48 }
 0x9f3   :  { %v5162_v35 = vpop.eup %5161 }
 0x9f4   :  { %v4054_v21 = vmul.f32 0.5, %v5162_v35  ;;  %v5164_v60 = vpop.eup %5163 }
 0x9f5   :  { %v4055_v51 = vmul.f32 0.5, %v5164_v60 }
 0x9f6   :  { %v4056_v56 = vadd.f32 0.5, %v4054_v21 }
 0x9f7   :  { %v4057_v32 = vadd.f32 0.5, %v4055_v51 }
 0x9f8   :  { %v4058_v50 = vmul.f32 %v4056_v56, %v4043_v14 }
 0x9f9   :  { %v4061_v18 = vsub.f32 1.0, %v4057_v32  ;;  %v4063_v15 = vmul.f32 %v4057_v32, %v7830_v0 }
 0x9fa   :  { %v4059_v23 = vadd.f32 %v4058_v50, %v8142_v45 }
 0x9fc   :  { %5165 = vtanh.f32 %v4059_v23 }
 0xa06   :  { %v5166_v5 = vpop.eup %5165 }
 0xa07   :  { %v4062_v52 = vmul.f32 %v5166_v5, %v4061_v18 }
 0xa09   :  { %v4064_v43 = vadd.f32 %v4063_v15, %v4062_v52 }
 0xa0b   :  { %v4065_v42 = vpack.c.bf16 %v4064_v43, %v4064_v43 }
 0xa0d   :  { %4099 = vmatmul.mubr.bf16.vlgmr.msra.gmra.mrb[108].mxu1 %v4065_v42  ;;  %4852 = vmatmul.mubr.bf16.vlgmr.msra.gmra.mrb[164].mxu0 %v4065_v42 }
 0xae0   :  { %v4100_v37 = vpop.f32.mrb[108].mxu1  ;;  %v4141_v63 = vpop.f32.mrb[164].mxu0 }
 0xae1   :  { %v4101_v40 = vadd.f32 %v4100_v37, %v7573_v54  ;;  %v4102_v8 = vpop.f32.mrb[109].mxu1  ;;  %v4853_v6 = vpop.f32.mrb[165].mxu0  ;;  %v4142_v54 = vadd.f32 %v4141_v63, %v7581_v12 }
 0xae2   :  { %v4103_v26 = vadd.f32 %v4102_v8, %v7576_v44  ;;  %v4104_v31 = vpop.f32.mrb[110].mxu1  ;;  %v4144_v17 = vpop.f32.mrb[166].mxu0  ;;  %v8145_v44 = vld [vmem:[#allocation26_spill] sm:$0xff] }
 0xae3   :  { %v4147_v41 = vadd.f32 %v8143_v59, %v4101_v40  ;;  %v4105_v13 = vpop.f32.mrb[111].mxu1  ;;  %v4854_v47 = vpop.f32.mrb[167].mxu0 }
 0xae4   :  { %v4148_v0 = vadd.f32 %v8144_v30, %v4103_v26 }
 0xae5   :  { %v4149_v34 = vmul.f32 0.5, %v4147_v41 }
 0xae6   :  { %v4150_v46 = vmul.f32 0.5, %v4148_v0 }
 0xae7   :  { %5167 = vtanh.f32 %v4149_v34 }
 0xae8   :  { %5169 = vtanh.f32 %v4150_v46 }
 0xaf1   :  { %v5168_v39 = vpop.eup %5167 }
 0xaf2   :  { %v4153_v57 = vmul.f32 0.5, %v5168_v39  ;;  %v5170_v49 = vpop.eup %5169 }
 0xaf3   :  { %v4154_v58 = vmul.f32 0.5, %v5170_v49 }
 0xaf4   :  { %v4155_v36 = vadd.f32 0.5, %v4153_v57 }
 0xaf5   :  { %v4156_v10 = vadd.f32 0.5, %v4154_v58 }
 0xaf6   :  { %v4157_v24 = vmul.f32 %v4155_v36, %v4142_v54 }
 0xaf7   :  { %v4160_v2 = vsub.f32 1.0, %v4156_v10  ;;  %v4162_v22 = vmul.f32 %v4156_v10, %v4064_v43 }
 0xaf8   :  { %v4158_v25 = vadd.f32 %v4157_v24, %v8145_v44 }
 0xafa   :  { %5171 = vtanh.f32 %v4158_v25 }
 0xb04   :  { %v5172_v38 = vpop.eup %5171 }
 0xb05   :  { %v4161_v3 = vmul.f32 %v5172_v38, %v4160_v2 }
 0xb07   :  { %v4163_v28 = vadd.f32 %v4162_v22, %v4161_v3 }
 0xb08   :  { %5199 = dma.done.wait [#allocation4 + $0x1], 3328 }
 0xb09   :  { %5200 = vsyncadd [#allocation4 + $0x1], 4294963968  ;;  %4887 = vmatprep.mubr.msk.f32.mxu1 %vm5203_vm0, %v8138_v9  ;;  %4906 = vmatprep.mubr.msk.f32.mxu0 %vm5203_vm0, %v8138_v9  ;;  %v5204_v12 = vmov 0.0|0.0   ;;  %v4167_v20 = vld [vmem:[#allocation3] sm:$0xff]  ;;  %v4168_v33 = vld [vmem:[#allocation3 + $0x8] sm:$0xff]  ;;  %vm4272_vm1 = vcmask 523264  }
 0xb0a   :  { %4909 = vmatprep.subr.bf16.mxu1 %v5204_v12  ;;  %4933 = vmatprep.subr.bf16.mxu0 %v5204_v12  ;;  %v4169_v29 = vld [vmem:[#allocation3 + $0x10] sm:$0xff]  ;;  %v4910_v4 = vpack.c.bf16 %v4168_v33, %v4167_v20  ;;  %v4170_v55 = vld [vmem:[#allocation3 + $0x18] sm:$0xff]  ;;  %v4171_v1 = vld [vmem:[#allocation3 + $0x20] sm:$0xff]  ;;  %vm4346_vm2 = vcmask 56320  }
 0xb0b   :  { %v4913_v61 = vpack.c.bf16 %v4170_v55, %v4169_v29  ;;  %v4172_v16 = vld [vmem:[#allocation3 + $0x28] sm:$0xff]  ;;  %v4185_v7 = vld [vmem:[#allocation3 + $0x90] sm:$0xff]  ;;  %v4186_v62 = vld [vmem:[#allocation3 + $0x98] sm:$0xff] }
 0xb0c   :  { %4911 = vmatpush3.bf16.msra.mxu1 %v4910_v4  ;;  %v4184_v53 = vld [vmem:[#allocation3 + $0x88] sm:$0xff]  ;;  %v4187_v19 = vld [vmem:[#allocation3 + $0xa0] sm:$0xff]  ;;  %v4916_v9 = vpack.c.bf16 %v4172_v16, %v4171_v1  ;;  %v4173_v11 = vld [vmem:[#allocation3 + $0x30] sm:$0xff] }
 0xb0d   :  { %4912 = vmatprep.subr.bf16.mxu1 %v5204_v12  ;;  %v4934_v27 = vpack.c.bf16 %v4185_v7, %v4184_v53  ;;  %v4174_v48 = vld [vmem:[#allocation3 + $0x38] sm:$0xff]  ;;  %v4937_v35 = vpack.c.bf16 %v4187_v19, %v4186_v62  ;;  %v4188_v21 = vld [vmem:[#allocation3 + $0xa8] sm:$0xff]  ;;  %v4189_v14 = vld [vmem:[#allocation3 + $0xb0] sm:$0xff] }
 0xb0e   :  { %v4919_v56 = vpack.c.bf16 %v4174_v48, %v4173_v11  ;;  %v4175_v50 = vld [vmem:[#allocation3 + $0x40] sm:$0xff]  ;;  %v4176_v60 = vld [vmem:[#allocation3 + $0x48] sm:$0xff]  ;;  %v4940_v45 = vpack.c.bf16 %v4189_v14, %v4188_v21  ;;  %v4177_v51 = vld [vmem:[#allocation3 + $0x50] sm:$0xff] }
 0xb0f   :  { %4935 = vmatpush3.bf16.msra.mxu0 %v4934_v27  ;;  %v4922_v23 = vpack.c.bf16 %v4176_v60, %v4175_v50  ;;  %v4178_v32 = vld [vmem:[#allocation3 + $0x58] sm:$0xff]  ;;  %v4179_v5 = vld [vmem:[#allocation3 + $0x60] sm:$0xff]  ;;  %v4180_v52 = vld [vmem:[#allocation3 + $0x68] sm:$0xff] }
 0xb10   :  { %4914 = vmatpush3.bf16.msra.mxu1 %v4913_v61  ;;  %4936 = vmatprep.subr.bf16.mxu0 %v5204_v12  ;;  %v4925_v18 = vpack.c.bf16 %v4178_v32, %v4177_v51  ;;  %v4928_v15 = vpack.c.bf16 %v4180_v52, %v4179_v5  ;;  %v4181_v43 = vld [vmem:[#allocation3 + $0x70] sm:$0xff]  ;;  %v4182_v42 = vld [vmem:[#allocation3 + $0x78] sm:$0xff]  ;;  %v4191_v40 = vld [vmem:[#allocation3 + $0xc0] sm:$0xff] }
 0xb11   :  { %4915 = vmatprep.subr.bf16.mxu1 %v5204_v12  ;;  %v4931_v37 = vpack.c.bf16 %v4182_v42, %v4181_v43  ;;  %v4190_v63 = vld [vmem:[#allocation3 + $0xb8] sm:$0xff]  ;;  %v4476_v6 = vld [vmem:[#allocation3 + $0x80] ss:$0 sm:$0xff]  ;;  %v4477_v41 = vld [vmem:[#allocation3 + $0xc8] ss:$0 sm:$0xff] }
 0xb12   :  { %v4943_v8 = vpack.c.bf16 %v4191_v40, %v4190_v63 }
 0xb13   :  { %4938 = vmatpush3.bf16.msra.mxu0 %v4937_v35 }
 0xb14   :  { %4917 = vmatpush3.bf16.msra.mxu1 %v4916_v9  ;;  %4939 = vmatprep.subr.bf16.mxu0 %v5204_v12 }
 0xb15   :  { %4918 = vmatprep.subr.bf16.mxu1 %v5204_v12 }
 0xb17   :  { %4941 = vmatpush3.bf16.msra.mxu0 %v4940_v45 }
 0xb18   :  { %4920 = vmatpush3.bf16.msra.mxu1 %v4919_v56  ;;  %4942 = vmatprep.subr.bf16.mxu0 %v5204_v12 }
 0xb19   :  { %4921 = vmatprep.subr.bf16.mxu1 %v5204_v12 }
 0xb1b   :  { %4944 = vmatpush3.bf16.msra.mxu0 %v4943_v8 }
 0xb1c   :  { %4923 = vmatpush3.bf16.msra.mxu1 %v4922_v23 }
 0xb1d   :  { %4924 = vmatprep.subr.bf16.mxu1 %v5204_v12 }
 0xb20   :  { %4926 = vmatpush3.bf16.msra.mxu1 %v4925_v18 }
 0xb21   :  { %4927 = vmatprep.subr.bf16.mxu1 %v5204_v12 }
 0xb24   :  { %4929 = vmatpush3.bf16.msra.mxu1 %v4928_v15 }
 0xb25   :  { %4930 = vmatprep.subr.bf16.mxu1 %v5204_v12 }
 0xb28   :  { %4932 = vmatpush3.bf16.msra.mxu1 %v4931_v37 }
 0xb2b   :  { %4888 = vmatmul.mubr.f32.vlgmr.msra.gmra.mrb[112].mxu1 %v4163_v28 }
 0xbfe   :  { %v4263_v26 = vpop.f32.mrb[112].mxu1 }
 0xbff   :  { %v4264_v31 = vadd.f32 %v4476_v6, %v4263_v26  ;;  %v4889_v17 = vpop.f32.mrb[113].mxu1 }
 0xc01   :  { %v4267_v59 = vmax.f32 %v4264_v31, 0.0 }
 0xc03   :  { %4907 = vmatmul.mubr.msk.f32.vlgmr.msra.gmra.mrb[168].mxu0 %vm4272_vm1, %v4267_v59 }
 0xcd6   :  { %v4342_v13 = vpop.f32.mrb[168].mxu0 }
 0xcd7   :  { %v4343_v47 = vadd.f32 %v4477_v41, %v4342_v13  ;;  %v4908_v30 = vpop.f32.mrb[169].mxu0 }
 0xcd9   :  { %4347 = vst.msk [vmem:[%s7878_s6] sm:$0xff] %vm4346_vm2, %v4343_v47 }
 0xcda   :  { %4352 = vsyncmov [#allocation4] }
 0xcdd   :  { %s4353_s24 = vpop.sfrf %4352 }
 0xcde   :  { %p4479_p0 = scmp.ne.s32.totalorder %s4353_s24, 0 }
 0xce0   :  { %4357 = shalt.err (%p4479_p0)  }
 0xce1   :  { %4359 = vsyncmov [#allocation4 + $0x1] }
 0xce4   :  { %s4360_s25 = vpop.sfrf %4359 }
 0xce5   :  { %p4480_p1 = scmp.ne.s32.totalorder %s4360_s25, 0 }
 0xce7   :  { %4364 = shalt.err (%p4480_p1)  }

</bundles_post_ra>
